<compile_context>
chip_gen: v7x
topology: tpu7x:2x2x1
jax: 0.10.0
libtpu: 0.0.40
codegen_flags: <defaults>
</compile_context>

<pallas_src>
import functools

import jax
import jax.numpy as jnp
from jax.experimental import pallas as pl
from jax.experimental.pallas import tpu as pltpu


# ---------------------------------------------------------------------------
# Fused kernel: one grid step = one batch element.
# ---------------------------------------------------------------------------
def _se_connect_kernel(x_ref, w1_ref, b1_ref, w2_ref, b2_ref, o_ref, *, inv_t):
    x = x_ref[0]                                             # [C, T]  f32
    # Time mean: lane reduction (XLU), kept as a column vector [C, 1].
    s = jnp.sum(x, axis=1, keepdims=True) * inv_t            # [C, 1]
    # FC1 + ReLU:   [C//2, C] @ [C, 1] -> [C//2, 1]
    h = jnp.dot(w1_ref[...], s, preferred_element_type=jnp.float32) + b1_ref[...]
    h = jnp.maximum(h, 0.0)
    # FC2 + sigmoid: [C, C//2] @ [C//2, 1] -> [C, 1]
    g = jnp.dot(w2_ref[...], h, preferred_element_type=jnp.float32) + b2_ref[...]
    g = jax.nn.sigmoid(g)                                    # EUP
    # Broadcast the gate over time (lane broadcast) and scale in place.
    o_ref[0] = (x * g).astype(o_ref.dtype)


def se_connect(x, w1, b1, w2, b2):
    """Fused SE_Connect forward.

    x  : [B, C, T]   activation (PyTorch NCL layout)
    w1 : [C//2, C]   linear1.weight     b1 : [C//2]  linear1.bias
    w2 : [C, C//2]   linear2.weight     b2 : [C]     linear2.bias
    returns [B, C, T]
    """
    B, C, T = x.shape
    Cmid = w1.shape[0]
    assert w1.shape == (Cmid, C) and w2.shape == (C, Cmid)
    assert b1.shape == (Cmid,) and b2.shape == (C,)

    # One [C, T] tile per batch element (double-buffered in + out) must fit in
    # VMEM.  At SE_Connect's real shapes (C=512, T a few hundred) this is well
    # under 2 MiB.
    # TODO(synk): for very long sequences, switch to a two-pass schedule
    # (partial time-sums, then a second scaling pass) tiled over T.
    assert 4 * C * T * 4 < 16 * 1024 * 1024, "per-batch tile too large for VMEM"

    b1c = b1.reshape(Cmid, 1).astype(jnp.float32)   # tiny, one-time reshape
    b2c = b2.reshape(C, 1).astype(jnp.float32)

    kernel = functools.partial(_se_connect_kernel, inv_t=float(1.0 / T))

    return pl.pallas_call(
        kernel,
        out_shape=jax.ShapeDtypeStruct((B, C, T), x.dtype),
        grid_spec=pltpu.PrefetchScalarGridSpec(
            num_scalar_prefetch=0,
            grid=(B,),
            in_specs=[
                pl.BlockSpec((1, C, T), lambda b: (b, 0, 0)),   # x[b]
                pl.BlockSpec((Cmid, C), lambda b: (0, 0)),      # W1 (resident)
                pl.BlockSpec((Cmid, 1), lambda b: (0, 0)),      # b1 (resident)
                pl.BlockSpec((C, Cmid), lambda b: (0, 0)),      # W2 (resident)
                pl.BlockSpec((C, 1), lambda b: (0, 0)),         # b2 (resident)
            ],
            out_specs=pl.BlockSpec((1, C, T), lambda b: (b, 0, 0)),
        ),
        compiler_params=pltpu.CompilerParams(
            dimension_semantics=("parallel",)),
    )(x.astype(jnp.float32), w1.astype(jnp.float32), b1c,
      w2.astype(jnp.float32), b2c)


# ---------------------------------------------------------------------------
# Pure-JAX reference (mirrors the PyTorch forward exactly).
# ---------------------------------------------------------------------------
def se_connect_ref(x, w1, b1, w2, b2):
    hi = jax.lax.Precision.HIGHEST
    s = jnp.mean(x, axis=2)                                        # [B, C]
    h = jnp.maximum(jnp.dot(s, w1.T, precision=hi) + b1, 0.0)      # [B, C//2]
    g = jax.nn.sigmoid(jnp.dot(h, w2.T, precision=hi) + b2)        # [B, C]
    return x * g[:, :, None]


if __name__ == "__main__":
    key = jax.random.PRNGKey(0)
    kx, k1, k2, k3, k4 = jax.random.split(key, 5)

    # Shapes consistent with cnn(): channels=512, s=2.  Small batch / T.
    B, C, T, S = 2, 512, 128, 2
    Cmid = C // S

    x = jax.random.normal(kx, (B, C, T), jnp.float32)
    w1 = jax.random.normal(k1, (Cmid, C), jnp.float32) * 0.05   # linear1.weight
    b1 = jax.random.normal(k2, (Cmid,), jnp.float32) * 0.05     # linear1.bias
    w2 = jax.random.normal(k3, (C, Cmid), jnp.float32) * 0.05   # linear2.weight
    b2 = jax.random.normal(k4, (C,), jnp.float32) * 0.05        # linear2.bias

    out = jax.jit(se_connect)(x, w1, b1, w2, b2)
    out = jax.block_until_ready(out)

    ref = se_connect_ref(x, w1, b1, w2, b2)
    assert out.shape == (B, C, T), out.shape
    assert bool(jnp.all(jnp.isfinite(out)))
    assert bool(jnp.allclose(out, ref, atol=2e-4, rtol=2e-4))
    print("KERNEL_OK")
</pallas_src>

<mosaic_0001>
module attributes {stable_mosaic.version = 11 : i64} {
  func.func @_se_connect_kernel(%arg0: i32, %arg1: memref<1x512x128xf32, #tpu.memory_space<vmem>>, %arg2: memref<256x512xf32, #tpu.memory_space<vmem>>, %arg3: memref<256x1xf32, #tpu.memory_space<vmem>>, %arg4: memref<512x256xf32, #tpu.memory_space<vmem>>, %arg5: memref<512x1xf32, #tpu.memory_space<vmem>>, %arg6: memref<1x512x128xf32, #tpu.memory_space<vmem>>) attributes {dimension_semantics = [#tpu.dimension_semantics<parallel>], iteration_bounds = array<i64: 2>, scalar_prefetch = 0 : i64, scratch_operands = 0 : i64, tpu.core_type = #tpu.core_type<tc>, window_params = [{transform_indices = @transform_0, window_bounds = array<i64: 1, 512, 128>}, {pipeline_mode = #tpu.pipeline_mode<synchronous>, transform_indices = @transform_1, window_bounds = array<i64: 256, 512>}, {pipeline_mode = #tpu.pipeline_mode<synchronous>, transform_indices = @transform_2, window_bounds = array<i64: 256, 1>}, {pipeline_mode = #tpu.pipeline_mode<synchronous>, transform_indices = @transform_3, window_bounds = array<i64: 512, 256>}, {pipeline_mode = #tpu.pipeline_mode<synchronous>, transform_indices = @transform_4, window_bounds = array<i64: 512, 1>}, {transform_indices = @transform_5, window_bounds = array<i64: 1, 512, 128>}]} {
    %c0 = arith.constant 0 : index
    %c0_0 = arith.constant 0 : index
    %c0_1 = arith.constant 0 : index
    %0 = vector.load %arg1[%c0, %c0_0, %c0_1] : memref<1x512x128xf32, #tpu.memory_space<vmem>>, vector<1x512x128xf32>
    %1 = vector.shape_cast %0 : vector<1x512x128xf32> to vector<512x128xf32>
    %cst = arith.constant dense<0.000000e+00> : vector<512xf32>
    %2 = vector.multi_reduction <add>, %1, %cst [1] : vector<512x128xf32> to vector<512xf32>
    %3 = vector.shape_cast %2 : vector<512xf32> to vector<512x1xf32>
    %cst_2 = arith.constant 7.812500e-03 : f32
    %4 = vector.broadcast %cst_2 : f32 to vector<512x1xf32>
    %5 = arith.mulf %3, %4 : vector<512x1xf32>
    %c0_3 = arith.constant 0 : index
    %c0_4 = arith.constant 0 : index
    %6 = vector.load %arg2[%c0_3, %c0_4] : memref<256x512xf32, #tpu.memory_space<vmem>>, vector<256x512xf32>
    %cst_5 = arith.constant dense<0.000000e+00> : vector<256x1xf32>
    %7 = tpu.matmul %6, %5, %cst_5 {dimension_numbers = #tpu.dot_dimension_numbers<[1], [0], [0], [1], [0, 0, 1, 1], [], []>} : vector<256x512xf32>, vector<512x1xf32>, vector<256x1xf32> -> vector<256x1xf32>
    %c0_6 = arith.constant 0 : index
    %c0_7 = arith.constant 0 : index
    %8 = vector.load %arg3[%c0_6, %c0_7] : memref<256x1xf32, #tpu.memory_space<vmem>>, vector<256x1xf32>
    %9 = arith.addf %7, %8 : vector<256x1xf32>
    %cst_8 = arith.constant 0.000000e+00 : f32
    %10 = vector.broadcast %cst_8 : f32 to vector<256x1xf32>
    %11 = arith.maximumf %9, %10 : vector<256x1xf32>
    %c0_9 = arith.constant 0 : index
    %c0_10 = arith.constant 0 : index
    %12 = vector.load %arg4[%c0_9, %c0_10] : memref<512x256xf32, #tpu.memory_space<vmem>>, vector<512x256xf32>
    %cst_11 = arith.constant dense<0.000000e+00> : vector<512x1xf32>
    %13 = tpu.matmul %12, %11, %cst_11 {dimension_numbers = #tpu.dot_dimension_numbers<[1], [0], [0], [1], [0, 0, 1, 1], [], []>} : vector<512x256xf32>, vector<256x1xf32>, vector<512x1xf32> -> vector<512x1xf32>
    %c0_12 = arith.constant 0 : index
    %c0_13 = arith.constant 0 : index
    %14 = vector.load %arg5[%c0_12, %c0_13] : memref<512x1xf32, #tpu.memory_space<vmem>>, vector<512x1xf32>
    %15 = arith.addf %13, %14 : vector<512x1xf32>
    %16 = arith.negf %15 : vector<512x1xf32>
    %17 = math.exp %16 : vector<512x1xf32>
    %cst_14 = arith.constant 1.000000e+00 : f32
    %18 = vector.broadcast %cst_14 : f32 to vector<512x1xf32>
    %19 = arith.addf %18, %17 : vector<512x1xf32>
    %20 = arith.divf %18, %19 : vector<512x1xf32>
    %21 = vector.broadcast %20 : vector<512x1xf32> to vector<512x128xf32>
    %22 = arith.mulf %1, %21 : vector<512x128xf32>
    %c0_15 = arith.constant 0 : index
    %c0_16 = arith.constant 0 : index
    %c0_17 = arith.constant 0 : index
    %23 = vector.load %arg6[%c0_15, %c0_16, %c0_17] : memref<1x512x128xf32, #tpu.memory_space<vmem>>, vector<1x512x128xf32>
    %24 = vector.shape_cast %23 : vector<1x512x128xf32> to vector<512x128xf32>
    %25 = vector.shape_cast %22 : vector<512x128xf32> to vector<1x512x128xf32>
    tpu.vector_store %arg6[%c0_15, %c0_16, %c0_17], %25 {strides = array<i32>} : memref<1x512x128xf32, #tpu.memory_space<vmem>>, vector<1x512x128xf32>,
    return
  }
  func.func @transform_0(%arg0: i32) -> (i32, i32, i32) {
    %c0_i32 = arith.constant 0 : i32
    %c0_i32_0 = arith.constant 0 : i32
    %c0_i32_1 = arith.constant 0 : i32
    return %arg0, %c0_i32, %c0_i32_0 : i32, i32, i32
  }
  func.func @transform_1(%arg0: i32) -> (i32, i32) {
    %c0_i32 = arith.constant 0 : i32
    %c0_i32_0 = arith.constant 0 : i32
    %c0_i32_1 = arith.constant 0 : i32
    return %c0_i32, %c0_i32_0 : i32, i32
  }
  func.func @transform_2(%arg0: i32) -> (i32, i32) {
    %c0_i32 = arith.constant 0 : i32
    %c0_i32_0 = arith.constant 0 : i32
    %c0_i32_1 = arith.constant 0 : i32
    return %c0_i32, %c0_i32_0 : i32, i32
  }
  func.func @transform_3(%arg0: i32) -> (i32, i32) {
    %c0_i32 = arith.constant 0 : i32
    %c0_i32_0 = arith.constant 0 : i32
    %c0_i32_1 = arith.constant 0 : i32
    return %c0_i32, %c0_i32_0 : i32, i32
  }
  func.func @transform_4(%arg0: i32) -> (i32, i32) {
    %c0_i32 = arith.constant 0 : i32
    %c0_i32_0 = arith.constant 0 : i32
    %c0_i32_1 = arith.constant 0 : i32
    return %c0_i32, %c0_i32_0 : i32, i32
  }
  func.func @transform_5(%arg0: i32) -> (i32, i32, i32) {
    %c0_i32 = arith.constant 0 : i32
    %c0_i32_0 = arith.constant 0 : i32
    %c0_i32_1 = arith.constant 0 : i32
    return %arg0, %c0_i32, %c0_i32_0 : i32, i32, i32
  }
}

</mosaic_0001>

<bundles_post_ra>
// kernel: se_connect.1
= control target key start
LH: loop header
LB: loop body
LE: loop exit
PB: predicated region body
PF: predicated region fallthrough
CT: control target
= control target key end

     0   :  { %10 = vsyncpa [#allocation3], 0  ;;  %s4381_s0 = inlined_call_operand.hbm [shape: f32[2,512,128], index: 0, kind: input, shape index: {}]   ;;  %s4382_s1 = inlined_call_operand.hbm [shape: f32[256,512], index: 1, kind: input, shape index: {}]   ;;  %s4383_s2 = inlined_call_operand.vmem [shape: f32[256,1], index: 2, kind: input, shape index: {}]   ;;  %s4384_s3 = inlined_call_operand.hbm [shape: f32[512,256], index: 3, kind: input, shape index: {}]   ;;  %s4385_s4 = inlined_call_operand.vmem [shape: f32[512,1], index: 4, kind: input, shape index: {}]   ;;  %s4386_s5 = inlined_call_operand.hbm [shape: f32[2,512,128], index: 5, kind: output, shape index: {}]  }
   0x1   :  { %12 = vsyncpa [#allocation3 + $0x1], 0 }
   0x2   :  { %13 = vsyncpa [#allocation6], 0 }
   0x3   :  { %14 = vsyncpa [#allocation4], 0 }
   0x4   :  { %16 = vsyncpa [#allocation4 + $0x1], 0  ;;  %s3610_s18 = smov 0   ;;  %s3612_s19 = smov 0  }
   0x5   :  { %s3614_s20 = smov 0   ;;  %s3616_s21 = smov 0  }
   0x6 LB: > { %s3631_s22 = sadd.s32 4294967295, %s3564_s21   ;;  %s2685_s23 = sadd.s32 4294967294, %s3564_s21   ;;  %s3564_s21 = sphi %s3616_s21, %s4406_s21   ;;  %s3560_s20 = sphi %s3614_s20, %s4405_s20   ;;  %s3556_s19 = sphi %s3612_s19, %s4404_s19   ;;  %s3552_s18 = sphi %s3610_s18, %s4403_s18  }
   0x7   : > { %p42_p0 = scmp.ne.s32.totalorder %s3556_s19, %s3552_s18  ;;  %p4387_p1 = scmp.eq.s32.totalorder %s3631_s22, 0 }
   0x8   : > { %p156_p3 = scmp.eq.s32.totalorder %s2685_s23, 1  ;;  %p2686_p5 = scmp.ge.s32.totalorder %s3564_s21, 1 }
   0x9   : > { %p3640_p4 = por %p4387_p1, %p42_p0  ;;  %p163_p7 = scmp.lt.s32.totalorder %s3564_s21, 3 }
   0xa   : > { %p3645_p6 = por %p156_p3, %p42_p0  ;;  %s3566_s27 = smov [#allocation5]  }
   0xb   : > { %s4390_s24 = scalar_select %p3640_p4, 1, 0 }
   0xc   : > { %s4391_s25 = scalar_select %p3645_p6, 1, 0 }
   0xd   : > { %p3650_p8 = pnand %p2686_p5, %p163_p7  ;;  %s175_s28 = sshll.u32 %s3566_s27, 4  ;;  %s3654_s28 = int_to_ptr.vmem [resolvable:$true] %s175_s28 }
   0xe   : > { %s3567_s30 = smov [#allocation7]   ;;  %s3408_s9 = scalar_lea.hbm %s4382_s1, 16384 }
   0xf   : > { %p3021_p9 = pneg %p3650_p8  ;;  %s191_s6 = sshll.u32 %s3567_s30, 4  ;;  %s3665_s6 = int_to_ptr.vmem [resolvable:$true] %s191_s6 }
  0x10   : > { %p3409_p12 = scmp.ne.s32.totalorder %s4382_s1, %s3408_s9  ;;  %p3415_p5 = scmp.lt.u32.totalorder %s3408_s9, %s4382_s1 }
  0x11   : > { %p3661_p11 = pnand %p3021_p9, %p4387_p1 }
  0x13   : > { %p3410_p13 = pneg %p3661_p11 }
  0x15   : > { %p3411_p0 = pnand %p3410_p13, %p3409_p12 }
  0x17   : > { %p3412_p3 = pneg %p3411_p0 }
  0x19   : > { %p3417_p7 = pnand %p3415_p5, %p3412_p3 }
  0x1b   : > { %3420 = shalt.err (!%p3417_p7)
}
  0x1c   : > { %s3421_s14 = scalar_lea.vmem %s3654_s28, 16384  ;;  %p3429_p2 = scmp.lt.s32.totalorder %s3654_s28, %s3654_s28 }
  0x1d   : > { %p3422_p9 = scmp.ne.s32.totalorder %s3654_s28, %s3421_s14  ;;  %p3430_p12 = scmp.lt.s32.totalorder %s3421_s14, %s3421_s14 }
  0x1f   : > { %p3424_p10 = pnand %p3422_p9, %p3410_p13  ;;  %p3431_p0 = por %p3430_p12, %p3429_p2 }
  0x21   : > { %p3425_p1 = pneg %p3424_p10 }
  0x23   : > { %p3432_p6 = pnand %p3431_p0, %p3425_p1 }
  0x25   : > { %3435 = shalt.err (!%p3432_p6)
}
  0x26   : > { %s3568_s15 = smov 512   ;;  %s3569_s16 = smov 32  }
  0x27   : > { %3024 = dma.hbm_to_vmem [thread:$0]  (!%p3661_p11), %s4382_s1, 16384, %s3654_s28, [#allocation6], %s3568_s15, %s3568_s15, %s3569_s16  }
  0x28   : > { %s3436_s7 = scalar_lea.hbm %s4384_s3, 16384 }
  0x29   : > { %p3437_p2 = scmp.ne.s32.totalorder %s4384_s3, %s3436_s7  ;;  %p3443_p10 = scmp.lt.u32.totalorder %s3436_s7, %s4384_s3 }
  0x2b   : > { %p3439_p1 = pnand %p3437_p2, %p3410_p13 }
  0x2d   : > { %p3440_p6 = pneg %p3439_p1 }
  0x2f   : > { %p3445_p3 = pnand %p3443_p10, %p3440_p6 }
  0x31   : > { %3448 = shalt.err (!%p3445_p3)
}
  0x32   : > { %s3449_s28 = scalar_lea.vmem %s3665_s6, 16384  ;;  %p3457_p12 = scmp.lt.s32.totalorder %s3665_s6, %s3665_s6 }
  0x33   : > { %p3450_p5 = scmp.ne.s32.totalorder %s3665_s6, %s3449_s28  ;;  %p3458_p0 = scmp.lt.s32.totalorder %s3449_s28, %s3449_s28 }
  0x35   : > { %p3452_p7 = pnand %p3450_p5, %p3410_p13  ;;  %p3459_p2 = por %p3458_p0, %p3457_p12 }
  0x37   : > { %p3453_p9 = pneg %p3452_p7 }
  0x39   : > { %p3460_p1 = pnand %p3459_p2, %p3453_p9 }
  0x3b   : > { %3463 = shalt.err (!%p3460_p1)
}
  0x3c   : > { %s3570_s12 = smov 256   ;;  %s3571_s13 = smov 16  }
  0x3d   : > { %3027 = dma.hbm_to_vmem [thread:$0]  (!%p3661_p11), %s4384_s3, 16384, %s3665_s6, [#allocation6], %s3570_s12, %s3570_s12, %s3571_s13  }
  0x3e   : > { %s3720_s16 = sadd.s32 1, %s3564_s21   ;;  %s29_s23 = sadd.s32 1, %s3560_s20 }
  0x3f   : > { %s26_s17 = ssub.s32 %s3564_s21, %s3720_s16  ;;  %p36_p6 = scmp.ne.s32.totalorder %s3560_s20, %s3556_s19 }
  0x40   : > { %p27_p13 = scmp.eq.s32.totalorder %s26_s17, 0  ;;  %p37_p10 = scmp.eq.s32.totalorder %s3564_s21, 0 }
  0x41   : > { %p4394_p5 = scmp.eq.s32.totalorder %s3631_s22, 1  ;;  %p3038_p9 = scmp.lt.s32.totalorder %s3564_s21, 2 }
  0x42   : > { %s3729_s27 = scalar_select %p27_p13, %s3560_s20, %s29_s23  }
  0x43   : > { %p38_p3 = por %p37_p10, %p36_p6  ;;  %p3733_p7 = por %p4394_p5, %p36_p6 }
  0x44   : > { %s208_s29 = sand.u32 1, %s3560_s20   ;;  %s2767_s6 = sshll.u32 %s3564_s21, 13 }
  0x45   : > { %s4395_s30 = scalar_select %p3733_p7, 1, 0 }
  0x46   : > { %s2690_s7 = sshll.u32 %s208_s29, 9  ;;  %s3743_s10 = scalar_lea.hbm %s4381_s0, %s2767_s6 }
  0x47   : > { %s212_s11 = scalar_lea.vmem [#allocation2], %s2690_s7  ;;  %p3747_p11 = pnand %p3038_p9, %p38_p3 }
  0x48   : > { %s219_s28 = sshll.u32 %s212_s11, 4  ;;  %s3751_s13 = scalar_lea.sflag [#allocation3], %s208_s29  ;;  %s3745_s28 = int_to_ptr.vmem [resolvable:$true] %s219_s28 }
  0x49   : > { %s3464_s14 = scalar_lea.hbm %s3743_s10, 8192  ;;  %p3466_p0 = pneg %p3747_p11 }
  0x4a   : > { %p3465_p12 = scmp.ne.s32.totalorder %s3743_s10, %s3464_s14  ;;  %s3469_s23 = scalar_lea.hbm %s4381_s0, 16384 }
  0x4b   : > { %p3470_p13 = scmp.lt.u32.totalorder %s3743_s10, %s4381_s0  ;;  %p3471_p6 = scmp.lt.u32.totalorder %s3469_s23, %s3464_s14 }
  0x4c   : > { %p3467_p2 = pnand %p3466_p0, %p3465_p12  ;;  %p3473_p3 = scmp.lt.u32.totalorder %s3464_s14, %s3743_s10 }
  0x4d   : > { %p3472_p10 = por %p3471_p6, %p3470_p13 }
  0x4e   : > { %p3468_p1 = pneg %p3467_p2 }
  0x4f   : > { %p3474_p5 = por %p3473_p3, %p3472_p10 }
  0x51   : > { %p3475_p9 = pnand %p3474_p5, %p3468_p1 }
  0x53   : > { %3478 = shalt.err (!%p3475_p9)
}
  0x54   : > { %s3479_s29 = scalar_lea.vmem %s3745_s28, 8192  ;;  %s3572_s8 = smov [#allocation2]  }
  0x55   : > { %p3480_p12 = scmp.ne.s32.totalorder %s3745_s28, %s3479_s29  ;;  %s3484_s9 = sshll.u32 %s3572_s8, 4  ;;  %s3485_s9 = int_to_ptr.vmem [resolvable:$false] %s3484_s9 }
  0x56   : > { %s3486_s11 = scalar_lea.vmem %s3485_s9, 16384  ;;  %p3487_p4 = scmp.lt.s32.totalorder %s3745_s28, %s3485_s9 }
  0x57   : > { %p3482_p2 = pnand %p3480_p12, %p3466_p0  ;;  %p3488_p13 = scmp.lt.s32.totalorder %s3486_s11, %s3479_s29 }
  0x59   : > { %p3483_p7 = pneg %p3482_p2  ;;  %p3489_p6 = por %p3488_p13, %p3487_p4 }
  0x5b   : > { %p3490_p10 = pnand %p3489_p6, %p3483_p7 }
  0x5d   : > { %3493 = shalt.err (!%p3490_p10)
}
  0x5e   : > { %s3573_s14 = smov 128   ;;  %s3574_s15 = smov 8  }
  0x5f   : > { %3031 = dma.hbm_to_vmem [thread:$0]  (!%p3747_p11), %s3743_s10, 8192, %s3745_s28, %s3751_s13, %s3573_s14, %s3573_s14, %s3574_s15  }
  0x60   : > { %231 = sbr.rel (%p3650_p8) target bundleno = 1431 (0x597), region = 40  ;;  %s3782_s17 = sand.u32 (!%p3650_p8), 1, %s3556_s19  }
  0x61   : > { %s2694_s23 = sshll.u32 (!%p3650_p8), %s3782_s17, 9  ;;  %s234_s7 = scalar_lea.sflag (!%p3650_p8), [#allocation3], %s3782_s17 }
  0x62   : > { %s3788_s6 = scalar_lea.vmem (!%p3650_p8), [#allocation2], %s2694_s23  ;;  %p4397_p4 = scmp.ne.s32.totalorder (!%p3650_p8), %s4390_s24, 0 }
  0x67   : > { %3539 = dma.done.wait (%p4397_p4), %s234_s7, 8192  }
  0x68   : > { %3541 = vsyncadd (%p4397_p4), %s234_s7, 4294959104  ;;  %p4398_p7 = scmp.eq.s32.totalorder %s3631_s22, 0 }
  0x6a   : > { %3543 = dma.done.wait (%p4398_p7), [#allocation6], 32768   ;;  %p4399_p8 = pmov %p4398_p7 }
  0x6b   : > { %v274_v0 = vld [vmem:[%s3788_s6 + $0x10] sm:$0xff]  ;;  %v272_v1 = vld [vmem:[%s3788_s6] sm:$0xff]  ;;  %v275_v2 = vld [vmem:[%s3788_s6 + $0x18] sm:$0xff]  ;;  %v3575_v14 = vmov 0.0|0.0   ;;  %s4132_s28 = scalar_lea.vmem [#allocation8], %s2694_s23  ;;  %s2768_s14 = sshll.u32 %s3631_s22, 13 }
  0x6c   : > { %3545 = vsyncadd (%p4399_p8), [#allocation6], 4294934528  ;;  %340 = vadd.xlane.f32.xlu1 %v274_v0  ;;  %336 = vadd.xlane.f32.xlu0 %v272_v1  ;;  %v273_v3 = vld [vmem:[%s3788_s6 + $0x8] sm:$0xff]  ;;  %v276_v5 = vld [vmem:[%s3788_s6 + $0x20] sm:$0xff]  ;;  %s2593_s15 = sshll.u32 %s4132_s28, 4  ;;  %s4333_s26 = scalar_lea.hbm %s4386_s5, %s2768_s14  ;;  %s4335_s15 = int_to_ptr.vmem [resolvable:$true] %s2593_s15 }
  0x6d   : > { %v277_v4 = vld [vmem:[%s3788_s6 + $0x28] sm:$0xff]  ;;  %v279_v6 = vld [vmem:[%s3788_s6 + $0x38] sm:$0xff]  ;;  %v278_v7 = vld [vmem:[%s3788_s6 + $0x30] sm:$0xff]  ;;  %2769 = vmatprep.subr.bf16.mxu0 %v3575_v14  ;;  %2865 = vmatprep.subr.bf16.mxu1 %v3575_v14  ;;  %s2580_s10 = scalar_lea.sflag [#allocation4], %s3782_s17  ;;  %s3494_s12 = scalar_lea.vmem %s4335_s15, 8192 }
  0x6e   : > { %v281_v8 = vld [vmem:[%s3788_s6 + $0x48] sm:$0xff]  ;;  %v280_v9 = vld [vmem:[%s3788_s6 + $0x40] sm:$0xff]  ;;  %v283_v10 = vld [vmem:[%s3788_s6 + $0x58] sm:$0xff]  ;;  %p3495_p11 = scmp.ne.s32.totalorder %s4335_s15, %s3494_s12  ;;  %p4400_p0 = scmp.ne.s32.totalorder %s4395_s30, 0 }
  0x6f   : > { %v282_v11 = vld [vmem:[%s3788_s6 + $0x50] sm:$0xff]  ;;  %v285_v12 = vld [vmem:[%s3788_s6 + $0x68] sm:$0xff]  ;;  %v284_v13 = vld [vmem:[%s3788_s6 + $0x60] sm:$0xff]  ;;  %s3577_s22 = smov [#allocation8]  }
  0x70   : > { %342 = vadd.xlane.f32.xlu1 %v275_v2  ;;  %338 = vadd.xlane.f32.xlu0 %v273_v3  ;;  %v287_v15 = vld [vmem:[%s3788_s6 + $0x78] sm:$0xff]  ;;  %v286_v16 = vld [vmem:[%s3788_s6 + $0x70] sm:$0xff]  ;;  %v289_v17 = vld [vmem:[%s3788_s6 + $0x88] sm:$0xff]  ;;  %p3496_p1 = pnand %p3495_p11, %p4400_p0  ;;  %s3498_s13 = sshll.u32 %s3577_s22, 4  ;;  %s3499_s13 = int_to_ptr.vmem [resolvable:$false] %s3498_s13 }
  0x71   : > { %v288_v18 = vld [vmem:[%s3788_s6 + $0x80] sm:$0xff]  ;;  %v291_v19 = vld [vmem:[%s3788_s6 + $0x98] sm:$0xff]  ;;  %v290_v20 = vld [vmem:[%s3788_s6 + $0x90] sm:$0xff]  ;;  %s3500_s23 = scalar_lea.vmem %s3499_s13, 16384  ;;  %p3501_p5 = scmp.lt.s32.totalorder %s4335_s15, %s3499_s13 }
  0x72   : > { %v293_v21 = vld [vmem:[%s3788_s6 + $0xa8] sm:$0xff]  ;;  %v292_v22 = vld [vmem:[%s3788_s6 + $0xa0] sm:$0xff]  ;;  %v295_v23 = vld [vmem:[%s3788_s6 + $0xb8] sm:$0xff]  ;;  %p3497_p3 = pneg %p3496_p1  ;;  %p3502_p9 = scmp.lt.s32.totalorder %s3500_s23, %s3494_s12 }
  0x73   : > { %v294_v24 = vld [vmem:[%s3788_s6 + $0xb0] sm:$0xff]  ;;  %v297_v25 = vld [vmem:[%s3788_s6 + $0xc8] sm:$0xff]  ;;  %v296_v26 = vld [vmem:[%s3788_s6 + $0xc0] sm:$0xff] }
  0x74   : > { %346 = vadd.xlane.f32.xlu1 %v277_v4  ;;  %344 = vadd.xlane.f32.xlu0 %v276_v5  ;;  %v299_v27 = vld [vmem:[%s3788_s6 + $0xd8] sm:$0xff]  ;;  %v298_v28 = vld [vmem:[%s3788_s6 + $0xd0] sm:$0xff]  ;;  %v301_v29 = vld [vmem:[%s3788_s6 + $0xe8] sm:$0xff]  ;;  %p3503_p12 = por %p3502_p9, %p3501_p5 }
  0x75   : > { %v300_v30 = vld [vmem:[%s3788_s6 + $0xe0] sm:$0xff]  ;;  %v303_v31 = vld [vmem:[%s3788_s6 + $0xf8] sm:$0xff]  ;;  %v302_v32 = vld [vmem:[%s3788_s6 + $0xf0] sm:$0xff] }
  0x76   : > { %v305_v33 = vld [vmem:[%s3788_s6 + $0x108] sm:$0xff]  ;;  %v304_v34 = vld [vmem:[%s3788_s6 + $0x100] sm:$0xff]  ;;  %v307_v35 = vld [vmem:[%s3788_s6 + $0x118] sm:$0xff]  ;;  %p3504_p2 = pnand %p3503_p12, %p3497_p3 }
  0x77   : > { %v306_v36 = vld [vmem:[%s3788_s6 + $0x110] sm:$0xff]  ;;  %v309_v37 = vld [vmem:[%s3788_s6 + $0x128] sm:$0xff]  ;;  %v308_v38 = vld [vmem:[%s3788_s6 + $0x120] sm:$0xff] }
  0x78   : > { %350 = vadd.xlane.f32.xlu1 %v279_v6  ;;  %348 = vadd.xlane.f32.xlu0 %v278_v7  ;;  %v311_v39 = vld [vmem:[%s3788_s6 + $0x138] sm:$0xff]  ;;  %v310_v40 = vld [vmem:[%s3788_s6 + $0x130] sm:$0xff]  ;;  %v313_v41 = vld [vmem:[%s3788_s6 + $0x148] sm:$0xff] }
  0x79   : > { %v312_v42 = vld [vmem:[%s3788_s6 + $0x140] sm:$0xff]  ;;  %v315_v43 = vld [vmem:[%s3788_s6 + $0x158] sm:$0xff]  ;;  %v314_v44 = vld [vmem:[%s3788_s6 + $0x150] sm:$0xff] }
  0x7a   : > { %v529_v45 = vld [vmem:[#allocation5 + $0x8] sm:$0xff]  ;;  %v316_v47 = vld [vmem:[%s3788_s6 + $0x160] sm:$0xff]  ;;  %v319_v48 = vld [vmem:[%s3788_s6 + $0x178] sm:$0xff] }
  0x7b   : > { %752 = vmatprep.mubr.f32.mxu0 %v529_v45  ;;  %v317_v46 = vld [vmem:[%s3788_s6 + $0x168] sm:$0xff]  ;;  %v318_v49 = vld [vmem:[%s3788_s6 + $0x170] sm:$0xff]  ;;  %v320_v51 = vld [vmem:[%s3788_s6 + $0x180] sm:$0xff] }
  0x7c   : > { %354 = vadd.xlane.f32.xlu1 %v281_v8  ;;  %352 = vadd.xlane.f32.xlu0 %v280_v9  ;;  %v321_v50 = vld [vmem:[%s3788_s6 + $0x188] sm:$0xff]  ;;  %v323_v52 = vld [vmem:[%s3788_s6 + $0x198] sm:$0xff]  ;;  %v322_v53 = vld [vmem:[%s3788_s6 + $0x190] sm:$0xff] }
  0x7d   : > { %v325_v54 = vld [vmem:[%s3788_s6 + $0x1a8] sm:$0xff]  ;;  %v324_v55 = vld [vmem:[%s3788_s6 + $0x1a0] sm:$0xff]  ;;  %v327_v56 = vld [vmem:[%s3788_s6 + $0x1b8] sm:$0xff] }
  0x7e   : > { %v326_v57 = vld [vmem:[%s3788_s6 + $0x1b0] sm:$0xff]  ;;  %v329_v58 = vld [vmem:[%s3788_s6 + $0x1c8] sm:$0xff]  ;;  %v328_v59 = vld [vmem:[%s3788_s6 + $0x1c0] sm:$0xff] }
  0x7f   : > { %v331_v60 = vld [vmem:[%s3788_s6 + $0x1d8] sm:$0xff]  ;;  %v330_v61 = vld [vmem:[%s3788_s6 + $0x1d0] sm:$0xff]  ;;  %v333_v62 = vld [vmem:[%s3788_s6 + $0x1e8] sm:$0xff] }
  0x80   : > { %358 = vadd.xlane.f32.xlu1 %v283_v10  ;;  %356 = vadd.xlane.f32.xlu0 %v282_v11  ;;  %v332_v63 = vld [vmem:[%s3788_s6 + $0x1e0] sm:$0xff]  ;;  %v335_v0 = vld [vmem:[%s3788_s6 + $0x1f8] sm:$0xff]  ;;  %v334_v1 = vld [vmem:[%s3788_s6 + $0x1f0] sm:$0xff] }
  0x84   : > { %362 = vadd.xlane.f32.xlu1 %v285_v12  ;;  %360 = vadd.xlane.f32.xlu0 %v284_v13 }
  0x88   : > { %366 = vadd.xlane.f32.xlu1 %v287_v15  ;;  %364 = vadd.xlane.f32.xlu0 %v286_v16 }
  0x8c   : > { %370 = vadd.xlane.f32.xlu1 %v289_v17  ;;  %368 = vadd.xlane.f32.xlu0 %v288_v18 }
  0x90   : > { %374 = vadd.xlane.f32.xlu1 %v291_v19  ;;  %372 = vadd.xlane.f32.xlu0 %v290_v20 }
  0x94   : > { %378 = vadd.xlane.f32.xlu1 %v293_v21  ;;  %376 = vadd.xlane.f32.xlu0 %v292_v22 }
  0x98   : > { %382 = vadd.xlane.f32.xlu1 %v295_v23  ;;  %380 = vadd.xlane.f32.xlu0 %v294_v24 }
  0x9c   : > { %386 = vadd.xlane.f32.xlu1 %v297_v25  ;;  %384 = vadd.xlane.f32.xlu0 %v296_v26 }
  0xa0   : > { %390 = vadd.xlane.f32.xlu1 %v299_v27  ;;  %388 = vadd.xlane.f32.xlu0 %v298_v28 }
  0xa4   : > { %394 = vadd.xlane.f32.xlu1 %v301_v29  ;;  %392 = vadd.xlane.f32.xlu0 %v300_v30 }
  0xa8   : > { %398 = vadd.xlane.f32.xlu1 %v303_v31  ;;  %396 = vadd.xlane.f32.xlu0 %v302_v32 }
  0xac   : > { %402 = vadd.xlane.f32.xlu1 %v305_v33  ;;  %400 = vadd.xlane.f32.xlu0 %v304_v34 }
  0xb0   : > { %406 = vadd.xlane.f32.xlu1 %v307_v35  ;;  %404 = vadd.xlane.f32.xlu0 %v306_v36 }
  0xb4   : > { %410 = vadd.xlane.f32.xlu1 %v309_v37  ;;  %408 = vadd.xlane.f32.xlu0 %v308_v38 }
  0xb8   : > { %414 = vadd.xlane.f32.xlu1 %v311_v39  ;;  %412 = vadd.xlane.f32.xlu0 %v310_v40 }
  0xbc   : > { %418 = vadd.xlane.f32.xlu1 %v313_v41  ;;  %416 = vadd.xlane.f32.xlu0 %v312_v42 }
  0xc0   : > { %422 = vadd.xlane.f32.xlu1 %v315_v43  ;;  %420 = vadd.xlane.f32.xlu0 %v314_v44 }
  0xc4   : > { %426 = vadd.xlane.f32.xlu1 %v317_v46  ;;  %424 = vadd.xlane.f32.xlu0 %v316_v47 }
  0xc8   : > { %430 = vadd.xlane.f32.xlu1 %v319_v48  ;;  %428 = vadd.xlane.f32.xlu0 %v318_v49 }
  0xcc   : > { %434 = vadd.xlane.f32.xlu1 %v321_v50  ;;  %432 = vadd.xlane.f32.xlu0 %v320_v51 }
  0xd0   : > { %438 = vadd.xlane.f32.xlu1 %v323_v52  ;;  %436 = vadd.xlane.f32.xlu0 %v322_v53 }
  0xd4   : > { %442 = vadd.xlane.f32.xlu1 %v325_v54  ;;  %440 = vadd.xlane.f32.xlu0 %v324_v55 }
  0xd8   : > { %446 = vadd.xlane.f32.xlu1 %v327_v56  ;;  %444 = vadd.xlane.f32.xlu0 %v326_v57 }
  0xdc   : > { %450 = vadd.xlane.f32.xlu1 %v329_v58  ;;  %448 = vadd.xlane.f32.xlu0 %v328_v59 }
  0xe0   : > { %454 = vadd.xlane.f32.xlu1 %v331_v60  ;;  %452 = vadd.xlane.f32.xlu0 %v330_v61 }
  0xe4   : > { %458 = vadd.xlane.f32.xlu1 %v333_v62  ;;  %456 = vadd.xlane.f32.xlu0 %v332_v63 }
  0xe8   : > { %462 = vadd.xlane.f32.xlu1 %v335_v0  ;;  %460 = vadd.xlane.f32.xlu0 %v334_v1 }
  0xf9   : > { %v341_v2 = vpop.xlane.xlu1 %340  ;;  %v337_v3 = vpop.xlane.xlu0 %336 }
  0xfa   : > { %v464_v6 = vmul.f32 0.0078125, %v337_v3  ;;  %v466_v8 = vmul.f32 0.0078125, %v341_v2 }
  0xfd   : > { %v343_v4 = vpop.xlane.xlu1 %342  ;;  %v339_v5 = vpop.xlane.xlu0 %338 }
  0xfe   : > { %v465_v7 = vmul.f32 0.0078125, %v339_v5  ;;  %v467_v9 = vmul.f32 0.0078125, %v343_v4 }
 0x100   : > { %v2770_v10 = vpack.c.bf16 %v465_v7, %v464_v6  ;;  %v2773_v16 = vpack.c.bf16 %v467_v9, %v466_v8 }
 0x101   : > { %v347_v11 = vpop.xlane.xlu1 %346  ;;  %v345_v12 = vpop.xlane.xlu0 %344 }
 0x102   : > { %2771 = vmatpush1.bf16.msra.mxu0 %v2770_v10  ;;  %v469_v13 = vmul.f32 0.0078125, %v347_v11  ;;  %v468_v15 = vmul.f32 0.0078125, %v345_v12 }
 0x103   : > { %2772 = vmatprep.subr.bf16.mxu0 %v3575_v14 }
 0x104   : > { %v2776_v19 = vpack.c.bf16 %v469_v13, %v468_v15 }
 0x105   : > { %v351_v17 = vpop.xlane.xlu1 %350  ;;  %v349_v18 = vpop.xlane.xlu0 %348 }
 0x106   : > { %2774 = vmatpush1.bf16.msra.mxu0 %v2773_v16  ;;  %v471_v20 = vmul.f32 0.0078125, %v351_v17  ;;  %v470_v21 = vmul.f32 0.0078125, %v349_v18 }
 0x107   : > { %2775 = vmatprep.subr.bf16.mxu0 %v3575_v14 }
 0x108   : > { %v2779_v24 = vpack.c.bf16 %v471_v20, %v470_v21 }
 0x109   : > { %v355_v22 = vpop.xlane.xlu1 %354  ;;  %v353_v23 = vpop.xlane.xlu0 %352 }
 0x10a   : > { %2777 = vmatpush1.bf16.msra.mxu0 %v2776_v19  ;;  %v473_v25 = vmul.f32 0.0078125, %v355_v22  ;;  %v472_v26 = vmul.f32 0.0078125, %v353_v23 }
 0x10b   : > { %2778 = vmatprep.subr.bf16.mxu0 %v3575_v14 }
 0x10c   : > { %v2782_v29 = vpack.c.bf16 %v473_v25, %v472_v26 }
 0x10d   : > { %v359_v27 = vpop.xlane.xlu1 %358  ;;  %v357_v28 = vpop.xlane.xlu0 %356 }
 0x10e   : > { %2780 = vmatpush1.bf16.msra.mxu0 %v2779_v24  ;;  %v475_v30 = vmul.f32 0.0078125, %v359_v27  ;;  %v474_v31 = vmul.f32 0.0078125, %v357_v28  ;;  %v528_v27 = vld [vmem:[#allocation5] sm:$0xff] }
 0x10f   : > { %2781 = vmatprep.subr.bf16.mxu0 %v3575_v14 }
 0x110   : > { %v2785_v34 = vpack.c.bf16 %v475_v30, %v474_v31  ;;  %v533_v30 = vld [vmem:[#allocation5 + $0x28] sm:$0xff] }
 0x111   : > { %v363_v32 = vpop.xlane.xlu1 %362  ;;  %v361_v33 = vpop.xlane.xlu0 %360 }
 0x112   : > { %2783 = vmatpush1.bf16.msra.mxu0 %v2782_v29  ;;  %v477_v35 = vmul.f32 0.0078125, %v363_v32  ;;  %v476_v36 = vmul.f32 0.0078125, %v361_v33  ;;  %v532_v33 = vld [vmem:[#allocation5 + $0x20] sm:$0xff] }
 0x113   : > { %2784 = vmatprep.subr.bf16.mxu0 %v3575_v14 }
 0x114   : > { %v2788_v39 = vpack.c.bf16 %v477_v35, %v476_v36 }
 0x115   : > { %v367_v37 = vpop.xlane.xlu1 %366  ;;  %v365_v38 = vpop.xlane.xlu0 %364 }
 0x116   : > { %2786 = vmatpush1.bf16.msra.mxu0 %v2785_v34  ;;  %v479_v40 = vmul.f32 0.0078125, %v367_v37  ;;  %v478_v41 = vmul.f32 0.0078125, %v365_v38  ;;  %v537_v37 = vld [vmem:[#allocation5 + $0x48] sm:$0xff] }
 0x117   : > { %2787 = vmatprep.subr.bf16.mxu0 %v3575_v14 }
 0x118   : > { %v2791_v44 = vpack.c.bf16 %v479_v40, %v478_v41  ;;  %v536_v40 = vld [vmem:[#allocation5 + $0x40] sm:$0xff] }
 0x119   : > { %v371_v42 = vpop.xlane.xlu1 %370  ;;  %v369_v43 = vpop.xlane.xlu0 %368 }
 0x11a   : > { %2789 = vmatpush1.bf16.msra.mxu0 %v2788_v39  ;;  %v481_v45 = vmul.f32 0.0078125, %v371_v42  ;;  %v480_v46 = vmul.f32 0.0078125, %v369_v43 }
 0x11b   : > { %2790 = vmatprep.subr.bf16.mxu0 %v3575_v14 }
 0x11c   : > { %v2794_v49 = vpack.c.bf16 %v481_v45, %v480_v46 }
 0x11d   : > { %v375_v47 = vpop.xlane.xlu1 %374  ;;  %v373_v48 = vpop.xlane.xlu0 %372 }
 0x11e   : > { %2792 = vmatpush1.bf16.msra.mxu0 %v2791_v44  ;;  %v483_v50 = vmul.f32 0.0078125, %v375_v47  ;;  %v482_v51 = vmul.f32 0.0078125, %v373_v48  ;;  %v541_v44 = vld [vmem:[#allocation5 + $0x68] sm:$0xff]  ;;  %v540_v47 = vld [vmem:[#allocation5 + $0x60] sm:$0xff] }
 0x11f   : > { %2793 = vmatprep.subr.bf16.mxu0 %v3575_v14 }
 0x120   : > { %v2797_v54 = vpack.c.bf16 %v483_v50, %v482_v51  ;;  %v545_v51 = vld [vmem:[#allocation5 + $0x88] sm:$0xff] }
 0x121   : > { %v379_v52 = vpop.xlane.xlu1 %378  ;;  %v377_v53 = vpop.xlane.xlu0 %376 }
 0x122   : > { %2795 = vmatpush1.bf16.msra.mxu0 %v2794_v49  ;;  %v485_v55 = vmul.f32 0.0078125, %v379_v52  ;;  %v484_v56 = vmul.f32 0.0078125, %v377_v53 }
 0x123   : > { %2796 = vmatprep.subr.bf16.mxu0 %v3575_v14 }
 0x124   : > { %v2800_v59 = vpack.c.bf16 %v485_v55, %v484_v56 }
 0x125   : > { %v383_v57 = vpop.xlane.xlu1 %382  ;;  %v381_v58 = vpop.xlane.xlu0 %380 }
 0x126   : > { %2798 = vmatpush1.bf16.msra.mxu0 %v2797_v54  ;;  %v487_v60 = vmul.f32 0.0078125, %v383_v57  ;;  %v486_v61 = vmul.f32 0.0078125, %v381_v58  ;;  %v544_v54 = vld [vmem:[#allocation5 + $0x80] sm:$0xff]  ;;  %v549_v58 = vld [vmem:[#allocation5 + $0xa8] sm:$0xff] }
 0x127   : > { %2799 = vmatprep.subr.bf16.mxu0 %v3575_v14 }
 0x128   : > { %v2803_v0 = vpack.c.bf16 %v487_v60, %v486_v61  ;;  %v548_v61 = vld [vmem:[#allocation5 + $0xa0] sm:$0xff] }
 0x129   : > { %v387_v62 = vpop.xlane.xlu1 %386  ;;  %v385_v63 = vpop.xlane.xlu0 %384 }
 0x12a   : > { %2801 = vmatpush1.bf16.msra.mxu0 %v2800_v59  ;;  %v489_v1 = vmul.f32 0.0078125, %v387_v62  ;;  %v488_v2 = vmul.f32 0.0078125, %v385_v63 }
 0x12b   : > { %2802 = vmatprep.subr.bf16.mxu0 %v3575_v14 }
 0x12c   : > { %v2806_v5 = vpack.c.bf16 %v489_v1, %v488_v2  ;;  %v553_v1 = vld [vmem:[#allocation5 + $0xc8] sm:$0xff] }
 0x12d   : > { %v391_v3 = vpop.xlane.xlu1 %390  ;;  %v389_v4 = vpop.xlane.xlu0 %388 }
 0x12e   : > { %2804 = vmatpush1.bf16.msra.mxu0 %v2803_v0  ;;  %v491_v6 = vmul.f32 0.0078125, %v391_v3  ;;  %v490_v7 = vmul.f32 0.0078125, %v389_v4  ;;  %v552_v4 = vld [vmem:[#allocation5 + $0xc0] sm:$0xff] }
 0x12f   : > { %2805 = vmatprep.subr.bf16.mxu0 %v3575_v14 }
 0x130   : > { %v2809_v10 = vpack.c.bf16 %v491_v6, %v490_v7 }
 0x131   : > { %v395_v8 = vpop.xlane.xlu1 %394  ;;  %v393_v9 = vpop.xlane.xlu0 %392 }
 0x132   : > { %2807 = vmatpush1.bf16.msra.mxu0 %v2806_v5  ;;  %v493_v11 = vmul.f32 0.0078125, %v395_v8  ;;  %v492_v12 = vmul.f32 0.0078125, %v393_v9  ;;  %v557_v8 = vld [vmem:[#allocation5 + $0xe8] sm:$0xff] }
 0x133   : > { %2808 = vmatprep.subr.bf16.mxu0 %v3575_v14 }
 0x134   : > { %v2812_v16 = vpack.c.bf16 %v493_v11, %v492_v12  ;;  %v556_v11 = vld [vmem:[#allocation5 + $0xe0] sm:$0xff] }
 0x135   : > { %v399_v13 = vpop.xlane.xlu1 %398  ;;  %v397_v15 = vpop.xlane.xlu0 %396 }
 0x136   : > { %2810 = vmatpush1.bf16.msra.mxu0 %v2809_v10  ;;  %v495_v17 = vmul.f32 0.0078125, %v399_v13  ;;  %v494_v18 = vmul.f32 0.0078125, %v397_v15 }
 0x137   : > { %2811 = vmatprep.subr.bf16.mxu0 %v3575_v14 }
 0x138   : > { %v2815_v21 = vpack.c.bf16 %v495_v17, %v494_v18 }
 0x139   : > { %v403_v19 = vpop.xlane.xlu1 %402  ;;  %v401_v20 = vpop.xlane.xlu0 %400 }
 0x13a   : > { %2813 = vmatpush1.bf16.msra.mxu0 %v2812_v16  ;;  %v497_v22 = vmul.f32 0.0078125, %v403_v19  ;;  %v496_v23 = vmul.f32 0.0078125, %v401_v20  ;;  %v561_v16 = vld [vmem:[#allocation5 + $0x108] sm:$0xff]  ;;  %v560_v19 = vld [vmem:[#allocation5 + $0x100] sm:$0xff] }
 0x13b   : > { %2814 = vmatprep.subr.bf16.mxu0 %v3575_v14 }
 0x13c   : > { %v2818_v26 = vpack.c.bf16 %v497_v22, %v496_v23  ;;  %v565_v23 = vld [vmem:[#allocation5 + $0x128] sm:$0xff] }
 0x13d   : > { %v407_v24 = vpop.xlane.xlu1 %406  ;;  %v405_v25 = vpop.xlane.xlu0 %404 }
 0x13e   : > { %2816 = vmatpush1.bf16.msra.mxu0 %v2815_v21  ;;  %v499_v28 = vmul.f32 0.0078125, %v407_v24  ;;  %v498_v29 = vmul.f32 0.0078125, %v405_v25 }
 0x13f   : > { %2817 = vmatprep.subr.bf16.mxu0 %v3575_v14 }
 0x140   : > { %v2821_v34 = vpack.c.bf16 %v499_v28, %v498_v29 }
 0x141   : > { %753 = vmatmul.mubr.f32.vlgmr.msra.gmra.mrb[0].mxu0 %v528_v27  ;;  %v411_v31 = vpop.xlane.xlu1 %410  ;;  %v409_v32 = vpop.xlane.xlu0 %408 }
 0x142   : > { %2819 = vmatpush1.bf16.msra.mxu0 %v2818_v26  ;;  %757 = vmatprep.mubr.f32.mxu0 %v533_v30  ;;  %v501_v35 = vmul.f32 0.0078125, %v411_v31  ;;  %v500_v36 = vmul.f32 0.0078125, %v409_v32  ;;  %v564_v26 = vld [vmem:[#allocation5 + $0x120] sm:$0xff]  ;;  %v569_v30 = vld [vmem:[#allocation5 + $0x148] sm:$0xff] }
 0x143   : > { %2820 = vmatprep.subr.bf16.mxu0 %v3575_v14 }
 0x144   : > { %v2824_v41 = vpack.c.bf16 %v501_v35, %v500_v36 }
 0x145   : > { %758 = vmatmul.mubr.f32.gmra.mrb[2].mxu0 %v532_v33  ;;  %v415_v38 = vpop.xlane.xlu1 %414  ;;  %v413_v39 = vpop.xlane.xlu0 %412  ;;  %v568_v33 = vld [vmem:[#allocation5 + $0x140] sm:$0xff] }
 0x146   : > { %762 = vmatprep.mubr.f32.mxu0 %v537_v37  ;;  %2822 = vmatpush1.bf16.msra.mxu0 %v2821_v34  ;;  %v503_v42 = vmul.f32 0.0078125, %v415_v38  ;;  %v502_v43 = vmul.f32 0.0078125, %v413_v39  ;;  %v573_v37 = vld [vmem:[#allocation5 + $0x168] sm:$0xff] }
 0x147   : > { %2823 = vmatprep.subr.bf16.mxu0 %v3575_v14 }
 0x148   : > { %v2827_v48 = vpack.c.bf16 %v503_v42, %v502_v43 }
 0x149   : > { %763 = vmatmul.mubr.f32.gmra.mrb[4].mxu0 %v536_v40  ;;  %v419_v45 = vpop.xlane.xlu1 %418  ;;  %v417_v46 = vpop.xlane.xlu0 %416  ;;  %v572_v40 = vld [vmem:[#allocation5 + $0x160] sm:$0xff] }
 0x14a   : > { %767 = vmatprep.mubr.f32.mxu0 %v541_v44  ;;  %2825 = vmatpush1.bf16.msra.mxu0 %v2824_v41  ;;  %v505_v49 = vmul.f32 0.0078125, %v419_v45  ;;  %v504_v50 = vmul.f32 0.0078125, %v417_v46  ;;  %v577_v44 = vld [vmem:[#allocation5 + $0x188] sm:$0xff] }
 0x14b   : > { %2826 = vmatprep.subr.bf16.mxu0 %v3575_v14 }
 0x14c   : > { %v2830_v55 = vpack.c.bf16 %v505_v49, %v504_v50 }
 0x14d   : > { %768 = vmatmul.mubr.f32.gmra.mrb[6].mxu0 %v540_v47  ;;  %v423_v52 = vpop.xlane.xlu1 %422  ;;  %v421_v53 = vpop.xlane.xlu0 %420  ;;  %v576_v47 = vld [vmem:[#allocation5 + $0x180] sm:$0xff] }
 0x14e   : > { %772 = vmatprep.mubr.f32.mxu0 %v545_v51  ;;  %2828 = vmatpush1.bf16.msra.mxu0 %v2827_v48  ;;  %v507_v56 = vmul.f32 0.0078125, %v423_v52  ;;  %v506_v57 = vmul.f32 0.0078125, %v421_v53  ;;  %v581_v51 = vld [vmem:[#allocation5 + $0x1a8] sm:$0xff] }
 0x14f   : > { %2829 = vmatprep.subr.bf16.mxu0 %v3575_v14 }
 0x150   : > { %v2833_v62 = vpack.c.bf16 %v507_v56, %v506_v57 }
 0x151   : > { %773 = vmatmul.mubr.f32.gmra.mrb[8].mxu0 %v544_v54  ;;  %v427_v59 = vpop.xlane.xlu1 %426  ;;  %v425_v60 = vpop.xlane.xlu0 %424  ;;  %v580_v54 = vld [vmem:[#allocation5 + $0x1a0] sm:$0xff] }
 0x152   : > { %777 = vmatprep.mubr.f32.mxu0 %v549_v58  ;;  %2831 = vmatpush1.bf16.msra.mxu0 %v2830_v55  ;;  %v509_v63 = vmul.f32 0.0078125, %v427_v59  ;;  %v508_v0 = vmul.f32 0.0078125, %v425_v60  ;;  %v585_v58 = vld [vmem:[#allocation5 + $0x1c8] sm:$0xff] }
 0x153   : > { %2832 = vmatprep.subr.bf16.mxu0 %v3575_v14 }
 0x154   : > { %v2836_v5 = vpack.c.bf16 %v509_v63, %v508_v0 }
 0x155   : > { %778 = vmatmul.mubr.f32.gmra.mrb[10].mxu0 %v548_v61  ;;  %v431_v2 = vpop.xlane.xlu1 %430  ;;  %v429_v3 = vpop.xlane.xlu0 %428  ;;  %v584_v61 = vld [vmem:[#allocation5 + $0x1c0] sm:$0xff] }
 0x156   : > { %782 = vmatprep.mubr.f32.mxu0 %v553_v1  ;;  %2834 = vmatpush1.bf16.msra.mxu0 %v2833_v62  ;;  %v511_v6 = vmul.f32 0.0078125, %v431_v2  ;;  %v510_v7 = vmul.f32 0.0078125, %v429_v3  ;;  %v589_v1 = vld [vmem:[#allocation5 + $0x1e8] sm:$0xff]  ;;  %v588_v2 = vld [vmem:[#allocation5 + $0x1e0] sm:$0xff] }
 0x157   : > { %2835 = vmatprep.subr.bf16.mxu0 %v3575_v14 }
 0x158   : > { %v2839_v12 = vpack.c.bf16 %v511_v6, %v510_v7  ;;  %v597_v6 = vld [vmem:[#allocation5 + $0x228] sm:$0xff]  ;;  %v596_v7 = vld [vmem:[#allocation5 + $0x220] sm:$0xff] }
 0x159   : > { %783 = vmatmul.mubr.f32.gmra.mrb[12].mxu0 %v552_v4  ;;  %v435_v9 = vpop.xlane.xlu1 %434  ;;  %v433_v10 = vpop.xlane.xlu0 %432  ;;  %v593_v4 = vld [vmem:[#allocation5 + $0x208] sm:$0xff] }
 0x15a   : > { %787 = vmatprep.mubr.f32.mxu0 %v557_v8  ;;  %2837 = vmatpush1.bf16.msra.mxu0 %v2836_v5  ;;  %v513_v13 = vmul.f32 0.0078125, %v435_v9  ;;  %v512_v15 = vmul.f32 0.0078125, %v433_v10  ;;  %v592_v5 = vld [vmem:[#allocation5 + $0x200] sm:$0xff]  ;;  %v601_v8 = vld [vmem:[#allocation5 + $0x248] sm:$0xff] }
 0x15b   : > { %2838 = vmatprep.subr.bf16.mxu0 %v3575_v14  ;;  %v600_v9 = vld [vmem:[#allocation5 + $0x240] sm:$0xff]  ;;  %v605_v10 = vld [vmem:[#allocation5 + $0x268] sm:$0xff] }
 0x15c   : > { %v2842_v20 = vpack.c.bf16 %v513_v13, %v512_v15  ;;  %v608_v13 = vld [vmem:[#allocation5 + $0x280] sm:$0xff]  ;;  %v613_v15 = vld [vmem:[#allocation5 + $0x2a8] sm:$0xff] }
 0x15d   : > { %788 = vmatmul.mubr.f32.gmra.mrb[14].mxu0 %v556_v11  ;;  %v439_v17 = vpop.xlane.xlu1 %438  ;;  %v437_v18 = vpop.xlane.xlu0 %436  ;;  %v604_v11 = vld [vmem:[#allocation5 + $0x260] sm:$0xff] }
 0x15e   : > { %792 = vmatprep.mubr.f32.mxu0 %v561_v16  ;;  %2840 = vmatpush1.bf16.msra.mxu0 %v2839_v12  ;;  %v515_v21 = vmul.f32 0.0078125, %v439_v17  ;;  %v514_v22 = vmul.f32 0.0078125, %v437_v18  ;;  %v609_v12 = vld [vmem:[#allocation5 + $0x288] sm:$0xff]  ;;  %v612_v16 = vld [vmem:[#allocation5 + $0x2a0] sm:$0xff] }
 0x15f   : > { %2841 = vmatprep.subr.bf16.mxu0 %v3575_v14  ;;  %v617_v17 = vld [vmem:[#allocation5 + $0x2c8] sm:$0xff]  ;;  %v616_v18 = vld [vmem:[#allocation5 + $0x2c0] sm:$0xff] }
 0x160   : > { %v2845_v27 = vpack.c.bf16 %v515_v21, %v514_v22  ;;  %v625_v21 = vld [vmem:[#allocation5 + $0x308] sm:$0xff]  ;;  %v624_v22 = vld [vmem:[#allocation5 + $0x300] sm:$0xff] }
 0x161   : > { %793 = vmatmul.mubr.f32.gmra.mrb[16].mxu0 %v560_v19  ;;  %v443_v24 = vpop.xlane.xlu1 %442  ;;  %v441_v25 = vpop.xlane.xlu0 %440  ;;  %v621_v19 = vld [vmem:[#allocation5 + $0x2e8] sm:$0xff] }
 0x162   : > { %797 = vmatprep.mubr.f32.mxu0 %v565_v23  ;;  %2843 = vmatpush1.bf16.msra.mxu0 %v2842_v20  ;;  %v517_v28 = vmul.f32 0.0078125, %v443_v24  ;;  %v516_v29 = vmul.f32 0.0078125, %v441_v25  ;;  %v620_v20 = vld [vmem:[#allocation5 + $0x2e0] sm:$0xff]  ;;  %v629_v23 = vld [vmem:[#allocation5 + $0x328] sm:$0xff] }
 0x163   : > { %2844 = vmatprep.subr.bf16.mxu0 %v3575_v14  ;;  %v628_v24 = vld [vmem:[#allocation5 + $0x320] sm:$0xff]  ;;  %v633_v25 = vld [vmem:[#allocation5 + $0x348] sm:$0xff] }
 0x164   : > { %v2848_v34 = vpack.c.bf16 %v517_v28, %v516_v29  ;;  %v636_v28 = vld [vmem:[#allocation5 + $0x360] sm:$0xff]  ;;  %v641_v29 = vld [vmem:[#allocation5 + $0x388] sm:$0xff] }
 0x165   : > { %798 = vmatmul.mubr.f32.gmra.mrb[18].mxu0 %v564_v26  ;;  %v447_v31 = vpop.xlane.xlu1 %446  ;;  %v445_v32 = vpop.xlane.xlu0 %444  ;;  %v632_v26 = vld [vmem:[#allocation5 + $0x340] sm:$0xff] }
 0x166   : > { %802 = vmatprep.mubr.f32.mxu0 %v569_v30  ;;  %2846 = vmatpush1.bf16.msra.mxu0 %v2845_v27  ;;  %v519_v35 = vmul.f32 0.0078125, %v447_v31  ;;  %v518_v36 = vmul.f32 0.0078125, %v445_v32  ;;  %v637_v27 = vld [vmem:[#allocation5 + $0x368] sm:$0xff]  ;;  %v640_v30 = vld [vmem:[#allocation5 + $0x380] sm:$0xff] }
 0x167   : > { %2847 = vmatprep.subr.bf16.mxu0 %v3575_v14  ;;  %v645_v31 = vld [vmem:[#allocation5 + $0x3a8] sm:$0xff]  ;;  %v644_v32 = vld [vmem:[#allocation5 + $0x3a0] sm:$0xff] }
 0x168   : > { %v2851_v41 = vpack.c.bf16 %v519_v35, %v518_v36  ;;  %v653_v35 = vld [vmem:[#allocation5 + $0x3e8] sm:$0xff]  ;;  %v652_v36 = vld [vmem:[#allocation5 + $0x3e0] sm:$0xff] }
 0x169   : > { %803 = vmatmul.mubr.f32.gmra.mrb[20].mxu0 %v568_v33  ;;  %v451_v38 = vpop.xlane.xlu1 %450  ;;  %v449_v39 = vpop.xlane.xlu0 %448  ;;  %v649_v33 = vld [vmem:[#allocation5 + $0x3c8] sm:$0xff] }
 0x16a   : > { %807 = vmatprep.mubr.f32.mxu0 %v573_v37  ;;  %2849 = vmatpush1.bf16.msra.mxu0 %v2848_v34  ;;  %v521_v42 = vmul.f32 0.0078125, %v451_v38  ;;  %v520_v43 = vmul.f32 0.0078125, %v449_v39  ;;  %v648_v34 = vld [vmem:[#allocation5 + $0x3c0] sm:$0xff]  ;;  %v531_v37 = vld [vmem:[#allocation5 + $0x18] sm:$0xff]  ;;  %v530_v38 = vld [vmem:[#allocation5 + $0x10] sm:$0xff] }
 0x16b   : > { %2850 = vmatprep.subr.bf16.mxu0 %v3575_v14  ;;  %v535_v39 = vld [vmem:[#allocation5 + $0x38] sm:$0xff] }
 0x16c   : > { %v2854_v48 = vpack.c.bf16 %v521_v42, %v520_v43  ;;  %v538_v42 = vld [vmem:[#allocation5 + $0x50] sm:$0xff]  ;;  %v543_v43 = vld [vmem:[#allocation5 + $0x78] sm:$0xff] }
 0x16d   : > { %808 = vmatmul.mubr.f32.gmra.mrb[22].mxu0 %v572_v40  ;;  %v455_v45 = vpop.xlane.xlu1 %454  ;;  %v453_v46 = vpop.xlane.xlu0 %452  ;;  %v534_v40 = vld [vmem:[#allocation5 + $0x30] sm:$0xff] }
 0x16e   : > { %812 = vmatprep.mubr.f32.mxu0 %v577_v44  ;;  %2852 = vmatpush1.bf16.msra.mxu0 %v2851_v41  ;;  %v523_v49 = vmul.f32 0.0078125, %v455_v45  ;;  %v522_v50 = vmul.f32 0.0078125, %v453_v46  ;;  %v539_v41 = vld [vmem:[#allocation5 + $0x58] sm:$0xff]  ;;  %v542_v44 = vld [vmem:[#allocation5 + $0x70] sm:$0xff] }
 0x16f   : > { %2853 = vmatprep.subr.bf16.mxu0 %v3575_v14  ;;  %v547_v45 = vld [vmem:[#allocation5 + $0x98] sm:$0xff]  ;;  %v546_v46 = vld [vmem:[#allocation5 + $0x90] sm:$0xff] }
 0x170   : > { %v2857_v55 = vpack.c.bf16 %v523_v49, %v522_v50  ;;  %v555_v49 = vld [vmem:[#allocation5 + $0xd8] sm:$0xff]  ;;  %v554_v50 = vld [vmem:[#allocation5 + $0xd0] sm:$0xff] }
 0x171   : > { %813 = vmatmul.mubr.f32.gmra.mrb[24].mxu0 %v576_v47  ;;  %v459_v52 = vpop.xlane.xlu1 %458  ;;  %v457_v53 = vpop.xlane.xlu0 %456  ;;  %v551_v47 = vld [vmem:[#allocation5 + $0xb8] sm:$0xff] }
 0x172   : > { %817 = vmatprep.mubr.f32.mxu0 %v581_v51  ;;  %2855 = vmatpush1.bf16.msra.mxu0 %v2854_v48  ;;  %v525_v56 = vmul.f32 0.0078125, %v459_v52  ;;  %v524_v57 = vmul.f32 0.0078125, %v457_v53  ;;  %v550_v48 = vld [vmem:[#allocation5 + $0xb0] sm:$0xff]  ;;  %v559_v51 = vld [vmem:[#allocation5 + $0xf8] sm:$0xff] }
 0x173   : > { %2856 = vmatprep.subr.bf16.mxu0 %v3575_v14  ;;  %v558_v52 = vld [vmem:[#allocation5 + $0xf0] sm:$0xff]  ;;  %v563_v53 = vld [vmem:[#allocation5 + $0x118] sm:$0xff] }
 0x174   : > { %v2860_v62 = vpack.c.bf16 %v525_v56, %v524_v57  ;;  %v566_v56 = vld [vmem:[#allocation5 + $0x130] sm:$0xff]  ;;  %v571_v57 = vld [vmem:[#allocation5 + $0x158] sm:$0xff] }
 0x175   : > { %818 = vmatmul.mubr.f32.gmra.mrb[26].mxu0 %v580_v54  ;;  %v463_v59 = vpop.xlane.xlu1 %462  ;;  %v461_v60 = vpop.xlane.xlu0 %460  ;;  %v562_v54 = vld [vmem:[#allocation5 + $0x110] sm:$0xff] }
 0x176   : > { %822 = vmatprep.mubr.f32.mxu0 %v585_v58  ;;  %2858 = vmatpush1.bf16.msra.mxu0 %v2857_v55  ;;  %v527_v63 = vmul.f32 0.0078125, %v463_v59  ;;  %v526_v0 = vmul.f32 0.0078125, %v461_v60  ;;  %v567_v55 = vld [vmem:[#allocation5 + $0x138] sm:$0xff]  ;;  %v570_v58 = vld [vmem:[#allocation5 + $0x150] sm:$0xff] }
 0x177   : > { %2859 = vmatprep.subr.bf16.mxu0 %v3575_v14  ;;  %v575_v59 = vld [vmem:[#allocation5 + $0x178] sm:$0xff]  ;;  %v574_v60 = vld [vmem:[#allocation5 + $0x170] sm:$0xff] }
 0x178   : > { %v2863_v3 = vpack.c.bf16 %v527_v63, %v526_v0  ;;  %v583_v63 = vld [vmem:[#allocation5 + $0x1b8] sm:$0xff]  ;;  %v582_v0 = vld [vmem:[#allocation5 + $0x1b0] sm:$0xff] }
 0x179   : > { %823 = vmatmul.mubr.f32.gmra.mrb[28].mxu0 %v584_v61  ;;  %v579_v61 = vld [vmem:[#allocation5 + $0x198] sm:$0xff] }
 0x17a   : > { %827 = vmatprep.mubr.f32.mxu0 %v589_v1  ;;  %2861 = vmatpush1.bf16.msra.mxu0 %v2860_v62  ;;  %v578_v62 = vld [vmem:[#allocation5 + $0x190] sm:$0xff]  ;;  %v587_v1 = vld [vmem:[#allocation5 + $0x1d8] sm:$0xff] }
 0x17b   : > { %2862 = vmatprep.subr.bf16.mxu0 %v3575_v14 }
 0x17d   : > { %828 = vmatmul.mubr.f32.gmra.mrb[30].mxu0 %v588_v2  ;;  %v586_v2 = vld [vmem:[#allocation5 + $0x1d0] sm:$0xff] }
 0x17e   : > { %832 = vmatprep.mubr.f32.mxu0 %v593_v4  ;;  %2864 = vmatpush1.bf16.msra.mxu0 %v2863_v3  ;;  %v591_v3 = vld [vmem:[#allocation5 + $0x1f8] sm:$0xff]  ;;  %v590_v4 = vld [vmem:[#allocation5 + $0x1f0] sm:$0xff] }
 0x181   : > { %833 = vmatmul.mubr.f32.gmra.mrb[32].mxu0 %v592_v5  ;;  %v595_v5 = vld [vmem:[#allocation5 + $0x218] sm:$0xff] }
 0x182   : > { %837 = vmatprep.mubr.f32.mxu0 %v597_v6  ;;  %v594_v6 = vld [vmem:[#allocation5 + $0x210] sm:$0xff] }
 0x185   : > { %838 = vmatmul.mubr.f32.gmra.mrb[34].mxu0 %v596_v7  ;;  %v599_v7 = vld [vmem:[#allocation5 + $0x238] sm:$0xff] }
 0x186   : > { %842 = vmatprep.mubr.f32.mxu0 %v601_v8  ;;  %v598_v8 = vld [vmem:[#allocation5 + $0x230] sm:$0xff] }
 0x189   : > { %843 = vmatmul.mubr.f32.gmra.mrb[36].mxu0 %v600_v9  ;;  %v603_v9 = vld [vmem:[#allocation5 + $0x258] sm:$0xff] }
 0x18a   : > { %847 = vmatprep.mubr.f32.mxu0 %v605_v10  ;;  %v602_v10 = vld [vmem:[#allocation5 + $0x250] sm:$0xff] }
 0x18d   : > { %848 = vmatmul.mubr.f32.gmra.mrb[38].mxu0 %v604_v11  ;;  %v607_v11 = vld [vmem:[#allocation5 + $0x278] sm:$0xff] }
 0x18e   : > { %852 = vmatprep.mubr.f32.mxu0 %v609_v12  ;;  %v606_v12 = vld [vmem:[#allocation5 + $0x270] sm:$0xff] }
 0x191   : > { %853 = vmatmul.mubr.f32.gmra.mrb[40].mxu0 %v608_v13  ;;  %v611_v13 = vld [vmem:[#allocation5 + $0x298] sm:$0xff] }
 0x192   : > { %857 = vmatprep.mubr.f32.mxu0 %v613_v15  ;;  %v610_v15 = vld [vmem:[#allocation5 + $0x290] sm:$0xff] }
 0x195   : > { %858 = vmatmul.mubr.f32.gmra.mrb[42].mxu0 %v612_v16  ;;  %v615_v16 = vld [vmem:[#allocation5 + $0x2b8] sm:$0xff] }
 0x196   : > { %862 = vmatprep.mubr.f32.mxu0 %v617_v17  ;;  %v614_v17 = vld [vmem:[#allocation5 + $0x2b0] sm:$0xff] }
 0x199   : > { %863 = vmatmul.mubr.f32.gmra.mrb[44].mxu0 %v616_v18  ;;  %v619_v18 = vld [vmem:[#allocation5 + $0x2d8] sm:$0xff] }
 0x19a   : > { %867 = vmatprep.mubr.f32.mxu0 %v621_v19  ;;  %v618_v19 = vld [vmem:[#allocation5 + $0x2d0] sm:$0xff] }
 0x19d   : > { %868 = vmatmul.mubr.f32.gmra.mrb[46].mxu0 %v620_v20  ;;  %v623_v20 = vld [vmem:[#allocation5 + $0x2f8] sm:$0xff] }
 0x19e   : > { %872 = vmatprep.mubr.f32.mxu0 %v625_v21  ;;  %v622_v21 = vld [vmem:[#allocation5 + $0x2f0] sm:$0xff] }
 0x1a1   : > { %873 = vmatmul.mubr.f32.gmra.mrb[48].mxu0 %v624_v22  ;;  %v627_v22 = vld [vmem:[#allocation5 + $0x318] sm:$0xff] }
 0x1a2   : > { %877 = vmatprep.mubr.f32.mxu0 %v629_v23  ;;  %v626_v23 = vld [vmem:[#allocation5 + $0x310] sm:$0xff] }
 0x1a5   : > { %878 = vmatmul.mubr.f32.gmra.mrb[50].mxu0 %v628_v24  ;;  %v631_v24 = vld [vmem:[#allocation5 + $0x338] sm:$0xff] }
 0x1a6   : > { %882 = vmatprep.mubr.f32.mxu0 %v633_v25  ;;  %v630_v25 = vld [vmem:[#allocation5 + $0x330] sm:$0xff] }
 0x1a9   : > { %883 = vmatmul.mubr.f32.gmra.mrb[52].mxu0 %v632_v26  ;;  %v635_v26 = vld [vmem:[#allocation5 + $0x358] sm:$0xff] }
 0x1aa   : > { %887 = vmatprep.mubr.f32.mxu0 %v637_v27  ;;  %v634_v27 = vld [vmem:[#allocation5 + $0x350] sm:$0xff] }
 0x1ad   : > { %888 = vmatmul.mubr.f32.gmra.mrb[54].mxu0 %v636_v28  ;;  %v639_v28 = vld [vmem:[#allocation5 + $0x378] sm:$0xff] }
 0x1ae   : > { %892 = vmatprep.mubr.f32.mxu0 %v641_v29  ;;  %v638_v29 = vld [vmem:[#allocation5 + $0x370] sm:$0xff] }
 0x1b1   : > { %893 = vmatmul.mubr.f32.gmra.mrb[56].mxu0 %v640_v30  ;;  %v643_v30 = vld [vmem:[#allocation5 + $0x398] sm:$0xff] }
 0x1b2   : > { %897 = vmatprep.mubr.f32.mxu0 %v645_v31  ;;  %v642_v31 = vld [vmem:[#allocation5 + $0x390] sm:$0xff] }
 0x1b5   : > { %898 = vmatmul.mubr.f32.gmra.mrb[58].mxu0 %v644_v32  ;;  %v647_v32 = vld [vmem:[#allocation5 + $0x3b8] sm:$0xff] }
 0x1b6   : > { %902 = vmatprep.mubr.f32.mxu0 %v649_v33  ;;  %v646_v33 = vld [vmem:[#allocation5 + $0x3b0] sm:$0xff] }
 0x1b9   : > { %903 = vmatmul.mubr.f32.gmra.mrb[60].mxu0 %v648_v34  ;;  %v651_v34 = vld [vmem:[#allocation5 + $0x3d8] sm:$0xff] }
 0x1ba   : > { %907 = vmatprep.mubr.f32.mxu0 %v653_v35  ;;  %v650_v35 = vld [vmem:[#allocation5 + $0x3d0] sm:$0xff] }
 0x1bd   : > { %908 = vmatmul.mubr.f32.gmra.mrb[62].mxu0 %v652_v36  ;;  %v655_v36 = vld [vmem:[#allocation5 + $0x3f8] sm:$0xff] }
 0x1be   : > { %977 = vmatprep.mubr.f32.mxu0 %v531_v37  ;;  %v654_v37 = vld [vmem:[#allocation5 + $0x3f0] sm:$0xff] }
 0x1c1   : > { %978 = vmatmul.mubr.f32.vlgmr.msra.gmra.mrb[0].mxu0 %v530_v38  ;;  %v656_v38 = vld [vmem:[%s4383_s2] sm:$0xff] }
 0x1c2   : > { %982 = vmatprep.mubr.f32.mxu0 %v535_v39 }
 0x1c5   : > { %983 = vmatmul.mubr.f32.gmra.mrb[2].mxu0 %v534_v40 }
 0x1c6   : > { %987 = vmatprep.mubr.f32.mxu0 %v539_v41  ;;  %v657_v41 = vld [vmem:[%s4383_s2 + $0x8] sm:$0xff] }
 0x1c9   : > { %988 = vmatmul.mubr.f32.gmra.mrb[4].mxu0 %v538_v42 }
 0x1ca   : > { %992 = vmatprep.mubr.f32.mxu0 %v543_v43  ;;  %v1171_v43 = vld [vmem:[#allocation7 + $0x8] sm:$0xff] }
 0x1cb   : > { %1426 = vmatprep.mubr.f32.mxu1 %v1171_v43 }
 0x1cd   : > { %993 = vmatmul.mubr.f32.gmra.mrb[6].mxu0 %v542_v44 }
 0x1ce   : > { %997 = vmatprep.mubr.f32.mxu0 %v547_v45 }
 0x1d1   : > { %998 = vmatmul.mubr.f32.gmra.mrb[8].mxu0 %v546_v46 }
 0x1d2   : > { %1002 = vmatprep.mubr.f32.mxu0 %v551_v47 }
 0x1d5   : > { %1003 = vmatmul.mubr.f32.gmra.mrb[10].mxu0 %v550_v48 }
 0x1d6   : > { %1007 = vmatprep.mubr.f32.mxu0 %v555_v49  ;;  %v658_v49 = vld [vmem:[%s4383_s2 + $0x10] sm:$0xff] }
 0x1d9   : > { %1008 = vmatmul.mubr.f32.gmra.mrb[12].mxu0 %v554_v50 }
 0x1da   : > { %1012 = vmatprep.mubr.f32.mxu0 %v559_v51 }
 0x1dd   : > { %1013 = vmatmul.mubr.f32.gmra.mrb[14].mxu0 %v558_v52 }
 0x1de   : > { %1017 = vmatprep.mubr.f32.mxu0 %v563_v53  ;;  %v659_v53 = vld [vmem:[%s4383_s2 + $0x18] sm:$0xff] }
 0x1e1   : > { %1018 = vmatmul.mubr.f32.gmra.mrb[16].mxu0 %v562_v54 }
 0x1e2   : > { %1022 = vmatprep.mubr.f32.mxu0 %v567_v55 }
 0x1e5   : > { %1023 = vmatmul.mubr.f32.gmra.mrb[18].mxu0 %v566_v56 }
 0x1e6   : > { %1027 = vmatprep.mubr.f32.mxu0 %v571_v57 }
 0x1e9   : > { %1028 = vmatmul.mubr.f32.gmra.mrb[20].mxu0 %v570_v58 }
 0x1ea   : > { %1032 = vmatprep.mubr.f32.mxu0 %v575_v59 }
 0x1ed   : > { %1033 = vmatmul.mubr.f32.gmra.mrb[22].mxu0 %v574_v60  ;;  %v660_v60 = vld [vmem:[%s4383_s2 + $0x20] sm:$0xff] }
 0x1ee   : > { %1037 = vmatprep.mubr.f32.mxu0 %v579_v61 }
 0x1f1   : > { %1038 = vmatmul.mubr.f32.gmra.mrb[24].mxu0 %v578_v62 }
 0x1f2   : > { %1042 = vmatprep.mubr.f32.mxu0 %v583_v63 }
 0x1f5   : > { %1043 = vmatmul.mubr.f32.gmra.mrb[26].mxu0 %v582_v0  ;;  %v661_v0 = vld [vmem:[%s4383_s2 + $0x28] sm:$0xff] }
 0x1f6   : > { %1047 = vmatprep.mubr.f32.mxu0 %v587_v1 }
 0x1f9   : > { %1048 = vmatmul.mubr.f32.gmra.mrb[28].mxu0 %v586_v2 }
 0x1fa   : > { %1052 = vmatprep.mubr.f32.mxu0 %v591_v3 }
 0x1fd   : > { %1053 = vmatmul.mubr.f32.gmra.mrb[30].mxu0 %v590_v4 }
 0x1fe   : > { %1057 = vmatprep.mubr.f32.mxu0 %v595_v5 }
 0x201   : > { %1058 = vmatmul.mubr.f32.gmra.mrb[32].mxu0 %v594_v6 }
 0x202   : > { %1062 = vmatprep.mubr.f32.mxu0 %v599_v7  ;;  %v662_v7 = vld [vmem:[%s4383_s2 + $0x30] sm:$0xff] }
 0x205   : > { %1063 = vmatmul.mubr.f32.gmra.mrb[34].mxu0 %v598_v8 }
 0x206   : > { %1067 = vmatprep.mubr.f32.mxu0 %v603_v9 }
 0x209   : > { %1068 = vmatmul.mubr.f32.gmra.mrb[36].mxu0 %v602_v10 }
 0x20a   : > { %1072 = vmatprep.mubr.f32.mxu0 %v607_v11  ;;  %v663_v11 = vld [vmem:[%s4383_s2 + $0x38] sm:$0xff] }
 0x20d   : > { %1073 = vmatmul.mubr.f32.gmra.mrb[38].mxu0 %v606_v12 }
 0x20e   : > { %1077 = vmatprep.mubr.f32.mxu0 %v611_v13 }
 0x211   : > { %1078 = vmatmul.mubr.f32.gmra.mrb[40].mxu0 %v610_v15 }
 0x212   : > { %1082 = vmatprep.mubr.f32.mxu0 %v615_v16 }
 0x215   : > { %1083 = vmatmul.mubr.f32.gmra.mrb[42].mxu0 %v614_v17 }
 0x216   : > { %1087 = vmatprep.mubr.f32.mxu0 %v619_v18 }
 0x219   : > { %1088 = vmatmul.mubr.f32.gmra.mrb[44].mxu0 %v618_v19  ;;  %v664_v19 = vld [vmem:[%s4383_s2 + $0x40] sm:$0xff] }
 0x21a   : > { %1092 = vmatprep.mubr.f32.mxu0 %v623_v20 }
 0x21d   : > { %1093 = vmatmul.mubr.f32.gmra.mrb[46].mxu0 %v622_v21 }
 0x21e   : > { %1097 = vmatprep.mubr.f32.mxu0 %v627_v22 }
 0x221   : > { %1098 = vmatmul.mubr.f32.gmra.mrb[48].mxu0 %v626_v23  ;;  %v665_v23 = vld [vmem:[%s4383_s2 + $0x48] sm:$0xff] }
 0x222   : > { %1102 = vmatprep.mubr.f32.mxu0 %v631_v24 }
 0x225   : > { %1103 = vmatmul.mubr.f32.gmra.mrb[50].mxu0 %v630_v25 }
 0x226   : > { %1107 = vmatprep.mubr.f32.mxu0 %v635_v26 }
 0x229   : > { %1108 = vmatmul.mubr.f32.gmra.mrb[52].mxu0 %v634_v27 }
 0x22a   : > { %1112 = vmatprep.mubr.f32.mxu0 %v639_v28 }
 0x22d   : > { %1113 = vmatmul.mubr.f32.gmra.mrb[54].mxu0 %v638_v29 }
 0x22e   : > { %1117 = vmatprep.mubr.f32.mxu0 %v643_v30  ;;  %v666_v30 = vld [vmem:[%s4383_s2 + $0x50] sm:$0xff] }
 0x231   : > { %1118 = vmatmul.mubr.f32.gmra.mrb[56].mxu0 %v642_v31 }
 0x232   : > { %1122 = vmatprep.mubr.f32.mxu0 %v647_v32 }
 0x235   : > { %1123 = vmatmul.mubr.f32.gmra.mrb[58].mxu0 %v646_v33 }
 0x236   : > { %1127 = vmatprep.mubr.f32.mxu0 %v651_v34  ;;  %v667_v34 = vld [vmem:[%s4383_s2 + $0x58] sm:$0xff] }
 0x239   : > { %1128 = vmatmul.mubr.f32.gmra.mrb[60].mxu0 %v650_v35 }
 0x23a   : > { %1132 = vmatprep.mubr.f32.mxu0 %v655_v36 }
 0x23d   : > { %1133 = vmatmul.mubr.f32.gmra.mrb[62].mxu0 %v654_v37 }
 0x294   : > { %v979_v39 = vpop.f32.mrb[0].mxu0 }
 0x295   : > { %v981_v40 = vpop.f32.mrb[1].mxu0  ;;  %v2913_v42 = vadd.f32 %v979_v39, %v656_v38 }
 0x297   : > { %v1138_v47 = vmax.f32 %v2913_v42, 0.0 }
 0x298   : > { %v984_v44 = vpop.f32.mrb[2].mxu0 }
 0x299   : > { %v2914_v45 = vadd.f32 %v984_v44, %v657_v41  ;;  %v986_v46 = vpop.f32.mrb[3].mxu0  ;;  %v668_v41 = vld [vmem:[%s4383_s2 + $0x60] sm:$0xff] }
 0x29b   : > { %v1139_v48 = vmax.f32 %v2914_v45, 0.0  ;;  %v669_v45 = vld [vmem:[%s4383_s2 + $0x68] sm:$0xff] }
 0x29c   : > { %v989_v50 = vpop.f32.mrb[4].mxu0 }
 0x29d   : > { %v991_v51 = vpop.f32.mrb[5].mxu0  ;;  %v2866_v52 = vpack.c.bf16 %v1139_v48, %v1138_v47  ;;  %v2915_v54 = vadd.f32 %v989_v50, %v658_v49 }
 0x29f   : > { %2867 = vmatpush1.bf16.msra.mxu1 %v2866_v52  ;;  %v1140_v58 = vmax.f32 %v2915_v54, 0.0  ;;  %v670_v52 = vld [vmem:[%s4383_s2 + $0x70] sm:$0xff] }
 0x2a0   : > { %v994_v55 = vpop.f32.mrb[6].mxu0  ;;  %2868 = vmatprep.subr.bf16.mxu1 %v3575_v14 }
 0x2a1   : > { %v2916_v56 = vadd.f32 %v994_v55, %v659_v53  ;;  %v996_v57 = vpop.f32.mrb[7].mxu0 }
 0x2a3   : > { %v1141_v59 = vmax.f32 %v2916_v56, 0.0  ;;  %v671_v56 = vld [vmem:[%s4383_s2 + $0x78] sm:$0xff] }
 0x2a4   : > { %v999_v61 = vpop.f32.mrb[8].mxu0 }
 0x2a5   : > { %v2869_v62 = vpack.c.bf16 %v1141_v59, %v1140_v58  ;;  %v1001_v63 = vpop.f32.mrb[9].mxu0  ;;  %v2917_v1 = vadd.f32 %v999_v61, %v660_v60 }
 0x2a6   : > { %v672_v63 = vld [vmem:[%s4383_s2 + $0x80] sm:$0xff] }
 0x2a7   : > { %2870 = vmatpush1.bf16.msra.mxu1 %v2869_v62  ;;  %v1142_v5 = vmax.f32 %v2917_v1, 0.0 }
 0x2a8   : > { %v1004_v2 = vpop.f32.mrb[10].mxu0  ;;  %2871 = vmatprep.subr.bf16.mxu1 %v3575_v14 }
 0x2a9   : > { %v2918_v3 = vadd.f32 %v1004_v2, %v661_v0  ;;  %v1006_v4 = vpop.f32.mrb[11].mxu0 }
 0x2ab   : > { %v1143_v6 = vmax.f32 %v2918_v3, 0.0  ;;  %v673_v3 = vld [vmem:[%s4383_s2 + $0x88] sm:$0xff] }
 0x2ac   : > { %v1009_v8 = vpop.f32.mrb[12].mxu0 }
 0x2ad   : > { %v2872_v9 = vpack.c.bf16 %v1143_v6, %v1142_v5  ;;  %v1011_v10 = vpop.f32.mrb[13].mxu0  ;;  %v2919_v12 = vadd.f32 %v1009_v8, %v662_v7 }
 0x2ae   : > { %v674_v10 = vld [vmem:[%s4383_s2 + $0x90] sm:$0xff] }
 0x2af   : > { %2873 = vmatpush1.bf16.msra.mxu1 %v2872_v9  ;;  %v1144_v17 = vmax.f32 %v2919_v12, 0.0 }
 0x2b0   : > { %v1014_v13 = vpop.f32.mrb[14].mxu0  ;;  %2874 = vmatprep.subr.bf16.mxu1 %v3575_v14 }
 0x2b1   : > { %v2920_v15 = vadd.f32 %v1014_v13, %v663_v11  ;;  %v1016_v16 = vpop.f32.mrb[15].mxu0 }
 0x2b3   : > { %v1145_v18 = vmax.f32 %v2920_v15, 0.0  ;;  %v675_v15 = vld [vmem:[%s4383_s2 + $0x98] sm:$0xff] }
 0x2b4   : > { %v1019_v20 = vpop.f32.mrb[16].mxu0 }
 0x2b5   : > { %v2875_v21 = vpack.c.bf16 %v1145_v18, %v1144_v17  ;;  %v1021_v22 = vpop.f32.mrb[17].mxu0  ;;  %v2921_v24 = vadd.f32 %v1019_v20, %v664_v19 }
 0x2b6   : > { %v676_v22 = vld [vmem:[%s4383_s2 + $0xa0] sm:$0xff] }
 0x2b7   : > { %2876 = vmatpush1.bf16.msra.mxu1 %v2875_v21  ;;  %v1146_v28 = vmax.f32 %v2921_v24, 0.0 }
 0x2b8   : > { %v1024_v25 = vpop.f32.mrb[18].mxu0  ;;  %2877 = vmatprep.subr.bf16.mxu1 %v3575_v14 }
 0x2b9   : > { %v2922_v26 = vadd.f32 %v1024_v25, %v665_v23  ;;  %v1026_v27 = vpop.f32.mrb[19].mxu0 }
 0x2bb   : > { %v1147_v29 = vmax.f32 %v2922_v26, 0.0  ;;  %v677_v26 = vld [vmem:[%s4383_s2 + $0xa8] sm:$0xff] }
 0x2bc   : > { %v1029_v31 = vpop.f32.mrb[20].mxu0 }
 0x2bd   : > { %v2878_v32 = vpack.c.bf16 %v1147_v29, %v1146_v28  ;;  %v1031_v33 = vpop.f32.mrb[21].mxu0  ;;  %v2923_v35 = vadd.f32 %v1029_v31, %v666_v30 }
 0x2be   : > { %v678_v33 = vld [vmem:[%s4383_s2 + $0xb0] sm:$0xff] }
 0x2bf   : > { %2879 = vmatpush1.bf16.msra.mxu1 %v2878_v32  ;;  %v1148_v39 = vmax.f32 %v2923_v35, 0.0 }
 0x2c0   : > { %v1034_v36 = vpop.f32.mrb[22].mxu0  ;;  %2880 = vmatprep.subr.bf16.mxu1 %v3575_v14 }
 0x2c1   : > { %v2924_v37 = vadd.f32 %v1034_v36, %v667_v34  ;;  %v1036_v38 = vpop.f32.mrb[23].mxu0 }
 0x2c3   : > { %v1149_v40 = vmax.f32 %v2924_v37, 0.0  ;;  %v679_v37 = vld [vmem:[%s4383_s2 + $0xb8] sm:$0xff] }
 0x2c4   : > { %v1039_v42 = vpop.f32.mrb[24].mxu0 }
 0x2c5   : > { %v2881_v43 = vpack.c.bf16 %v1149_v40, %v1148_v39  ;;  %v1041_v44 = vpop.f32.mrb[25].mxu0  ;;  %v2925_v46 = vadd.f32 %v1039_v42, %v668_v41 }
 0x2c6   : > { %v680_v44 = vld [vmem:[%s4383_s2 + $0xc0] sm:$0xff] }
 0x2c7   : > { %2882 = vmatpush1.bf16.msra.mxu1 %v2881_v43  ;;  %v1150_v50 = vmax.f32 %v2925_v46, 0.0 }
 0x2c8   : > { %v1044_v47 = vpop.f32.mrb[26].mxu0  ;;  %2883 = vmatprep.subr.bf16.mxu1 %v3575_v14 }
 0x2c9   : > { %v2926_v48 = vadd.f32 %v1044_v47, %v669_v45  ;;  %v1046_v49 = vpop.f32.mrb[27].mxu0 }
 0x2cb   : > { %v1151_v51 = vmax.f32 %v2926_v48, 0.0  ;;  %v681_v48 = vld [vmem:[%s4383_s2 + $0xc8] sm:$0xff] }
 0x2cc   : > { %v1049_v53 = vpop.f32.mrb[28].mxu0 }
 0x2cd   : > { %v2884_v54 = vpack.c.bf16 %v1151_v51, %v1150_v50  ;;  %v1051_v55 = vpop.f32.mrb[29].mxu0  ;;  %v2927_v57 = vadd.f32 %v1049_v53, %v670_v52 }
 0x2ce   : > { %v682_v55 = vld [vmem:[%s4383_s2 + $0xd0] sm:$0xff] }
 0x2cf   : > { %2885 = vmatpush1.bf16.msra.mxu1 %v2884_v54  ;;  %v1152_v61 = vmax.f32 %v2927_v57, 0.0 }
 0x2d0   : > { %v1054_v58 = vpop.f32.mrb[30].mxu0  ;;  %2886 = vmatprep.subr.bf16.mxu1 %v3575_v14 }
 0x2d1   : > { %v2928_v59 = vadd.f32 %v1054_v58, %v671_v56  ;;  %v1056_v60 = vpop.f32.mrb[31].mxu0 }
 0x2d3   : > { %v1153_v62 = vmax.f32 %v2928_v59, 0.0  ;;  %v683_v59 = vld [vmem:[%s4383_s2 + $0xd8] sm:$0xff] }
 0x2d4   : > { %v1059_v0 = vpop.f32.mrb[32].mxu0 }
 0x2d5   : > { %v2887_v1 = vpack.c.bf16 %v1153_v62, %v1152_v61  ;;  %v1061_v2 = vpop.f32.mrb[33].mxu0  ;;  %v2929_v4 = vadd.f32 %v1059_v0, %v672_v63 }
 0x2d6   : > { %v684_v2 = vld [vmem:[%s4383_s2 + $0xe0] sm:$0xff] }
 0x2d7   : > { %2888 = vmatpush1.bf16.msra.mxu1 %v2887_v1  ;;  %v1154_v8 = vmax.f32 %v2929_v4, 0.0 }
 0x2d8   : > { %v1064_v5 = vpop.f32.mrb[34].mxu0  ;;  %2889 = vmatprep.subr.bf16.mxu1 %v3575_v14 }
 0x2d9   : > { %v2930_v6 = vadd.f32 %v1064_v5, %v673_v3  ;;  %v1066_v7 = vpop.f32.mrb[35].mxu0 }
 0x2db   : > { %v1155_v9 = vmax.f32 %v2930_v6, 0.0  ;;  %v685_v6 = vld [vmem:[%s4383_s2 + $0xe8] sm:$0xff] }
 0x2dc   : > { %v1069_v11 = vpop.f32.mrb[36].mxu0 }
 0x2dd   : > { %v2890_v12 = vpack.c.bf16 %v1155_v9, %v1154_v8  ;;  %v1071_v13 = vpop.f32.mrb[37].mxu0  ;;  %v2931_v16 = vadd.f32 %v1069_v11, %v674_v10 }
 0x2de   : > { %v686_v13 = vld [vmem:[%s4383_s2 + $0xf0] sm:$0xff] }
 0x2df   : > { %2891 = vmatpush1.bf16.msra.mxu1 %v2890_v12  ;;  %v1156_v20 = vmax.f32 %v2931_v16, 0.0 }
 0x2e0   : > { %v1074_v17 = vpop.f32.mrb[38].mxu0  ;;  %2892 = vmatprep.subr.bf16.mxu1 %v3575_v14 }
 0x2e1   : > { %v2932_v18 = vadd.f32 %v1074_v17, %v675_v15  ;;  %v1076_v19 = vpop.f32.mrb[39].mxu0 }
 0x2e3   : > { %v1157_v21 = vmax.f32 %v2932_v18, 0.0  ;;  %v687_v18 = vld [vmem:[%s4383_s2 + $0xf8] sm:$0xff] }
 0x2e4   : > { %v1079_v23 = vpop.f32.mrb[40].mxu0 }
 0x2e5   : > { %v2893_v24 = vpack.c.bf16 %v1157_v21, %v1156_v20  ;;  %v1081_v25 = vpop.f32.mrb[41].mxu0  ;;  %v2933_v27 = vadd.f32 %v1079_v23, %v676_v22 }
 0x2e7   : > { %2894 = vmatpush1.bf16.msra.mxu1 %v2893_v24  ;;  %v1158_v31 = vmax.f32 %v2933_v27, 0.0  ;;  %v1173_v27 = vld [vmem:[#allocation7 + $0x18] sm:$0xff] }
 0x2e8   : > { %v1084_v28 = vpop.f32.mrb[42].mxu0  ;;  %2895 = vmatprep.subr.bf16.mxu1 %v3575_v14 }
 0x2e9   : > { %v2934_v29 = vadd.f32 %v1084_v28, %v677_v26  ;;  %v1086_v30 = vpop.f32.mrb[43].mxu0  ;;  %v1170_v26 = vld [vmem:[#allocation7] sm:$0xff]  ;;  %v1172_v28 = vld [vmem:[#allocation7 + $0x10] sm:$0xff] }
 0x2ea   : > { %v1174_v30 = vld [vmem:[#allocation7 + $0x20] sm:$0xff] }
 0x2eb   : > { %v1159_v32 = vmax.f32 %v2934_v29, 0.0  ;;  %v1175_v29 = vld [vmem:[#allocation7 + $0x28] sm:$0xff] }
 0x2ec   : > { %v1089_v34 = vpop.f32.mrb[44].mxu0 }
 0x2ed   : > { %v2896_v35 = vpack.c.bf16 %v1159_v32, %v1158_v31  ;;  %v1091_v36 = vpop.f32.mrb[45].mxu0  ;;  %v2935_v38 = vadd.f32 %v1089_v34, %v678_v33  ;;  %v1177_v31 = vld [vmem:[#allocation7 + $0x38] sm:$0xff]  ;;  %v1176_v32 = vld [vmem:[#allocation7 + $0x30] sm:$0xff]  ;;  %v1178_v33 = vld [vmem:[#allocation7 + $0x40] sm:$0xff] }
 0x2ee   : > { %v1181_v34 = vld [vmem:[#allocation7 + $0x58] sm:$0xff]  ;;  %v1183_v36 = vld [vmem:[#allocation7 + $0x68] sm:$0xff] }
 0x2ef   : > { %2897 = vmatpush1.bf16.msra.mxu1 %v2896_v35  ;;  %v1160_v42 = vmax.f32 %v2935_v38, 0.0  ;;  %v1180_v35 = vld [vmem:[#allocation7 + $0x50] sm:$0xff]  ;;  %v1185_v38 = vld [vmem:[#allocation7 + $0x78] sm:$0xff] }
 0x2f0   : > { %v1094_v39 = vpop.f32.mrb[46].mxu0  ;;  %2898 = vmatprep.subr.bf16.mxu1 %v3575_v14 }
 0x2f1   : > { %v2936_v40 = vadd.f32 %v1094_v39, %v679_v37  ;;  %v1096_v41 = vpop.f32.mrb[47].mxu0  ;;  %v1182_v37 = vld [vmem:[#allocation7 + $0x60] sm:$0xff]  ;;  %v1184_v39 = vld [vmem:[#allocation7 + $0x70] sm:$0xff] }
 0x2f2   : > { %v1186_v41 = vld [vmem:[#allocation7 + $0x80] sm:$0xff] }
 0x2f3   : > { %v1161_v43 = vmax.f32 %v2936_v40, 0.0  ;;  %v1187_v40 = vld [vmem:[#allocation7 + $0x88] sm:$0xff] }
 0x2f4   : > { %v1099_v45 = vpop.f32.mrb[48].mxu0 }
 0x2f5   : > { %v2899_v46 = vpack.c.bf16 %v1161_v43, %v1160_v42  ;;  %v1101_v47 = vpop.f32.mrb[49].mxu0  ;;  %v2937_v49 = vadd.f32 %v1099_v45, %v680_v44  ;;  %v1189_v42 = vld [vmem:[#allocation7 + $0x98] sm:$0xff]  ;;  %v1188_v43 = vld [vmem:[#allocation7 + $0x90] sm:$0xff]  ;;  %v1191_v44 = vld [vmem:[#allocation7 + $0xa8] sm:$0xff] }
 0x2f6   : > { %v1190_v45 = vld [vmem:[#allocation7 + $0xa0] sm:$0xff]  ;;  %v1192_v47 = vld [vmem:[#allocation7 + $0xb0] sm:$0xff] }
 0x2f7   : > { %2900 = vmatpush1.bf16.msra.mxu1 %v2899_v46  ;;  %v1162_v53 = vmax.f32 %v2937_v49, 0.0  ;;  %v1193_v46 = vld [vmem:[#allocation7 + $0xb8] sm:$0xff]  ;;  %v1194_v49 = vld [vmem:[#allocation7 + $0xc0] sm:$0xff] }
 0x2f8   : > { %v1104_v50 = vpop.f32.mrb[50].mxu0  ;;  %2901 = vmatprep.subr.bf16.mxu1 %v3575_v14 }
 0x2f9   : > { %v2938_v51 = vadd.f32 %v1104_v50, %v681_v48  ;;  %v1106_v52 = vpop.f32.mrb[51].mxu0  ;;  %v1195_v48 = vld [vmem:[#allocation7 + $0xc8] sm:$0xff]  ;;  %v1197_v50 = vld [vmem:[#allocation7 + $0xd8] sm:$0xff] }
 0x2fa   : > { %v1199_v52 = vld [vmem:[#allocation7 + $0xe8] sm:$0xff] }
 0x2fb   : > { %v1163_v54 = vmax.f32 %v2938_v51, 0.0  ;;  %v1196_v51 = vld [vmem:[#allocation7 + $0xd0] sm:$0xff] }
 0x2fc   : > { %v1109_v56 = vpop.f32.mrb[52].mxu0 }
 0x2fd   : > { %v2902_v57 = vpack.c.bf16 %v1163_v54, %v1162_v53  ;;  %v1111_v58 = vpop.f32.mrb[53].mxu0  ;;  %v2939_v60 = vadd.f32 %v1109_v56, %v682_v55  ;;  %v1198_v53 = vld [vmem:[#allocation7 + $0xe0] sm:$0xff]  ;;  %v1201_v54 = vld [vmem:[#allocation7 + $0xf8] sm:$0xff]  ;;  %v1200_v55 = vld [vmem:[#allocation7 + $0xf0] sm:$0xff] }
 0x2fe   : > { %v1203_v56 = vld [vmem:[#allocation7 + $0x108] sm:$0xff]  ;;  %v1205_v58 = vld [vmem:[#allocation7 + $0x118] sm:$0xff] }
 0x2ff   : > { %2903 = vmatpush1.bf16.msra.mxu1 %v2902_v57  ;;  %v1164_v0 = vmax.f32 %v2939_v60, 0.0  ;;  %v1202_v57 = vld [vmem:[#allocation7 + $0x100] sm:$0xff]  ;;  %v1207_v60 = vld [vmem:[#allocation7 + $0x128] sm:$0xff] }
 0x300   : > { %v1114_v61 = vpop.f32.mrb[54].mxu0  ;;  %2904 = vmatprep.subr.bf16.mxu1 %v3575_v14 }
 0x301   : > { %v2940_v62 = vadd.f32 %v1114_v61, %v683_v59  ;;  %v1116_v63 = vpop.f32.mrb[55].mxu0  ;;  %v1204_v59 = vld [vmem:[#allocation7 + $0x110] sm:$0xff]  ;;  %v1206_v61 = vld [vmem:[#allocation7 + $0x120] sm:$0xff] }
 0x302   : > { %v1208_v63 = vld [vmem:[#allocation7 + $0x130] sm:$0xff] }
 0x303   : > { %v1165_v1 = vmax.f32 %v2940_v62, 0.0  ;;  %v1209_v62 = vld [vmem:[#allocation7 + $0x138] sm:$0xff] }
 0x304   : > { %v1119_v3 = vpop.f32.mrb[56].mxu0 }
 0x305   : > { %v2905_v4 = vpack.c.bf16 %v1165_v1, %v1164_v0  ;;  %v1121_v5 = vpop.f32.mrb[57].mxu0  ;;  %v2941_v7 = vadd.f32 %v1119_v3, %v684_v2  ;;  %v1211_v0 = vld [vmem:[#allocation7 + $0x148] sm:$0xff]  ;;  %v1210_v1 = vld [vmem:[#allocation7 + $0x140] sm:$0xff]  ;;  %v1213_v2 = vld [vmem:[#allocation7 + $0x158] sm:$0xff] }
 0x306   : > { %v1212_v3 = vld [vmem:[#allocation7 + $0x150] sm:$0xff]  ;;  %v1214_v5 = vld [vmem:[#allocation7 + $0x160] sm:$0xff] }
 0x307   : > { %2906 = vmatpush1.bf16.msra.mxu1 %v2905_v4  ;;  %v1166_v11 = vmax.f32 %v2941_v7, 0.0  ;;  %v1215_v4 = vld [vmem:[#allocation7 + $0x168] sm:$0xff]  ;;  %v1216_v7 = vld [vmem:[#allocation7 + $0x170] sm:$0xff] }
 0x308   : > { %v1124_v8 = vpop.f32.mrb[58].mxu0  ;;  %2907 = vmatprep.subr.bf16.mxu1 %v3575_v14 }
 0x309   : > { %v2942_v9 = vadd.f32 %v1124_v8, %v685_v6  ;;  %v1126_v10 = vpop.f32.mrb[59].mxu0  ;;  %v1217_v6 = vld [vmem:[#allocation7 + $0x178] sm:$0xff]  ;;  %v1219_v8 = vld [vmem:[#allocation7 + $0x188] sm:$0xff] }
 0x30a   : > { %v1221_v10 = vld [vmem:[#allocation7 + $0x198] sm:$0xff] }
 0x30b   : > { %v1167_v12 = vmax.f32 %v2942_v9, 0.0  ;;  %v1218_v9 = vld [vmem:[#allocation7 + $0x180] sm:$0xff] }
 0x30c   : > { %v1129_v15 = vpop.f32.mrb[60].mxu0 }
 0x30d   : > { %v2908_v16 = vpack.c.bf16 %v1167_v12, %v1166_v11  ;;  %v1131_v17 = vpop.f32.mrb[61].mxu0  ;;  %v2943_v19 = vadd.f32 %v1129_v15, %v686_v13  ;;  %v1220_v11 = vld [vmem:[#allocation7 + $0x190] sm:$0xff]  ;;  %v1223_v12 = vld [vmem:[#allocation7 + $0x1a8] sm:$0xff]  ;;  %v1222_v13 = vld [vmem:[#allocation7 + $0x1a0] sm:$0xff] }
 0x30e   : > { %v1225_v15 = vld [vmem:[#allocation7 + $0x1b8] sm:$0xff]  ;;  %v1227_v17 = vld [vmem:[#allocation7 + $0x1c8] sm:$0xff] }
 0x30f   : > { %2909 = vmatpush1.bf16.msra.mxu1 %v2908_v16  ;;  %v1168_v23 = vmax.f32 %v2943_v19, 0.0  ;;  %v1224_v16 = vld [vmem:[#allocation7 + $0x1b0] sm:$0xff]  ;;  %v1229_v19 = vld [vmem:[#allocation7 + $0x1d8] sm:$0xff] }
 0x310   : > { %v1134_v20 = vpop.f32.mrb[62].mxu0  ;;  %2910 = vmatprep.subr.bf16.mxu1 %v3575_v14  ;;  %v1179_v14 = vld [vmem:[#allocation7 + $0x48] sm:$0xff] }
 0x311   : > { %v2944_v21 = vadd.f32 %v1134_v20, %v687_v18  ;;  %v1136_v22 = vpop.f32.mrb[63].mxu0  ;;  %v1226_v18 = vld [vmem:[#allocation7 + $0x1c0] sm:$0xff]  ;;  %v3576_v20 = vmov 0  }
 0x312   : > { %3086 = vset.pattern.permute.xlu0 %v3576_v20  ;;  %3087 = vset.pattern.permute.xlu1 %v3576_v20  ;;  %v1231_v22 = vld [vmem:[#allocation7 + $0x1e8] sm:$0xff] }
 0x313   : > { %v1169_v24 = vmax.f32 %v2944_v21, 0.0  ;;  %v1228_v21 = vld [vmem:[#allocation7 + $0x1d0] sm:$0xff] }
 0x315   : > { %v2911_v25 = vpack.c.bf16 %v1169_v24, %v1168_v23  ;;  %v1230_v23 = vld [vmem:[#allocation7 + $0x1e0] sm:$0xff]  ;;  %v1233_v24 = vld [vmem:[#allocation7 + $0x1f8] sm:$0xff] }
 0x317   : > { %2912 = vmatpush1.bf16.msra.mxu1 %v2911_v25  ;;  %v1232_v25 = vld [vmem:[#allocation7 + $0x1f0] sm:$0xff] }
 0x31a   : > { %1427 = vmatmul.mubr.f32.vlgmr.msra.gmra.mrb[0].mxu1 %v1170_v26  ;;  %v1235_v26 = vld [vmem:[#allocation7 + $0x208] sm:$0xff] }
 0x31b   : > { %1431 = vmatprep.mubr.f32.mxu1 %v1173_v27  ;;  %v1234_v27 = vld [vmem:[#allocation7 + $0x200] sm:$0xff] }
 0x31e   : > { %1432 = vmatmul.mubr.f32.gmra.mrb[2].mxu1 %v1172_v28  ;;  %v1237_v28 = vld [vmem:[#allocation7 + $0x218] sm:$0xff] }
 0x31f   : > { %1436 = vmatprep.mubr.f32.mxu1 %v1175_v29  ;;  %v1236_v29 = vld [vmem:[#allocation7 + $0x210] sm:$0xff] }
 0x322   : > { %1437 = vmatmul.mubr.f32.gmra.mrb[4].mxu1 %v1174_v30  ;;  %v1239_v30 = vld [vmem:[#allocation7 + $0x228] sm:$0xff] }
 0x323   : > { %1441 = vmatprep.mubr.f32.mxu1 %v1177_v31  ;;  %v1238_v31 = vld [vmem:[#allocation7 + $0x220] sm:$0xff] }
 0x326   : > { %1442 = vmatmul.mubr.f32.gmra.mrb[6].mxu1 %v1176_v32  ;;  %v1241_v32 = vld [vmem:[#allocation7 + $0x238] sm:$0xff] }
 0x327   : > { %1446 = vmatprep.mubr.f32.mxu1 %v1179_v14  ;;  %v1240_v14 = vld [vmem:[#allocation7 + $0x230] sm:$0xff] }
 0x32a   : > { %1447 = vmatmul.mubr.f32.gmra.mrb[8].mxu1 %v1178_v33  ;;  %v1243_v33 = vld [vmem:[#allocation7 + $0x248] sm:$0xff] }
 0x32b   : > { %1451 = vmatprep.mubr.f32.mxu1 %v1181_v34  ;;  %v1242_v34 = vld [vmem:[#allocation7 + $0x240] sm:$0xff] }
 0x32e   : > { %1452 = vmatmul.mubr.f32.gmra.mrb[10].mxu1 %v1180_v35  ;;  %v1245_v35 = vld [vmem:[#allocation7 + $0x258] sm:$0xff] }
 0x32f   : > { %1456 = vmatprep.mubr.f32.mxu1 %v1183_v36  ;;  %v1244_v36 = vld [vmem:[#allocation7 + $0x250] sm:$0xff] }
 0x332   : > { %1457 = vmatmul.mubr.f32.gmra.mrb[12].mxu1 %v1182_v37  ;;  %v1247_v37 = vld [vmem:[#allocation7 + $0x268] sm:$0xff] }
 0x333   : > { %1461 = vmatprep.mubr.f32.mxu1 %v1185_v38  ;;  %v1246_v38 = vld [vmem:[#allocation7 + $0x260] sm:$0xff] }
 0x336   : > { %1462 = vmatmul.mubr.f32.gmra.mrb[14].mxu1 %v1184_v39  ;;  %v1249_v39 = vld [vmem:[#allocation7 + $0x278] sm:$0xff] }
 0x337   : > { %1466 = vmatprep.mubr.f32.mxu1 %v1187_v40  ;;  %v1248_v40 = vld [vmem:[#allocation7 + $0x270] sm:$0xff] }
 0x33a   : > { %1467 = vmatmul.mubr.f32.gmra.mrb[16].mxu1 %v1186_v41  ;;  %v1251_v41 = vld [vmem:[#allocation7 + $0x288] sm:$0xff] }
 0x33b   : > { %1471 = vmatprep.mubr.f32.mxu1 %v1189_v42  ;;  %v1250_v42 = vld [vmem:[#allocation7 + $0x280] sm:$0xff] }
 0x33e   : > { %1472 = vmatmul.mubr.f32.gmra.mrb[18].mxu1 %v1188_v43  ;;  %v1253_v43 = vld [vmem:[#allocation7 + $0x298] sm:$0xff] }
 0x33f   : > { %1476 = vmatprep.mubr.f32.mxu1 %v1191_v44  ;;  %v1252_v44 = vld [vmem:[#allocation7 + $0x290] sm:$0xff] }
 0x342   : > { %1477 = vmatmul.mubr.f32.gmra.mrb[20].mxu1 %v1190_v45  ;;  %v1255_v45 = vld [vmem:[#allocation7 + $0x2a8] sm:$0xff] }
 0x343   : > { %1481 = vmatprep.mubr.f32.mxu1 %v1193_v46  ;;  %v1254_v46 = vld [vmem:[#allocation7 + $0x2a0] sm:$0xff] }
 0x346   : > { %1482 = vmatmul.mubr.f32.gmra.mrb[22].mxu1 %v1192_v47  ;;  %v1257_v47 = vld [vmem:[#allocation7 + $0x2b8] sm:$0xff] }
 0x347   : > { %1486 = vmatprep.mubr.f32.mxu1 %v1195_v48  ;;  %v1256_v48 = vld [vmem:[#allocation7 + $0x2b0] sm:$0xff] }
 0x34a   : > { %1487 = vmatmul.mubr.f32.gmra.mrb[24].mxu1 %v1194_v49  ;;  %v1259_v49 = vld [vmem:[#allocation7 + $0x2c8] sm:$0xff] }
 0x34b   : > { %1491 = vmatprep.mubr.f32.mxu1 %v1197_v50  ;;  %v1258_v50 = vld [vmem:[#allocation7 + $0x2c0] sm:$0xff] }
 0x34e   : > { %1492 = vmatmul.mubr.f32.gmra.mrb[26].mxu1 %v1196_v51  ;;  %v1261_v51 = vld [vmem:[#allocation7 + $0x2d8] sm:$0xff] }
 0x34f   : > { %1496 = vmatprep.mubr.f32.mxu1 %v1199_v52  ;;  %v1260_v52 = vld [vmem:[#allocation7 + $0x2d0] sm:$0xff] }
 0x352   : > { %1497 = vmatmul.mubr.f32.gmra.mrb[28].mxu1 %v1198_v53  ;;  %v1263_v53 = vld [vmem:[#allocation7 + $0x2e8] sm:$0xff] }
 0x353   : > { %1501 = vmatprep.mubr.f32.mxu1 %v1201_v54  ;;  %v1262_v54 = vld [vmem:[#allocation7 + $0x2e0] sm:$0xff] }
 0x356   : > { %1502 = vmatmul.mubr.f32.gmra.mrb[30].mxu1 %v1200_v55  ;;  %v1265_v55 = vld [vmem:[#allocation7 + $0x2f8] sm:$0xff] }
 0x357   : > { %1506 = vmatprep.mubr.f32.mxu1 %v1203_v56  ;;  %v1264_v56 = vld [vmem:[#allocation7 + $0x2f0] sm:$0xff] }
 0x35a   : > { %1507 = vmatmul.mubr.f32.gmra.mrb[32].mxu1 %v1202_v57  ;;  %v1267_v57 = vld [vmem:[#allocation7 + $0x308] sm:$0xff] }
 0x35b   : > { %1511 = vmatprep.mubr.f32.mxu1 %v1205_v58  ;;  %v1266_v58 = vld [vmem:[#allocation7 + $0x300] sm:$0xff] }
 0x35e   : > { %1512 = vmatmul.mubr.f32.gmra.mrb[34].mxu1 %v1204_v59  ;;  %v1269_v59 = vld [vmem:[#allocation7 + $0x318] sm:$0xff] }
 0x35f   : > { %1516 = vmatprep.mubr.f32.mxu1 %v1207_v60  ;;  %v1268_v60 = vld [vmem:[#allocation7 + $0x310] sm:$0xff] }
 0x362   : > { %1517 = vmatmul.mubr.f32.gmra.mrb[36].mxu1 %v1206_v61  ;;  %v1271_v61 = vld [vmem:[#allocation7 + $0x328] sm:$0xff] }
 0x363   : > { %1521 = vmatprep.mubr.f32.mxu1 %v1209_v62  ;;  %v1270_v62 = vld [vmem:[#allocation7 + $0x320] sm:$0xff] }
 0x366   : > { %1522 = vmatmul.mubr.f32.gmra.mrb[38].mxu1 %v1208_v63  ;;  %v1273_v63 = vld [vmem:[#allocation7 + $0x338] sm:$0xff] }
 0x367   : > { %1526 = vmatprep.mubr.f32.mxu1 %v1211_v0  ;;  %v1272_v0 = vld [vmem:[#allocation7 + $0x330] sm:$0xff] }
 0x36a   : > { %1527 = vmatmul.mubr.f32.gmra.mrb[40].mxu1 %v1210_v1  ;;  %v1275_v1 = vld [vmem:[#allocation7 + $0x348] sm:$0xff] }
 0x36b   : > { %1531 = vmatprep.mubr.f32.mxu1 %v1213_v2  ;;  %v1274_v2 = vld [vmem:[#allocation7 + $0x340] sm:$0xff] }
 0x36e   : > { %1532 = vmatmul.mubr.f32.gmra.mrb[42].mxu1 %v1212_v3  ;;  %v1277_v3 = vld [vmem:[#allocation7 + $0x358] sm:$0xff] }
 0x36f   : > { %1536 = vmatprep.mubr.f32.mxu1 %v1215_v4  ;;  %v1298_v4 = vld [vmem:[%s4385_s4] sm:$0xff] }
 0x372   : > { %1537 = vmatmul.mubr.f32.gmra.mrb[44].mxu1 %v1214_v5  ;;  %v1276_v5 = vld [vmem:[#allocation7 + $0x350] sm:$0xff] }
 0x373   : > { %1541 = vmatprep.mubr.f32.mxu1 %v1217_v6  ;;  %v1279_v6 = vld [vmem:[#allocation7 + $0x368] sm:$0xff] }
 0x376   : > { %1542 = vmatmul.mubr.f32.gmra.mrb[46].mxu1 %v1216_v7 }
 0x377   : > { %1546 = vmatprep.mubr.f32.mxu1 %v1219_v8 }
 0x37a   : > { %1547 = vmatmul.mubr.f32.gmra.mrb[48].mxu1 %v1218_v9 }
 0x37b   : > { %1551 = vmatprep.mubr.f32.mxu1 %v1221_v10  ;;  %v1299_v10 = vld [vmem:[%s4385_s4 + $0x8] sm:$0xff] }
 0x37e   : > { %1552 = vmatmul.mubr.f32.gmra.mrb[50].mxu1 %v1220_v11  ;;  %v1278_v11 = vld [vmem:[#allocation7 + $0x360] sm:$0xff] }
 0x37f   : > { %1556 = vmatprep.mubr.f32.mxu1 %v1223_v12 }
 0x382   : > { %1557 = vmatmul.mubr.f32.gmra.mrb[52].mxu1 %v1222_v13  ;;  %v1281_v13 = vld [vmem:[#allocation7 + $0x378] sm:$0xff] }
 0x383   : > { %1561 = vmatprep.mubr.f32.mxu1 %v1225_v15 }
 0x386   : > { %1562 = vmatmul.mubr.f32.gmra.mrb[54].mxu1 %v1224_v16 }
 0x387   : > { %1566 = vmatprep.mubr.f32.mxu1 %v1227_v17 }
 0x38a   : > { %1567 = vmatmul.mubr.f32.gmra.mrb[56].mxu1 %v1226_v18  ;;  %v1300_v18 = vld [vmem:[%s4385_s4 + $0x10] sm:$0xff] }
 0x38b   : > { %1571 = vmatprep.mubr.f32.mxu1 %v1229_v19  ;;  %v1280_v19 = vld [vmem:[#allocation7 + $0x370] sm:$0xff] }
 0x38e   : > { %1572 = vmatmul.mubr.f32.gmra.mrb[58].mxu1 %v1228_v21  ;;  %v1283_v21 = vld [vmem:[#allocation7 + $0x388] sm:$0xff] }
 0x38f   : > { %1576 = vmatprep.mubr.f32.mxu1 %v1231_v22 }
 0x392   : > { %1577 = vmatmul.mubr.f32.gmra.mrb[60].mxu1 %v1230_v23 }
 0x393   : > { %1581 = vmatprep.mubr.f32.mxu1 %v1233_v24 }
 0x396   : > { %1582 = vmatmul.mubr.f32.gmra.mrb[62].mxu1 %v1232_v25  ;;  %v1301_v25 = vld [vmem:[%s4385_s4 + $0x18] sm:$0xff] }
 0x397   : > { %1586 = vmatprep.mubr.f32.mxu1 %v1235_v26  ;;  %v1282_v26 = vld [vmem:[#allocation7 + $0x380] sm:$0xff] }
 0x39a   : > { %1587 = vmatmul.mubr.f32.gmra.mrb[64].mxu1 %v1234_v27 }
 0x39b   : > { %1591 = vmatprep.mubr.f32.mxu1 %v1237_v28  ;;  %v1285_v28 = vld [vmem:[#allocation7 + $0x398] sm:$0xff] }
 0x39e   : > { %1592 = vmatmul.mubr.f32.gmra.mrb[66].mxu1 %v1236_v29 }
 0x39f   : > { %1596 = vmatprep.mubr.f32.mxu1 %v1239_v30 }
 0x3a2   : > { %1597 = vmatmul.mubr.f32.gmra.mrb[68].mxu1 %v1238_v31 }
 0x3a3   : > { %1601 = vmatprep.mubr.f32.mxu1 %v1241_v32  ;;  %v1302_v32 = vld [vmem:[%s4385_s4 + $0x20] sm:$0xff] }
 0x3a6   : > { %1602 = vmatmul.mubr.f32.gmra.mrb[70].mxu1 %v1240_v14  ;;  %v1284_v14 = vld [vmem:[#allocation7 + $0x390] sm:$0xff] }
 0x3a7   : > { %1606 = vmatprep.mubr.f32.mxu1 %v1243_v33 }
 0x3aa   : > { %1607 = vmatmul.mubr.f32.gmra.mrb[72].mxu1 %v1242_v34 }
 0x3ab   : > { %1611 = vmatprep.mubr.f32.mxu1 %v1245_v35  ;;  %v1287_v35 = vld [vmem:[#allocation7 + $0x3a8] sm:$0xff] }
 0x3ae   : > { %1612 = vmatmul.mubr.f32.gmra.mrb[74].mxu1 %v1244_v36 }
 0x3af   : > { %1616 = vmatprep.mubr.f32.mxu1 %v1247_v37 }
 0x3b2   : > { %1617 = vmatmul.mubr.f32.gmra.mrb[76].mxu1 %v1246_v38 }
 0x3b3   : > { %1621 = vmatprep.mubr.f32.mxu1 %v1249_v39 }
 0x3b6   : > { %1622 = vmatmul.mubr.f32.gmra.mrb[78].mxu1 %v1248_v40  ;;  %v1303_v40 = vld [vmem:[%s4385_s4 + $0x28] sm:$0xff] }
 0x3b7   : > { %1626 = vmatprep.mubr.f32.mxu1 %v1251_v41  ;;  %v1286_v41 = vld [vmem:[#allocation7 + $0x3a0] sm:$0xff] }
 0x3ba   : > { %1627 = vmatmul.mubr.f32.gmra.mrb[80].mxu1 %v1250_v42 }
 0x3bb   : > { %1631 = vmatprep.mubr.f32.mxu1 %v1253_v43 }
 0x3be   : > { %1632 = vmatmul.mubr.f32.gmra.mrb[82].mxu1 %v1252_v44  ;;  %v1289_v44 = vld [vmem:[#allocation7 + $0x3b8] sm:$0xff] }
 0x3bf   : > { %1636 = vmatprep.mubr.f32.mxu1 %v1255_v45 }
 0x3c2   : > { %1637 = vmatmul.mubr.f32.gmra.mrb[84].mxu1 %v1254_v46 }
 0x3c3   : > { %1641 = vmatprep.mubr.f32.mxu1 %v1257_v47 }
 0x3c6   : > { %1642 = vmatmul.mubr.f32.gmra.mrb[86].mxu1 %v1256_v48 }
 0x3c7   : > { %1646 = vmatprep.mubr.f32.mxu1 %v1259_v49  ;;  %v1304_v49 = vld [vmem:[%s4385_s4 + $0x30] sm:$0xff] }
 0x3ca   : > { %1647 = vmatmul.mubr.f32.gmra.mrb[88].mxu1 %v1258_v50  ;;  %v1288_v50 = vld [vmem:[#allocation7 + $0x3b0] sm:$0xff] }
 0x3cb   : > { %1651 = vmatprep.mubr.f32.mxu1 %v1261_v51 }
 0x3ce   : > { %1652 = vmatmul.mubr.f32.gmra.mrb[90].mxu1 %v1260_v52 }
 0x3cf   : > { %1656 = vmatprep.mubr.f32.mxu1 %v1263_v53  ;;  %v1291_v53 = vld [vmem:[#allocation7 + $0x3c8] sm:$0xff] }
 0x3d2   : > { %1657 = vmatmul.mubr.f32.gmra.mrb[92].mxu1 %v1262_v54 }
 0x3d3   : > { %1661 = vmatprep.mubr.f32.mxu1 %v1265_v55 }
 0x3d6   : > { %1662 = vmatmul.mubr.f32.gmra.mrb[94].mxu1 %v1264_v56 }
 0x3d7   : > { %1666 = vmatprep.mubr.f32.mxu1 %v1267_v57 }
 0x3da   : > { %1667 = vmatmul.mubr.f32.gmra.mrb[96].mxu1 %v1266_v58  ;;  %v1305_v58 = vld [vmem:[%s4385_s4 + $0x38] sm:$0xff] }
 0x3db   : > { %1671 = vmatprep.mubr.f32.mxu1 %v1269_v59  ;;  %v1290_v59 = vld [vmem:[#allocation7 + $0x3c0] sm:$0xff] }
 0x3de   : > { %1672 = vmatmul.mubr.f32.gmra.mrb[98].mxu1 %v1268_v60 }
 0x3df   : > { %1676 = vmatprep.mubr.f32.mxu1 %v1271_v61 }
 0x3e2   : > { %1677 = vmatmul.mubr.f32.gmra.mrb[100].mxu1 %v1270_v62  ;;  %v1293_v62 = vld [vmem:[#allocation7 + $0x3d8] sm:$0xff] }
 0x3e3   : > { %1681 = vmatprep.mubr.f32.mxu1 %v1273_v63 }
 0x3e6   : > { %1682 = vmatmul.mubr.f32.gmra.mrb[102].mxu1 %v1272_v0 }
 0x3e7   : > { %1686 = vmatprep.mubr.f32.mxu1 %v1275_v1 }
 0x3ea   : > { %1687 = vmatmul.mubr.f32.gmra.mrb[104].mxu1 %v1274_v2 }
 0x3eb   : > { %1691 = vmatprep.mubr.f32.mxu1 %v1277_v3 }
 0x3ed   : > { %v1428_v7 = vpop.f32.mrb[0].mxu1 }
 0x3ee   : > { %v1429_v8 = vadd.f32 %v1428_v7, %v1298_v4  ;;  %v1430_v9 = vpop.f32.mrb[1].mxu1  ;;  %1692 = vmatmul.mubr.f32.gmra.mrb[106].mxu1 %v1276_v5  ;;  %v1306_v4 = vld [vmem:[%s4385_s4 + $0x40] sm:$0xff]  ;;  %v1292_v5 = vld [vmem:[#allocation7 + $0x3d0] sm:$0xff] }
 0x3ef   : > { %1696 = vmatprep.mubr.f32.mxu1 %v1279_v6 }
 0x3f0   : > { %v2698_v12 = vmul.f32 -1.442695, %v1429_v8  ;;  %v1295_v8 = vld [vmem:[#allocation7 + $0x3e8] sm:$0xff] }
 0x3f1   : > { %v1433_v15 = vpop.f32.mrb[2].mxu1 }
 0x3f2   : > { %3088 = vpow2.f32 %v2698_v12  ;;  %v1434_v16 = vadd.f32 %v1433_v15, %v1299_v10  ;;  %v1435_v17 = vpop.f32.mrb[3].mxu1  ;;  %1697 = vmatmul.mubr.f32.gmra.mrb[108].mxu1 %v1278_v11  ;;  %v1307_v15 = vld [vmem:[%s4385_s4 + $0x48] sm:$0xff] }
 0x3f3   : > { %1701 = vmatprep.mubr.f32.mxu1 %v1281_v13 }
 0x3f4   : > { %v2699_v20 = vmul.f32 -1.442695, %v1434_v16  ;;  %v1294_v16 = vld [vmem:[#allocation7 + $0x3e0] sm:$0xff] }
 0x3f5   : > { %v1438_v22 = vpop.f32.mrb[4].mxu1 }
 0x3f6   : > { %3090 = vpow2.f32 %v2699_v20  ;;  %v1439_v23 = vadd.f32 %v1438_v22, %v1300_v18  ;;  %v1440_v24 = vpop.f32.mrb[5].mxu1  ;;  %1702 = vmatmul.mubr.f32.gmra.mrb[110].mxu1 %v1280_v19  ;;  %v1297_v19 = vld [vmem:[#allocation7 + $0x3f8] sm:$0xff] }
 0x3f7   : > { %1706 = vmatprep.mubr.f32.mxu1 %v1283_v21 }
 0x3f8   : > { %v2700_v27 = vmul.f32 -1.442695, %v1439_v23 }
 0x3f9   : > { %v1443_v29 = vpop.f32.mrb[6].mxu1 }
 0x3fa   : > { %3092 = vpow2.f32 %v2700_v27  ;;  %v1444_v30 = vadd.f32 %v1443_v29, %v1301_v25  ;;  %v1445_v31 = vpop.f32.mrb[7].mxu1  ;;  %1707 = vmatmul.mubr.f32.gmra.mrb[112].mxu1 %v1282_v26  ;;  %v1308_v25 = vld [vmem:[%s4385_s4 + $0x50] sm:$0xff] }
 0x3fb   : > { %1711 = vmatprep.mubr.f32.mxu1 %v1285_v28  ;;  %v1296_v26 = vld [vmem:[#allocation7 + $0x3f0] sm:$0xff] }
 0x3fc   : > { %v3089_v33 = vpop.eup %3088  ;;  %v2701_v34 = vmul.f32 -1.442695, %v1444_v30 }
 0x3fd   : > { %v1939_v36 = vadd.f32 1.0, %v3089_v33  ;;  %v1448_v37 = vpop.f32.mrb[8].mxu1  ;;  %v1309_v33 = vld [vmem:[%s4385_s4 + $0x58] sm:$0xff] }
 0x3fe   : > { %3094 = vpow2.f32 %v2701_v34  ;;  %v1449_v38 = vadd.f32 %v1448_v37, %v1302_v32  ;;  %v1450_v39 = vpop.f32.mrb[9].mxu1  ;;  %1712 = vmatmul.mubr.f32.gmra.mrb[114].mxu1 %v1284_v14 }
 0x3ff   : > { %3096 = vrcp.f32 %v1939_v36  ;;  %1716 = vmatprep.mubr.f32.mxu1 %v1287_v35 }
 0x400   : > { %v3091_v42 = vpop.eup %3090  ;;  %v2702_v43 = vmul.f32 -1.442695, %v1449_v38 }
 0x401   : > { %v1940_v45 = vadd.f32 1.0, %v3091_v42  ;;  %v1453_v46 = vpop.f32.mrb[10].mxu1 }
 0x402   : > { %3098 = vpow2.f32 %v2702_v43  ;;  %v1454_v47 = vadd.f32 %v1453_v46, %v1303_v40  ;;  %v1455_v48 = vpop.f32.mrb[11].mxu1  ;;  %1717 = vmatmul.mubr.f32.gmra.mrb[116].mxu1 %v1286_v41  ;;  %v1310_v41 = vld [vmem:[%s4385_s4 + $0x60] sm:$0xff] }
 0x403   : > { %3100 = vrcp.f32 %v1940_v45  ;;  %1721 = vmatprep.mubr.f32.mxu1 %v1289_v44 }
 0x404   : > { %v3093_v51 = vpop.eup %3092  ;;  %v2703_v52 = vmul.f32 -1.442695, %v1454_v47 }
 0x405   : > { %v1941_v54 = vadd.f32 1.0, %v3093_v51  ;;  %v1458_v55 = vpop.f32.mrb[12].mxu1 }
 0x406   : > { %3102 = vpow2.f32 %v2703_v52  ;;  %v1459_v56 = vadd.f32 %v1458_v55, %v1304_v49  ;;  %v1460_v57 = vpop.f32.mrb[13].mxu1  ;;  %1722 = vmatmul.mubr.f32.gmra.mrb[118].mxu1 %v1288_v50  ;;  %v1311_v49 = vld [vmem:[%s4385_s4 + $0x68] sm:$0xff] }
 0x407   : > { %3104 = vrcp.f32 %v1941_v54  ;;  %1726 = vmatprep.mubr.f32.mxu1 %v1291_v53  ;;  %v1312_v57 = vld [vmem:[%s4385_s4 + $0x70] sm:$0xff] }
 0x408   : > { %v3095_v60 = vpop.eup %3094  ;;  %v2704_v61 = vmul.f32 -1.442695, %v1459_v56 }
 0x409   : > { %v3097_v63 = vpop.eup %3096  ;;  %v1942_v0 = vadd.f32 1.0, %v3095_v60  ;;  %v1463_v1 = vpop.f32.mrb[14].mxu1 }
 0x40a   : > { %3106 = vpow2.f32 %v2704_v61  ;;  %v1464_v2 = vadd.f32 %v1463_v1, %v1305_v58  ;;  %v1465_v3 = vpop.f32.mrb[15].mxu1  ;;  %1727 = vmatmul.mubr.f32.gmra.mrb[120].mxu1 %v1290_v59  ;;  %2133 = vperm.xlu0 %3086, %v3097_v63   ;;  %v1313_v1 = vld [vmem:[%s4385_s4 + $0x78] sm:$0xff] }
 0x40b   : > { %3108 = vrcp.f32 %v1942_v0  ;;  %1731 = vmatprep.mubr.f32.mxu1 %v1293_v62 }
 0x40c   : > { %v3099_v6 = vpop.eup %3098  ;;  %v2705_v7 = vmul.f32 -1.442695, %v1464_v2 }
 0x40d   : > { %v3101_v9 = vpop.eup %3100  ;;  %v1943_v10 = vadd.f32 1.0, %v3099_v6  ;;  %v1468_v11 = vpop.f32.mrb[16].mxu1 }
 0x40e   : > { %3110 = vpow2.f32 %v2705_v7  ;;  %v1469_v12 = vadd.f32 %v1468_v11, %v1306_v4  ;;  %v1470_v13 = vpop.f32.mrb[17].mxu1  ;;  %1732 = vmatmul.mubr.f32.gmra.mrb[122].mxu1 %v1292_v5  ;;  %2138 = vperm.xlu1 %3087, %v3101_v9   ;;  %v1314_v9 = vld [vmem:[%s4385_s4 + $0x80] sm:$0xff] }
 0x40f   : > { %3112 = vrcp.f32 %v1943_v10  ;;  %1736 = vmatprep.mubr.f32.mxu1 %v1295_v8 }
 0x410   : > { %v3103_v17 = vpop.eup %3102  ;;  %v2706_v18 = vmul.f32 -1.442695, %v1469_v12 }
 0x411   : > { %v3105_v20 = vpop.eup %3104  ;;  %v1944_v21 = vadd.f32 1.0, %v3103_v17  ;;  %v1473_v22 = vpop.f32.mrb[18].mxu1 }
 0x412   : > { %3114 = vpow2.f32 %v2706_v18  ;;  %v1474_v23 = vadd.f32 %v1473_v22, %v1307_v15  ;;  %v1475_v24 = vpop.f32.mrb[19].mxu1  ;;  %1737 = vmatmul.mubr.f32.gmra.mrb[124].mxu1 %v1294_v16  ;;  %2143 = vperm.xlu1 %3087, %v3105_v20   ;;  %v1315_v18 = vld [vmem:[%s4385_s4 + $0x88] sm:$0xff] }
 0x413   : > { %3116 = vrcp.f32 %v1944_v21  ;;  %1741 = vmatprep.mubr.f32.mxu1 %v1297_v19 }
 0x414   : > { %v3107_v27 = vpop.eup %3106  ;;  %v2707_v28 = vmul.f32 -1.442695, %v1474_v23 }
 0x415   : > { %v3109_v29 = vpop.eup %3108  ;;  %v1945_v30 = vadd.f32 1.0, %v3107_v27  ;;  %v1478_v31 = vpop.f32.mrb[20].mxu1 }
 0x416   : > { %3118 = vpow2.f32 %v2707_v28  ;;  %v1479_v32 = vadd.f32 %v1478_v31, %v1308_v25  ;;  %v1480_v14 = vpop.f32.mrb[21].mxu1  ;;  %1742 = vmatmul.mubr.f32.gmra.mrb[126].mxu1 %v1296_v26  ;;  %2148 = vperm.xlu1 %3087, %v3109_v29   ;;  %v1316_v26 = vld [vmem:[%s4385_s4 + $0x90] sm:$0xff] }
 0x417   : > { %3120 = vrcp.f32 %v1945_v30 }
 0x418   : > { %v3111_v34 = vpop.eup %3110  ;;  %v2708_v35 = vmul.f32 -1.442695, %v1479_v32 }
 0x419   : > { %v3113_v36 = vpop.eup %3112  ;;  %v1946_v37 = vadd.f32 1.0, %v3111_v34  ;;  %v1483_v38 = vpop.f32.mrb[22].mxu1 }
 0x41a   : > { %3122 = vpow2.f32 %v2708_v35  ;;  %v1484_v39 = vadd.f32 %v1483_v38, %v1309_v33  ;;  %v1485_v40 = vpop.f32.mrb[23].mxu1  ;;  %2153 = vperm.xlu1 %3087, %v3113_v36   ;;  %v1317_v33 = vld [vmem:[%s4385_s4 + $0x98] sm:$0xff] }
 0x41b   : > { %3124 = vrcp.f32 %v1946_v37 }
 0x41c   : > { %v3115_v42 = vpop.eup %3114  ;;  %v2709_v43 = vmul.f32 -1.442695, %v1484_v39 }
 0x41d   : > { %v3117_v44 = vpop.eup %3116  ;;  %v1947_v45 = vadd.f32 1.0, %v3115_v42  ;;  %v1488_v46 = vpop.f32.mrb[24].mxu1 }
 0x41e   : > { %3126 = vpow2.f32 %v2709_v43  ;;  %v1489_v47 = vadd.f32 %v1488_v46, %v1310_v41  ;;  %v1490_v48 = vpop.f32.mrb[25].mxu1  ;;  %2158 = vperm.xlu1 %3087, %v3117_v44   ;;  %v1318_v41 = vld [vmem:[%s4385_s4 + $0xa0] sm:$0xff] }
 0x41f   : > { %3128 = vrcp.f32 %v1947_v45 }
 0x420   : > { %v3119_v50 = vpop.eup %3118  ;;  %v2710_v51 = vmul.f32 -1.442695, %v1489_v47 }
 0x421   : > { %v3121_v52 = vpop.eup %3120  ;;  %v1948_v53 = vadd.f32 1.0, %v3119_v50  ;;  %v1493_v54 = vpop.f32.mrb[26].mxu1 }
 0x422   : > { %3130 = vpow2.f32 %v2710_v51  ;;  %v1494_v55 = vadd.f32 %v1493_v54, %v1311_v49  ;;  %v1495_v56 = vpop.f32.mrb[27].mxu1  ;;  %2163 = vperm.xlu1 %3087, %v3121_v52   ;;  %v1319_v49 = vld [vmem:[%s4385_s4 + $0xa8] sm:$0xff] }
 0x423   : > { %3132 = vrcp.f32 %v1948_v53 }
 0x424   : > { %v3123_v58 = vpop.eup %3122  ;;  %v2711_v59 = vmul.f32 -1.442695, %v1494_v55 }
 0x425   : > { %v3125_v60 = vpop.eup %3124  ;;  %v1949_v61 = vadd.f32 1.0, %v3123_v58  ;;  %v1498_v62 = vpop.f32.mrb[28].mxu1 }
 0x426   : > { %3134 = vpow2.f32 %v2711_v59  ;;  %v1499_v63 = vadd.f32 %v1498_v62, %v1312_v57  ;;  %v1500_v0 = vpop.f32.mrb[29].mxu1  ;;  %2168 = vperm.xlu1 %3087, %v3125_v60   ;;  %v1320_v57 = vld [vmem:[%s4385_s4 + $0xb0] sm:$0xff] }
 0x427   : > { %3136 = vrcp.f32 %v1949_v61 }
 0x428   : > { %v3127_v2 = vpop.eup %3126  ;;  %v2712_v3 = vmul.f32 -1.442695, %v1499_v63 }
 0x429   : > { %v3129_v4 = vpop.eup %3128  ;;  %v1950_v5 = vadd.f32 1.0, %v3127_v2  ;;  %v1503_v6 = vpop.f32.mrb[30].mxu1 }
 0x42a   : > { %3138 = vpow2.f32 %v2712_v3  ;;  %v1504_v7 = vadd.f32 %v1503_v6, %v1313_v1  ;;  %v1505_v8 = vpop.f32.mrb[31].mxu1  ;;  %2173 = vperm.xlu1 %3087, %v3129_v4   ;;  %v1321_v1 = vld [vmem:[%s4385_s4 + $0xb8] sm:$0xff] }
 0x42b   : > { %3140 = vrcp.f32 %v1950_v5 }
 0x42c   : > { %v3131_v10 = vpop.eup %3130  ;;  %v2713_v11 = vmul.f32 -1.442695, %v1504_v7 }
 0x42d   : > { %v3133_v12 = vpop.eup %3132  ;;  %v1951_v13 = vadd.f32 1.0, %v3131_v10  ;;  %v1508_v15 = vpop.f32.mrb[32].mxu1 }
 0x42e   : > { %3142 = vpow2.f32 %v2713_v11  ;;  %v1509_v16 = vadd.f32 %v1508_v15, %v1314_v9  ;;  %v1510_v17 = vpop.f32.mrb[33].mxu1  ;;  %2178 = vperm.xlu0 %3086, %v3133_v12   ;;  %v1322_v9 = vld [vmem:[%s4385_s4 + $0xc0] sm:$0xff] }
 0x42f   : > { %3144 = vrcp.f32 %v1951_v13 }
 0x430   : > { %v3135_v19 = vpop.eup %3134  ;;  %v2714_v20 = vmul.f32 -1.442695, %v1509_v16 }
 0x431   : > { %v3137_v21 = vpop.eup %3136  ;;  %v1952_v22 = vadd.f32 1.0, %v3135_v19  ;;  %v1513_v23 = vpop.f32.mrb[34].mxu1 }
 0x432   : > { %3146 = vpow2.f32 %v2714_v20  ;;  %v1514_v24 = vadd.f32 %v1513_v23, %v1315_v18  ;;  %v1515_v25 = vpop.f32.mrb[35].mxu1  ;;  %2183 = vperm.xlu1 %3087, %v3137_v21   ;;  %v1323_v18 = vld [vmem:[%s4385_s4 + $0xc8] sm:$0xff] }
 0x433   : > { %3148 = vrcp.f32 %v1952_v22 }
 0x434   : > { %v3139_v27 = vpop.eup %3138  ;;  %v2715_v28 = vmul.f32 -1.442695, %v1514_v24 }
 0x435   : > { %v3141_v29 = vpop.eup %3140  ;;  %v1953_v30 = vadd.f32 1.0, %v3139_v27  ;;  %v1518_v31 = vpop.f32.mrb[36].mxu1 }
 0x436   : > { %3150 = vpow2.f32 %v2715_v28  ;;  %v1519_v32 = vadd.f32 %v1518_v31, %v1316_v26  ;;  %v1520_v14 = vpop.f32.mrb[37].mxu1  ;;  %2188 = vperm.xlu0 %3086, %v3141_v29   ;;  %v1324_v26 = vld [vmem:[%s4385_s4 + $0xd0] sm:$0xff] }
 0x437   : > { %3152 = vrcp.f32 %v1953_v30 }
 0x438   : > { %v3143_v34 = vpop.eup %3142  ;;  %v2716_v35 = vmul.f32 -1.442695, %v1519_v32 }
 0x439   : > { %v3145_v36 = vpop.eup %3144  ;;  %v1954_v37 = vadd.f32 1.0, %v3143_v34  ;;  %v1523_v38 = vpop.f32.mrb[38].mxu1 }
 0x43a   : > { %3154 = vpow2.f32 %v2716_v35  ;;  %v1524_v39 = vadd.f32 %v1523_v38, %v1317_v33  ;;  %v1525_v40 = vpop.f32.mrb[39].mxu1  ;;  %2193 = vperm.xlu1 %3087, %v3145_v36   ;;  %v1325_v33 = vld [vmem:[%s4385_s4 + $0xd8] sm:$0xff] }
 0x43b   : > { %3156 = vrcp.f32 %v1954_v37 }
 0x43c   : > { %v3147_v42 = vpop.eup %3146  ;;  %v2717_v43 = vmul.f32 -1.442695, %v1524_v39 }
 0x43d   : > { %v3149_v44 = vpop.eup %3148  ;;  %v1955_v45 = vadd.f32 1.0, %v3147_v42  ;;  %v1528_v46 = vpop.f32.mrb[40].mxu1 }
 0x43e   : > { %3158 = vpow2.f32 %v2717_v43  ;;  %v1529_v47 = vadd.f32 %v1528_v46, %v1318_v41  ;;  %v1530_v48 = vpop.f32.mrb[41].mxu1  ;;  %2198 = vperm.xlu0 %3086, %v3149_v44   ;;  %v1326_v41 = vld [vmem:[%s4385_s4 + $0xe0] sm:$0xff] }
 0x43f   : > { %3160 = vrcp.f32 %v1955_v45 }
 0x440   : > { %v3151_v50 = vpop.eup %3150  ;;  %v2718_v51 = vmul.f32 -1.442695, %v1529_v47 }
 0x441   : > { %v3153_v52 = vpop.eup %3152  ;;  %v1956_v53 = vadd.f32 1.0, %v3151_v50  ;;  %v1533_v54 = vpop.f32.mrb[42].mxu1 }
 0x442   : > { %3162 = vpow2.f32 %v2718_v51  ;;  %v1534_v55 = vadd.f32 %v1533_v54, %v1319_v49  ;;  %v1535_v56 = vpop.f32.mrb[43].mxu1  ;;  %2203 = vperm.xlu1 %3087, %v3153_v52   ;;  %v1327_v49 = vld [vmem:[%s4385_s4 + $0xe8] sm:$0xff] }
 0x443   : > { %3164 = vrcp.f32 %v1956_v53 }
 0x444   : > { %v3155_v58 = vpop.eup %3154  ;;  %v2719_v59 = vmul.f32 -1.442695, %v1534_v55 }
 0x445   : > { %v3157_v60 = vpop.eup %3156  ;;  %v1957_v61 = vadd.f32 1.0, %v3155_v58  ;;  %v1538_v62 = vpop.f32.mrb[44].mxu1 }
 0x446   : > { %3166 = vpow2.f32 %v2719_v59  ;;  %v1539_v63 = vadd.f32 %v1538_v62, %v1320_v57  ;;  %v1540_v0 = vpop.f32.mrb[45].mxu1  ;;  %2208 = vperm.xlu0 %3086, %v3157_v60   ;;  %v1328_v57 = vld [vmem:[%s4385_s4 + $0xf0] sm:$0xff] }
 0x447   : > { %3168 = vrcp.f32 %v1957_v61 }
 0x448   : > { %v3159_v2 = vpop.eup %3158  ;;  %v2720_v3 = vmul.f32 -1.442695, %v1539_v63 }
 0x449   : > { %v3161_v4 = vpop.eup %3160  ;;  %v1958_v5 = vadd.f32 1.0, %v3159_v2  ;;  %v1543_v6 = vpop.f32.mrb[46].mxu1 }
 0x44a   : > { %3170 = vpow2.f32 %v2720_v3  ;;  %v1544_v7 = vadd.f32 %v1543_v6, %v1321_v1  ;;  %v1545_v8 = vpop.f32.mrb[47].mxu1  ;;  %2213 = vperm.xlu1 %3087, %v3161_v4   ;;  %v1329_v1 = vld [vmem:[%s4385_s4 + $0xf8] sm:$0xff] }
 0x44b   : > { %3172 = vrcp.f32 %v1958_v5 }
 0x44c   : > { %v3163_v10 = vpop.eup %3162  ;;  %v2721_v11 = vmul.f32 -1.442695, %v1544_v7 }
 0x44d   : > { %v3165_v12 = vpop.eup %3164  ;;  %v1959_v13 = vadd.f32 1.0, %v3163_v10  ;;  %v1548_v15 = vpop.f32.mrb[48].mxu1 }
 0x44e   : > { %3174 = vpow2.f32 %v2721_v11  ;;  %v1549_v16 = vadd.f32 %v1548_v15, %v1322_v9  ;;  %v1550_v17 = vpop.f32.mrb[49].mxu1  ;;  %2218 = vperm.xlu0 %3086, %v3165_v12   ;;  %v1330_v9 = vld [vmem:[%s4385_s4 + $0x100] sm:$0xff] }
 0x44f   : > { %3176 = vrcp.f32 %v1959_v13 }
 0x450   : > { %v3167_v19 = vpop.eup %3166  ;;  %v2722_v20 = vmul.f32 -1.442695, %v1549_v16 }
 0x451   : > { %v3169_v21 = vpop.eup %3168  ;;  %v1960_v22 = vadd.f32 1.0, %v3167_v19  ;;  %v1553_v23 = vpop.f32.mrb[50].mxu1 }
 0x452   : > { %3178 = vpow2.f32 %v2722_v20  ;;  %v1554_v24 = vadd.f32 %v1553_v23, %v1323_v18  ;;  %v1555_v25 = vpop.f32.mrb[51].mxu1  ;;  %2223 = vperm.xlu1 %3087, %v3169_v21   ;;  %v1331_v18 = vld [vmem:[%s4385_s4 + $0x108] sm:$0xff] }
 0x453   : > { %3180 = vrcp.f32 %v1960_v22 }
 0x454   : > { %v3171_v27 = vpop.eup %3170  ;;  %v2723_v28 = vmul.f32 -1.442695, %v1554_v24 }
 0x455   : > { %v3173_v29 = vpop.eup %3172  ;;  %v1961_v30 = vadd.f32 1.0, %v3171_v27  ;;  %v1558_v31 = vpop.f32.mrb[52].mxu1 }
 0x456   : > { %3182 = vpow2.f32 %v2723_v28  ;;  %v1559_v32 = vadd.f32 %v1558_v31, %v1324_v26  ;;  %v1560_v14 = vpop.f32.mrb[53].mxu1  ;;  %2228 = vperm.xlu0 %3086, %v3173_v29   ;;  %v1332_v26 = vld [vmem:[%s4385_s4 + $0x110] sm:$0xff] }
 0x457   : > { %3184 = vrcp.f32 %v1961_v30 }
 0x458   : > { %v3175_v34 = vpop.eup %3174  ;;  %v2724_v35 = vmul.f32 -1.442695, %v1559_v32 }
 0x459   : > { %v3177_v36 = vpop.eup %3176  ;;  %v1962_v37 = vadd.f32 1.0, %v3175_v34  ;;  %v1563_v38 = vpop.f32.mrb[54].mxu1 }
 0x45a   : > { %3186 = vpow2.f32 %v2724_v35  ;;  %v1564_v39 = vadd.f32 %v1563_v38, %v1325_v33  ;;  %v1565_v40 = vpop.f32.mrb[55].mxu1  ;;  %2233 = vperm.xlu1 %3087, %v3177_v36   ;;  %v1333_v33 = vld [vmem:[%s4385_s4 + $0x118] sm:$0xff] }
 0x45b   : > { %3188 = vrcp.f32 %v1962_v37 }
 0x45c   : > { %v3179_v42 = vpop.eup %3178  ;;  %v2725_v43 = vmul.f32 -1.442695, %v1564_v39 }
 0x45d   : > { %v3181_v44 = vpop.eup %3180  ;;  %v1963_v45 = vadd.f32 1.0, %v3179_v42  ;;  %v1568_v46 = vpop.f32.mrb[56].mxu1 }
 0x45e   : > { %3190 = vpow2.f32 %v2725_v43  ;;  %v1569_v47 = vadd.f32 %v1568_v46, %v1326_v41  ;;  %v1570_v48 = vpop.f32.mrb[57].mxu1  ;;  %2238 = vperm.xlu0 %3086, %v3181_v44   ;;  %v1334_v41 = vld [vmem:[%s4385_s4 + $0x120] sm:$0xff] }
 0x45f   : > { %3192 = vrcp.f32 %v1963_v45 }
 0x460   : > { %v3183_v50 = vpop.eup %3182  ;;  %v2726_v51 = vmul.f32 -1.442695, %v1569_v47 }
 0x461   : > { %v3185_v52 = vpop.eup %3184  ;;  %v1964_v53 = vadd.f32 1.0, %v3183_v50  ;;  %v1573_v54 = vpop.f32.mrb[58].mxu1 }
 0x462   : > { %3194 = vpow2.f32 %v2726_v51  ;;  %v1574_v55 = vadd.f32 %v1573_v54, %v1327_v49  ;;  %v1575_v56 = vpop.f32.mrb[59].mxu1  ;;  %2243 = vperm.xlu1 %3087, %v3185_v52   ;;  %v1335_v49 = vld [vmem:[%s4385_s4 + $0x128] sm:$0xff] }
 0x463   : > { %3196 = vrcp.f32 %v1964_v53 }
 0x464   : > { %v3187_v58 = vpop.eup %3186  ;;  %v2727_v59 = vmul.f32 -1.442695, %v1574_v55 }
 0x465   : > { %v3189_v60 = vpop.eup %3188  ;;  %v1965_v61 = vadd.f32 1.0, %v3187_v58  ;;  %v1578_v62 = vpop.f32.mrb[60].mxu1 }
 0x466   : > { %3198 = vpow2.f32 %v2727_v59  ;;  %v1579_v63 = vadd.f32 %v1578_v62, %v1328_v57  ;;  %v1580_v0 = vpop.f32.mrb[61].mxu1  ;;  %2248 = vperm.xlu0 %3086, %v3189_v60   ;;  %v1336_v57 = vld [vmem:[%s4385_s4 + $0x130] sm:$0xff] }
 0x467   : > { %3200 = vrcp.f32 %v1965_v61 }
 0x468   : > { %v3191_v2 = vpop.eup %3190  ;;  %v2728_v3 = vmul.f32 -1.442695, %v1579_v63 }
 0x469   : > { %v3193_v4 = vpop.eup %3192  ;;  %v1966_v5 = vadd.f32 1.0, %v3191_v2  ;;  %v1583_v6 = vpop.f32.mrb[62].mxu1 }
 0x46a   : > { %3202 = vpow2.f32 %v2728_v3  ;;  %v1584_v7 = vadd.f32 %v1583_v6, %v1329_v1  ;;  %v1585_v8 = vpop.f32.mrb[63].mxu1  ;;  %2253 = vperm.xlu1 %3087, %v3193_v4   ;;  %v1337_v1 = vld [vmem:[%s4385_s4 + $0x138] sm:$0xff] }
 0x46b   : > { %3204 = vrcp.f32 %v1966_v5 }
 0x46c   : > { %v3195_v10 = vpop.eup %3194  ;;  %v2729_v11 = vmul.f32 -1.442695, %v1584_v7 }
 0x46d   : > { %v3197_v12 = vpop.eup %3196  ;;  %v1967_v13 = vadd.f32 1.0, %v3195_v10  ;;  %v1588_v15 = vpop.f32.mrb[64].mxu1  ;;  %v3344_v10 = vld [vmem:[%s3788_s6] sm:$0xff] }
 0x46e   : > { %3206 = vpow2.f32 %v2729_v11  ;;  %v1589_v16 = vadd.f32 %v1588_v15, %v1330_v9  ;;  %v1590_v17 = vpop.f32.mrb[65].mxu1  ;;  %2258 = vperm.xlu0 %3086, %v3197_v12   ;;  %v1338_v12 = vld [vmem:[%s4385_s4 + $0x140] sm:$0xff] }
 0x46f   : > { %3208 = vrcp.f32 %v1967_v13 }
 0x470   : > { %v3199_v19 = vpop.eup %3198  ;;  %v2730_v20 = vmul.f32 -1.442695, %v1589_v16 }
 0x471   : > { %v3201_v21 = vpop.eup %3200  ;;  %v1968_v22 = vadd.f32 1.0, %v3199_v19  ;;  %v1593_v23 = vpop.f32.mrb[66].mxu1 }
 0x472   : > { %3210 = vpow2.f32 %v2730_v20  ;;  %v1594_v24 = vadd.f32 %v1593_v23, %v1331_v18  ;;  %v1595_v25 = vpop.f32.mrb[67].mxu1  ;;  %2263 = vperm.xlu1 %3087, %v3201_v21  }
 0x473   : > { %3212 = vrcp.f32 %v1968_v22  ;;  %v3345_v22 = vld [vmem:[%s3788_s6 + $0x8] sm:$0xff] }
 0x474   : > { %v3203_v27 = vpop.eup %3202  ;;  %v2731_v28 = vmul.f32 -1.442695, %v1594_v24  ;;  %v1339_v24 = vld [vmem:[%s4385_s4 + $0x148] sm:$0xff] }
 0x475   : > { %v3205_v29 = vpop.eup %3204  ;;  %v1969_v30 = vadd.f32 1.0, %v3203_v27  ;;  %v1598_v31 = vpop.f32.mrb[68].mxu1 }
 0x476   : > { %3214 = vpow2.f32 %v2731_v28  ;;  %v1599_v32 = vadd.f32 %v1598_v31, %v1332_v26  ;;  %v1600_v14 = vpop.f32.mrb[69].mxu1  ;;  %2268 = vperm.xlu0 %3086, %v3205_v29  }
 0x477   : > { %3216 = vrcp.f32 %v1969_v30  ;;  %v3346_v14 = vld [vmem:[%s3788_s6 + $0x10] sm:$0xff] }
 0x478   : > { %v3207_v34 = vpop.eup %3206  ;;  %v2732_v35 = vmul.f32 -1.442695, %v1599_v32 }
 0x479   : > { %v3209_v36 = vpop.eup %3208  ;;  %v1970_v37 = vadd.f32 1.0, %v3207_v34  ;;  %v1603_v38 = vpop.f32.mrb[70].mxu1  ;;  %v1340_v34 = vld [vmem:[%s4385_s4 + $0x150] sm:$0xff] }
 0x47a   : > { %3218 = vpow2.f32 %v2732_v35  ;;  %v1604_v39 = vadd.f32 %v1603_v38, %v1333_v33  ;;  %v1605_v40 = vpop.f32.mrb[71].mxu1  ;;  %2273 = vperm.xlu1 %3087, %v3209_v36  }
 0x47b   : > { %3220 = vrcp.f32 %v1970_v37 }
 0x47c   : > { %v3211_v42 = vpop.eup %3210  ;;  %v2733_v43 = vmul.f32 -1.442695, %v1604_v39 }
 0x47d   : > { %v3213_v44 = vpop.eup %3212  ;;  %v1971_v45 = vadd.f32 1.0, %v3211_v42  ;;  %v1608_v46 = vpop.f32.mrb[72].mxu1 }
 0x47e   : > { %3222 = vpow2.f32 %v2733_v43  ;;  %v1609_v47 = vadd.f32 %v1608_v46, %v1334_v41  ;;  %v1610_v48 = vpop.f32.mrb[73].mxu1  ;;  %2278 = vperm.xlu0 %3086, %v3213_v44   ;;  %v3347_v43 = vld [vmem:[%s3788_s6 + $0x18] sm:$0xff] }
 0x47f   : > { %3224 = vrcp.f32 %v1971_v45  ;;  %v1341_v45 = vld [vmem:[%s4385_s4 + $0x158] sm:$0xff] }
 0x480   : > { %v3215_v50 = vpop.eup %3214  ;;  %v2734_v51 = vmul.f32 -1.442695, %v1609_v47 }
 0x481   : > { %v3217_v52 = vpop.eup %3216  ;;  %v1972_v53 = vadd.f32 1.0, %v3215_v50  ;;  %v1613_v54 = vpop.f32.mrb[74].mxu1 }
 0x482   : > { %3226 = vpow2.f32 %v2734_v51  ;;  %v1614_v55 = vadd.f32 %v1613_v54, %v1335_v49  ;;  %v1615_v56 = vpop.f32.mrb[75].mxu1  ;;  %2283 = vperm.xlu1 %3087, %v3217_v52   ;;  %v3348_v54 = vld [vmem:[%s3788_s6 + $0x20] sm:$0xff] }
 0x483   : > { %3228 = vrcp.f32 %v1972_v53  ;;  %v1342_v56 = vld [vmem:[%s4385_s4 + $0x160] sm:$0xff] }
 0x484   : > { %v3219_v58 = vpop.eup %3218  ;;  %v2735_v59 = vmul.f32 -1.442695, %v1614_v55 }
 0x485   : > { %v3221_v60 = vpop.eup %3220  ;;  %v1973_v61 = vadd.f32 1.0, %v3219_v58  ;;  %v1618_v62 = vpop.f32.mrb[76].mxu1 }
 0x486   : > { %3230 = vpow2.f32 %v2735_v59  ;;  %v1619_v63 = vadd.f32 %v1618_v62, %v1336_v57  ;;  %v1620_v0 = vpop.f32.mrb[77].mxu1  ;;  %2288 = vperm.xlu0 %3086, %v3221_v60  }
 0x487   : > { %3232 = vrcp.f32 %v1973_v61 }
 0x488   : > { %v3223_v2 = vpop.eup %3222  ;;  %v2736_v3 = vmul.f32 -1.442695, %v1619_v63 }
 0x489   : > { %v3225_v4 = vpop.eup %3224  ;;  %v1974_v5 = vadd.f32 1.0, %v3223_v2  ;;  %v1623_v6 = vpop.f32.mrb[78].mxu1 }
 0x48a   : > { %v2134_v7 = vpop.permute.xlu0 %2133  ;;  %3234 = vpow2.f32 %v2736_v3  ;;  %v1624_v8 = vadd.f32 %v1623_v6, %v1337_v1  ;;  %v1625_v9 = vpop.f32.mrb[79].mxu1  ;;  %2293 = vperm.xlu1 %3087, %v3225_v4   ;;  %v3349_v1 = vld [vmem:[%s3788_s6 + $0x28] sm:$0xff] }
 0x48b   : > { %v2451_v11 = vmul.f32 %v3344_v10, %v2134_v7  ;;  %3236 = vrcp.f32 %v1974_v5  ;;  %v1343_v3 = vld [vmem:[%s4385_s4 + $0x168] sm:$0xff] }
 0x48c   : > { %v3227_v13 = vpop.eup %3226  ;;  %v2737_v15 = vmul.f32 -1.442695, %v1624_v8 }
 0x48d   : > { %2515 = vst [vmem:[%s4132_s28] sm:$0xff] %v2451_v11  ;;  %v3229_v16 = vpop.eup %3228  ;;  %v1975_v17 = vadd.f32 1.0, %v3227_v13  ;;  %v1628_v18 = vpop.f32.mrb[80].mxu1 }
 0x48e   : > { %v2139_v19 = vpop.permute.xlu1 %2138  ;;  %3238 = vpow2.f32 %v2737_v15  ;;  %v1629_v20 = vadd.f32 %v1628_v18, %v1338_v12  ;;  %v1630_v21 = vpop.f32.mrb[81].mxu1  ;;  %2298 = vperm.xlu0 %3086, %v3229_v16   ;;  %v3350_v12 = vld [vmem:[%s3788_s6 + $0x30] sm:$0xff] }
 0x48f   : > { %v2452_v23 = vmul.f32 %v3345_v22, %v2139_v19  ;;  %3240 = vrcp.f32 %v1975_v17  ;;  %v1344_v15 = vld [vmem:[%s4385_s4 + $0x170] sm:$0xff] }
 0x490   : > { %v3231_v25 = vpop.eup %3230  ;;  %v2738_v26 = vmul.f32 -1.442695, %v1629_v20 }
 0x491   : > { %2516 = vst [vmem:[%s4132_s28 + $0x8] sm:$0xff] %v2452_v23  ;;  %v3233_v27 = vpop.eup %3232  ;;  %v1976_v28 = vadd.f32 1.0, %v3231_v25  ;;  %v1633_v29 = vpop.f32.mrb[82].mxu1 }
 0x492   : > { %v2144_v30 = vpop.permute.xlu1 %2143  ;;  %3242 = vpow2.f32 %v2738_v26  ;;  %v1634_v31 = vadd.f32 %v1633_v29, %v1339_v24  ;;  %v1635_v32 = vpop.f32.mrb[83].mxu1  ;;  %2303 = vperm.xlu1 %3087, %v3233_v27   ;;  %v3351_v24 = vld [vmem:[%s3788_s6 + $0x38] sm:$0xff] }
 0x493   : > { %v2453_v33 = vmul.f32 %v3346_v14, %v2144_v30  ;;  %3244 = vrcp.f32 %v1976_v28  ;;  %v1345_v26 = vld [vmem:[%s4385_s4 + $0x178] sm:$0xff] }
 0x494   : > { %v3235_v35 = vpop.eup %3234  ;;  %v2739_v36 = vmul.f32 -1.442695, %v1634_v31 }
 0x495   : > { %2517 = vst [vmem:[%s4132_s28 + $0x10] sm:$0xff] %v2453_v33  ;;  %v3237_v37 = vpop.eup %3236  ;;  %v1977_v38 = vadd.f32 1.0, %v3235_v35  ;;  %v1638_v39 = vpop.f32.mrb[84].mxu1 }
 0x496   : > { %v2149_v40 = vpop.permute.xlu1 %2148  ;;  %3246 = vpow2.f32 %v2739_v36  ;;  %v1639_v41 = vadd.f32 %v1638_v39, %v1340_v34  ;;  %v1640_v42 = vpop.f32.mrb[85].mxu1  ;;  %2308 = vperm.xlu0 %3086, %v3237_v37   ;;  %v3352_v34 = vld [vmem:[%s3788_s6 + $0x40] sm:$0xff] }
 0x497   : > { %v2454_v44 = vmul.f32 %v3347_v43, %v2149_v40  ;;  %3248 = vrcp.f32 %v1977_v38  ;;  %v1346_v36 = vld [vmem:[%s4385_s4 + $0x180] sm:$0xff] }
 0x498   : > { %v3239_v46 = vpop.eup %3238  ;;  %v2740_v47 = vmul.f32 -1.442695, %v1639_v41 }
 0x499   : > { %2518 = vst [vmem:[%s4132_s28 + $0x18] sm:$0xff] %v2454_v44  ;;  %v3241_v48 = vpop.eup %3240  ;;  %v1978_v49 = vadd.f32 1.0, %v3239_v46  ;;  %v1643_v50 = vpop.f32.mrb[86].mxu1 }
 0x49a   : > { %v2154_v51 = vpop.permute.xlu1 %2153  ;;  %3250 = vpow2.f32 %v2740_v47  ;;  %v1644_v52 = vadd.f32 %v1643_v50, %v1341_v45  ;;  %v1645_v53 = vpop.f32.mrb[87].mxu1  ;;  %2313 = vperm.xlu1 %3087, %v3241_v48   ;;  %v3353_v45 = vld [vmem:[%s3788_s6 + $0x48] sm:$0xff] }
 0x49b   : > { %v2455_v55 = vmul.f32 %v3348_v54, %v2154_v51  ;;  %3252 = vrcp.f32 %v1978_v49  ;;  %v1347_v47 = vld [vmem:[%s4385_s4 + $0x188] sm:$0xff] }
 0x49c   : > { %v3243_v57 = vpop.eup %3242  ;;  %v2741_v58 = vmul.f32 -1.442695, %v1644_v52 }
 0x49d   : > { %2519 = vst [vmem:[%s4132_s28 + $0x20] sm:$0xff] %v2455_v55  ;;  %v3245_v59 = vpop.eup %3244  ;;  %v1979_v60 = vadd.f32 1.0, %v3243_v57  ;;  %v1648_v61 = vpop.f32.mrb[88].mxu1 }
 0x49e   : > { %v2159_v62 = vpop.permute.xlu1 %2158  ;;  %3254 = vpow2.f32 %v2741_v58  ;;  %v1649_v63 = vadd.f32 %v1648_v61, %v1342_v56  ;;  %v1650_v0 = vpop.f32.mrb[89].mxu1  ;;  %2318 = vperm.xlu0 %3086, %v3245_v59   ;;  %v3354_v56 = vld [vmem:[%s3788_s6 + $0x50] sm:$0xff] }
 0x49f   : > { %v2456_v2 = vmul.f32 %v3349_v1, %v2159_v62  ;;  %3256 = vrcp.f32 %v1979_v60  ;;  %v1348_v58 = vld [vmem:[%s4385_s4 + $0x190] sm:$0xff] }
 0x4a0   : > { %v3247_v4 = vpop.eup %3246  ;;  %v2742_v5 = vmul.f32 -1.442695, %v1649_v63 }
 0x4a1   : > { %2520 = vst [vmem:[%s4132_s28 + $0x28] sm:$0xff] %v2456_v2  ;;  %v3249_v6 = vpop.eup %3248  ;;  %v1980_v7 = vadd.f32 1.0, %v3247_v4  ;;  %v1653_v8 = vpop.f32.mrb[90].mxu1 }
 0x4a2   : > { %v2164_v9 = vpop.permute.xlu1 %2163  ;;  %3258 = vpow2.f32 %v2742_v5  ;;  %v1654_v10 = vadd.f32 %v1653_v8, %v1343_v3  ;;  %v1655_v11 = vpop.f32.mrb[91].mxu1  ;;  %2323 = vperm.xlu1 %3087, %v3249_v6   ;;  %v3355_v3 = vld [vmem:[%s3788_s6 + $0x58] sm:$0xff] }
 0x4a3   : > { %v2457_v13 = vmul.f32 %v3350_v12, %v2164_v9  ;;  %3260 = vrcp.f32 %v1980_v7  ;;  %v1349_v5 = vld [vmem:[%s4385_s4 + $0x198] sm:$0xff] }
 0x4a4   : > { %v3251_v16 = vpop.eup %3250  ;;  %v2743_v17 = vmul.f32 -1.442695, %v1654_v10 }
 0x4a5   : > { %2521 = vst [vmem:[%s4132_s28 + $0x30] sm:$0xff] %v2457_v13  ;;  %v3253_v18 = vpop.eup %3252  ;;  %v1981_v19 = vadd.f32 1.0, %v3251_v16  ;;  %v1658_v20 = vpop.f32.mrb[92].mxu1 }
 0x4a6   : > { %v2169_v21 = vpop.permute.xlu1 %2168  ;;  %3262 = vpow2.f32 %v2743_v17  ;;  %v1659_v22 = vadd.f32 %v1658_v20, %v1344_v15  ;;  %v1660_v23 = vpop.f32.mrb[93].mxu1  ;;  %2328 = vperm.xlu0 %3086, %v3253_v18   ;;  %v3356_v15 = vld [vmem:[%s3788_s6 + $0x60] sm:$0xff] }
 0x4a7   : > { %v2458_v25 = vmul.f32 %v3351_v24, %v2169_v21  ;;  %3264 = vrcp.f32 %v1981_v19  ;;  %v1350_v17 = vld [vmem:[%s4385_s4 + $0x1a0] sm:$0xff] }
 0x4a8   : > { %v3255_v27 = vpop.eup %3254  ;;  %v2744_v28 = vmul.f32 -1.442695, %v1659_v22 }
 0x4a9   : > { %2522 = vst [vmem:[%s4132_s28 + $0x38] sm:$0xff] %v2458_v25  ;;  %v3257_v29 = vpop.eup %3256  ;;  %v1982_v30 = vadd.f32 1.0, %v3255_v27  ;;  %v1663_v31 = vpop.f32.mrb[94].mxu1 }
 0x4aa   : > { %v2174_v32 = vpop.permute.xlu1 %2173  ;;  %3266 = vpow2.f32 %v2744_v28  ;;  %v1664_v14 = vadd.f32 %v1663_v31, %v1345_v26  ;;  %v1665_v33 = vpop.f32.mrb[95].mxu1  ;;  %2333 = vperm.xlu1 %3087, %v3257_v29   ;;  %v3357_v26 = vld [vmem:[%s3788_s6 + $0x68] sm:$0xff] }
 0x4ab   : > { %v2459_v35 = vmul.f32 %v3352_v34, %v2174_v32  ;;  %3268 = vrcp.f32 %v1982_v30  ;;  %v1351_v28 = vld [vmem:[%s4385_s4 + $0x1a8] sm:$0xff] }
 0x4ac   : > { %v3259_v37 = vpop.eup %3258  ;;  %v2745_v38 = vmul.f32 -1.442695, %v1664_v14 }
 0x4ad   : > { %2523 = vst [vmem:[%s4132_s28 + $0x40] sm:$0xff] %v2459_v35  ;;  %v3261_v39 = vpop.eup %3260  ;;  %v1983_v40 = vadd.f32 1.0, %v3259_v37  ;;  %v1668_v41 = vpop.f32.mrb[96].mxu1 }
 0x4ae   : > { %v2179_v42 = vpop.permute.xlu0 %2178  ;;  %3270 = vpow2.f32 %v2745_v38  ;;  %v1669_v43 = vadd.f32 %v1668_v41, %v1346_v36  ;;  %v1670_v44 = vpop.f32.mrb[97].mxu1  ;;  %2338 = vperm.xlu0 %3086, %v3261_v39   ;;  %v3358_v36 = vld [vmem:[%s3788_s6 + $0x70] sm:$0xff] }
 0x4af   : > { %v2460_v46 = vmul.f32 %v3353_v45, %v2179_v42  ;;  %3272 = vrcp.f32 %v1983_v40  ;;  %v1352_v38 = vld [vmem:[%s4385_s4 + $0x1b0] sm:$0xff] }
 0x4b0   : > { %v3263_v48 = vpop.eup %3262  ;;  %v2746_v49 = vmul.f32 -1.442695, %v1669_v43 }
 0x4b1   : > { %2524 = vst [vmem:[%s4132_s28 + $0x48] sm:$0xff] %v2460_v46  ;;  %v3265_v50 = vpop.eup %3264  ;;  %v1984_v51 = vadd.f32 1.0, %v3263_v48  ;;  %v1673_v52 = vpop.f32.mrb[98].mxu1 }
 0x4b2   : > { %v2184_v53 = vpop.permute.xlu1 %2183  ;;  %3274 = vpow2.f32 %v2746_v49  ;;  %v1674_v54 = vadd.f32 %v1673_v52, %v1347_v47  ;;  %v1675_v55 = vpop.f32.mrb[99].mxu1  ;;  %2343 = vperm.xlu1 %3087, %v3265_v50   ;;  %v3359_v47 = vld [vmem:[%s3788_s6 + $0x78] sm:$0xff] }
 0x4b3   : > { %v2461_v57 = vmul.f32 %v3354_v56, %v2184_v53  ;;  %3276 = vrcp.f32 %v1984_v51  ;;  %v1353_v49 = vld [vmem:[%s4385_s4 + $0x1b8] sm:$0xff] }
 0x4b4   : > { %v3267_v59 = vpop.eup %3266  ;;  %v2747_v60 = vmul.f32 -1.442695, %v1674_v54 }
 0x4b5   : > { %2525 = vst [vmem:[%s4132_s28 + $0x50] sm:$0xff] %v2461_v57  ;;  %v3269_v61 = vpop.eup %3268  ;;  %v1985_v62 = vadd.f32 1.0, %v3267_v59  ;;  %v1678_v63 = vpop.f32.mrb[100].mxu1 }
 0x4b6   : > { %v2189_v0 = vpop.permute.xlu0 %2188  ;;  %3278 = vpow2.f32 %v2747_v60  ;;  %v1679_v1 = vadd.f32 %v1678_v63, %v1348_v58  ;;  %v1680_v2 = vpop.f32.mrb[101].mxu1  ;;  %2348 = vperm.xlu0 %3086, %v3269_v61   ;;  %v3360_v58 = vld [vmem:[%s3788_s6 + $0x80] sm:$0xff] }
 0x4b7   : > { %v2462_v4 = vmul.f32 %v3355_v3, %v2189_v0  ;;  %3280 = vrcp.f32 %v1985_v62  ;;  %v1354_v60 = vld [vmem:[%s4385_s4 + $0x1c0] sm:$0xff] }
 0x4b8   : > { %v3271_v6 = vpop.eup %3270  ;;  %v2748_v7 = vmul.f32 -1.442695, %v1679_v1 }
 0x4b9   : > { %2526 = vst [vmem:[%s4132_s28 + $0x58] sm:$0xff] %v2462_v4  ;;  %v3273_v8 = vpop.eup %3272  ;;  %v1986_v9 = vadd.f32 1.0, %v3271_v6  ;;  %v1683_v10 = vpop.f32.mrb[102].mxu1 }
 0x4ba   : > { %v2194_v11 = vpop.permute.xlu1 %2193  ;;  %3282 = vpow2.f32 %v2748_v7  ;;  %v1684_v12 = vadd.f32 %v1683_v10, %v1349_v5  ;;  %v1685_v13 = vpop.f32.mrb[103].mxu1  ;;  %2353 = vperm.xlu1 %3087, %v3273_v8   ;;  %v3361_v5 = vld [vmem:[%s3788_s6 + $0x88] sm:$0xff] }
 0x4bb   : > { %v2463_v16 = vmul.f32 %v3356_v15, %v2194_v11  ;;  %3284 = vrcp.f32 %v1986_v9  ;;  %v1355_v7 = vld [vmem:[%s4385_s4 + $0x1c8] sm:$0xff] }
 0x4bc   : > { %v3275_v18 = vpop.eup %3274  ;;  %v2749_v19 = vmul.f32 -1.442695, %v1684_v12 }
 0x4bd   : > { %2527 = vst [vmem:[%s4132_s28 + $0x60] sm:$0xff] %v2463_v16  ;;  %v3277_v20 = vpop.eup %3276  ;;  %v1987_v21 = vadd.f32 1.0, %v3275_v18  ;;  %v1688_v22 = vpop.f32.mrb[104].mxu1 }
 0x4be   : > { %v2199_v23 = vpop.permute.xlu0 %2198  ;;  %3286 = vpow2.f32 %v2749_v19  ;;  %v1689_v24 = vadd.f32 %v1688_v22, %v1350_v17  ;;  %v1690_v25 = vpop.f32.mrb[105].mxu1  ;;  %2358 = vperm.xlu0 %3086, %v3277_v20   ;;  %v3362_v17 = vld [vmem:[%s3788_s6 + $0x90] sm:$0xff] }
 0x4bf   : > { %v2464_v27 = vmul.f32 %v3357_v26, %v2199_v23  ;;  %3288 = vrcp.f32 %v1987_v21  ;;  %v1356_v19 = vld [vmem:[%s4385_s4 + $0x1d0] sm:$0xff] }
 0x4c0   : > { %v3279_v29 = vpop.eup %3278  ;;  %v2750_v30 = vmul.f32 -1.442695, %v1689_v24 }
 0x4c1   : > { %2528 = vst [vmem:[%s4132_s28 + $0x68] sm:$0xff] %v2464_v27  ;;  %v3281_v31 = vpop.eup %3280  ;;  %v1988_v32 = vadd.f32 1.0, %v3279_v29  ;;  %v1693_v14 = vpop.f32.mrb[106].mxu1 }
 0x4c2   : > { %v2204_v33 = vpop.permute.xlu1 %2203  ;;  %3290 = vpow2.f32 %v2750_v30  ;;  %v1694_v34 = vadd.f32 %v1693_v14, %v1351_v28  ;;  %v1695_v35 = vpop.f32.mrb[107].mxu1  ;;  %2363 = vperm.xlu1 %3087, %v3281_v31   ;;  %v3363_v28 = vld [vmem:[%s3788_s6 + $0x98] sm:$0xff] }
 0x4c3   : > { %v2465_v37 = vmul.f32 %v3358_v36, %v2204_v33  ;;  %3292 = vrcp.f32 %v1988_v32  ;;  %v1357_v30 = vld [vmem:[%s4385_s4 + $0x1d8] sm:$0xff] }
 0x4c4   : > { %v3283_v39 = vpop.eup %3282  ;;  %v2751_v40 = vmul.f32 -1.442695, %v1694_v34 }
 0x4c5   : > { %2529 = vst [vmem:[%s4132_s28 + $0x70] sm:$0xff] %v2465_v37  ;;  %v3285_v41 = vpop.eup %3284  ;;  %v1989_v42 = vadd.f32 1.0, %v3283_v39  ;;  %v1698_v43 = vpop.f32.mrb[108].mxu1 }
 0x4c6   : > { %v2209_v44 = vpop.permute.xlu0 %2208  ;;  %3294 = vpow2.f32 %v2751_v40  ;;  %v1699_v45 = vadd.f32 %v1698_v43, %v1352_v38  ;;  %v1700_v46 = vpop.f32.mrb[109].mxu1  ;;  %2368 = vperm.xlu0 %3086, %v3285_v41   ;;  %v3364_v38 = vld [vmem:[%s3788_s6 + $0xa0] sm:$0xff] }
 0x4c7   : > { %v2466_v48 = vmul.f32 %v3359_v47, %v2209_v44  ;;  %3296 = vrcp.f32 %v1989_v42  ;;  %v1358_v40 = vld [vmem:[%s4385_s4 + $0x1e0] sm:$0xff] }
 0x4c8   : > { %v3287_v50 = vpop.eup %3286  ;;  %v2752_v51 = vmul.f32 -1.442695, %v1699_v45 }
 0x4c9   : > { %2530 = vst [vmem:[%s4132_s28 + $0x78] sm:$0xff] %v2466_v48  ;;  %v3289_v52 = vpop.eup %3288  ;;  %v1990_v53 = vadd.f32 1.0, %v3287_v50  ;;  %v1703_v54 = vpop.f32.mrb[110].mxu1 }
 0x4ca   : > { %v2214_v55 = vpop.permute.xlu1 %2213  ;;  %3298 = vpow2.f32 %v2752_v51  ;;  %v1704_v56 = vadd.f32 %v1703_v54, %v1353_v49  ;;  %v1705_v57 = vpop.f32.mrb[111].mxu1  ;;  %2373 = vperm.xlu1 %3087, %v3289_v52   ;;  %v3365_v49 = vld [vmem:[%s3788_s6 + $0xa8] sm:$0xff] }
 0x4cb   : > { %v2467_v59 = vmul.f32 %v3360_v58, %v2214_v55  ;;  %3300 = vrcp.f32 %v1990_v53  ;;  %v1359_v51 = vld [vmem:[%s4385_s4 + $0x1e8] sm:$0xff] }
 0x4cc   : > { %v3291_v61 = vpop.eup %3290  ;;  %v2753_v62 = vmul.f32 -1.442695, %v1704_v56 }
 0x4cd   : > { %2531 = vst [vmem:[%s4132_s28 + $0x80] sm:$0xff] %v2467_v59  ;;  %v3293_v63 = vpop.eup %3292  ;;  %v1991_v0 = vadd.f32 1.0, %v3291_v61  ;;  %v1708_v1 = vpop.f32.mrb[112].mxu1 }
 0x4ce   : > { %v2219_v2 = vpop.permute.xlu0 %2218  ;;  %3302 = vpow2.f32 %v2753_v62  ;;  %v1709_v3 = vadd.f32 %v1708_v1, %v1354_v60  ;;  %v1710_v4 = vpop.f32.mrb[113].mxu1  ;;  %2378 = vperm.xlu0 %3086, %v3293_v63   ;;  %v3366_v60 = vld [vmem:[%s3788_s6 + $0xb0] sm:$0xff] }
 0x4cf   : > { %v2468_v6 = vmul.f32 %v3361_v5, %v2219_v2  ;;  %3304 = vrcp.f32 %v1991_v0  ;;  %v1360_v62 = vld [vmem:[%s4385_s4 + $0x1f0] sm:$0xff] }
 0x4d0   : > { %v3295_v8 = vpop.eup %3294  ;;  %v2754_v9 = vmul.f32 -1.442695, %v1709_v3 }
 0x4d1   : > { %2532 = vst [vmem:[%s4132_s28 + $0x88] sm:$0xff] %v2468_v6  ;;  %v3297_v10 = vpop.eup %3296  ;;  %v1992_v11 = vadd.f32 1.0, %v3295_v8  ;;  %v1713_v12 = vpop.f32.mrb[114].mxu1 }
 0x4d2   : > { %v2224_v13 = vpop.permute.xlu1 %2223  ;;  %3306 = vpow2.f32 %v2754_v9  ;;  %v1714_v15 = vadd.f32 %v1713_v12, %v1355_v7  ;;  %v1715_v16 = vpop.f32.mrb[115].mxu1  ;;  %2383 = vperm.xlu1 %3087, %v3297_v10   ;;  %v3367_v7 = vld [vmem:[%s3788_s6 + $0xb8] sm:$0xff] }
 0x4d3   : > { %v2469_v18 = vmul.f32 %v3362_v17, %v2224_v13  ;;  %3308 = vrcp.f32 %v1992_v11  ;;  %v1361_v9 = vld [vmem:[%s4385_s4 + $0x1f8] sm:$0xff] }
 0x4d4   : > { %v3299_v20 = vpop.eup %3298  ;;  %v2755_v21 = vmul.f32 -1.442695, %v1714_v15 }
 0x4d5   : > { %2533 = vst [vmem:[%s4132_s28 + $0x90] sm:$0xff] %v2469_v18  ;;  %v3301_v22 = vpop.eup %3300  ;;  %v1993_v23 = vadd.f32 1.0, %v3299_v20  ;;  %v1718_v24 = vpop.f32.mrb[116].mxu1 }
 0x4d6   : > { %v2229_v25 = vpop.permute.xlu0 %2228  ;;  %3310 = vpow2.f32 %v2755_v21  ;;  %v1719_v26 = vadd.f32 %v1718_v24, %v1356_v19  ;;  %v1720_v27 = vpop.f32.mrb[117].mxu1  ;;  %2388 = vperm.xlu0 %3086, %v3301_v22   ;;  %v3368_v19 = vld [vmem:[%s3788_s6 + $0xc0] sm:$0xff] }
 0x4d7   : > { %v2470_v29 = vmul.f32 %v3363_v28, %v2229_v25  ;;  %3312 = vrcp.f32 %v1993_v23 }
 0x4d8   : > { %v3303_v31 = vpop.eup %3302  ;;  %v2756_v32 = vmul.f32 -1.442695, %v1719_v26  ;;  %v3369_v26 = vld [vmem:[%s3788_s6 + $0xc8] sm:$0xff] }
 0x4d9   : > { %2534 = vst [vmem:[%s4132_s28 + $0x98] sm:$0xff] %v2470_v29  ;;  %v3305_v14 = vpop.eup %3304  ;;  %v1994_v33 = vadd.f32 1.0, %v3303_v31  ;;  %v1723_v34 = vpop.f32.mrb[118].mxu1 }
 0x4da   : > { %v2234_v35 = vpop.permute.xlu1 %2233  ;;  %3314 = vpow2.f32 %v2756_v32  ;;  %v1724_v36 = vadd.f32 %v1723_v34, %v1357_v30  ;;  %v1725_v37 = vpop.f32.mrb[119].mxu1  ;;  %2393 = vperm.xlu1 %3087, %v3305_v14   ;;  %v3370_v32 = vld [vmem:[%s3788_s6 + $0xd0] sm:$0xff] }
 0x4db   : > { %v2471_v39 = vmul.f32 %v3364_v38, %v2234_v35  ;;  %3316 = vrcp.f32 %v1994_v33  ;;  %v3371_v37 = vld [vmem:[%s3788_s6 + $0xd8] sm:$0xff] }
 0x4dc   : > { %v3307_v41 = vpop.eup %3306  ;;  %v2757_v42 = vmul.f32 -1.442695, %v1724_v36 }
 0x4dd   : > { %2535 = vst [vmem:[%s4132_s28 + $0xa0] sm:$0xff] %v2471_v39  ;;  %v3309_v43 = vpop.eup %3308  ;;  %v1995_v44 = vadd.f32 1.0, %v3307_v41  ;;  %v1728_v45 = vpop.f32.mrb[120].mxu1 }
 0x4de   : > { %v2239_v46 = vpop.permute.xlu0 %2238  ;;  %3318 = vpow2.f32 %v2757_v42  ;;  %v1729_v47 = vadd.f32 %v1728_v45, %v1358_v40  ;;  %v1730_v48 = vpop.f32.mrb[121].mxu1  ;;  %2398 = vperm.xlu0 %3086, %v3309_v43   ;;  %v3372_v43 = vld [vmem:[%s3788_s6 + $0xe0] sm:$0xff] }
 0x4df   : > { %v2472_v50 = vmul.f32 %v3365_v49, %v2239_v46  ;;  %3320 = vrcp.f32 %v1995_v44 }
 0x4e0   : > { %v3311_v52 = vpop.eup %3310  ;;  %v2758_v53 = vmul.f32 -1.442695, %v1729_v47  ;;  %v3373_v47 = vld [vmem:[%s3788_s6 + $0xe8] sm:$0xff] }
 0x4e1   : > { %2536 = vst [vmem:[%s4132_s28 + $0xa8] sm:$0xff] %v2472_v50  ;;  %v3313_v54 = vpop.eup %3312  ;;  %v1996_v55 = vadd.f32 1.0, %v3311_v52  ;;  %v1733_v56 = vpop.f32.mrb[122].mxu1 }
 0x4e2   : > { %v2244_v57 = vpop.permute.xlu1 %2243  ;;  %3322 = vpow2.f32 %v2758_v53  ;;  %v1734_v58 = vadd.f32 %v1733_v56, %v1359_v51  ;;  %v1735_v59 = vpop.f32.mrb[123].mxu1  ;;  %2403 = vperm.xlu1 %3087, %v3313_v54   ;;  %v3374_v51 = vld [vmem:[%s3788_s6 + $0xf0] sm:$0xff] }
 0x4e3   : > { %v2473_v61 = vmul.f32 %v3366_v60, %v2244_v57  ;;  %3324 = vrcp.f32 %v1996_v55  ;;  %v3375_v55 = vld [vmem:[%s3788_s6 + $0xf8] sm:$0xff] }
 0x4e4   : > { %v3315_v63 = vpop.eup %3314  ;;  %v2759_v0 = vmul.f32 -1.442695, %v1734_v58  ;;  %v3376_v58 = vld [vmem:[%s3788_s6 + $0x100] sm:$0xff] }
 0x4e5   : > { %2537 = vst [vmem:[%s4132_s28 + $0xb0] sm:$0xff] %v2473_v61  ;;  %v3317_v1 = vpop.eup %3316  ;;  %v1997_v2 = vadd.f32 1.0, %v3315_v63  ;;  %v1738_v3 = vpop.f32.mrb[124].mxu1  ;;  %v3377_v61 = vld [vmem:[%s3788_s6 + $0x108] sm:$0xff] }
 0x4e6   : > { %v2249_v4 = vpop.permute.xlu0 %2248  ;;  %3326 = vpow2.f32 %v2759_v0  ;;  %v1739_v5 = vadd.f32 %v1738_v3, %v1360_v62  ;;  %v1740_v6 = vpop.f32.mrb[125].mxu1  ;;  %2408 = vperm.xlu0 %3086, %v3317_v1   ;;  %v3378_v0 = vld [vmem:[%s3788_s6 + $0x110] sm:$0xff]  ;;  %v3379_v3 = vld [vmem:[%s3788_s6 + $0x118] sm:$0xff] }
 0x4e7   : > { %v2474_v8 = vmul.f32 %v3367_v7, %v2249_v4  ;;  %3328 = vrcp.f32 %v1997_v2  ;;  %v3380_v6 = vld [vmem:[%s3788_s6 + $0x120] sm:$0xff] }
 0x4e8   : > { %v3319_v10 = vpop.eup %3318  ;;  %v2760_v11 = vmul.f32 -1.442695, %v1739_v5 }
 0x4e9   : > { %2538 = vst [vmem:[%s4132_s28 + $0xb8] sm:$0xff] %v2474_v8  ;;  %v3321_v12 = vpop.eup %3320  ;;  %v1998_v13 = vadd.f32 1.0, %v3319_v10  ;;  %v1743_v15 = vpop.f32.mrb[126].mxu1 }
 0x4ea   : > { %v2254_v16 = vpop.permute.xlu1 %2253  ;;  %3330 = vpow2.f32 %v2760_v11  ;;  %v1744_v17 = vadd.f32 %v1743_v15, %v1361_v9  ;;  %v1745_v18 = vpop.f32.mrb[127].mxu1  ;;  %2413 = vperm.xlu1 %3087, %v3321_v12   ;;  %v3381_v9 = vld [vmem:[%s3788_s6 + $0x128] sm:$0xff]  ;;  %v3382_v12 = vld [vmem:[%s3788_s6 + $0x130] sm:$0xff] }
 0x4eb   : > { %v2475_v20 = vmul.f32 %v3368_v19, %v2254_v16  ;;  %3332 = vrcp.f32 %v1998_v13  ;;  %v3383_v16 = vld [vmem:[%s3788_s6 + $0x138] sm:$0xff]  ;;  %v3384_v19 = vld [vmem:[%s3788_s6 + $0x140] sm:$0xff] }
 0x4ec   : > { %v3323_v21 = vpop.eup %3322  ;;  %v2761_v22 = vmul.f32 -1.442695, %v1744_v17 }
 0x4ed   : > { %2539 = vst [vmem:[%s4132_s28 + $0xc0] sm:$0xff] %v2475_v20  ;;  %v3325_v23 = vpop.eup %3324  ;;  %v1999_v24 = vadd.f32 1.0, %v3323_v21  ;;  %v2259_v25 = vpop.permute.xlu0 %2258 }
 0x4ee   : > { %3334 = vpow2.f32 %v2761_v22  ;;  %2418 = vperm.xlu0 %3086, %v3325_v23   ;;  %v2476_v27 = vmul.f32 %v3369_v26, %v2259_v25  ;;  %v3385_v22 = vld [vmem:[%s3788_s6 + $0x148] sm:$0xff]  ;;  %v3386_v25 = vld [vmem:[%s3788_s6 + $0x150] sm:$0xff] }
 0x4ef   : > { %3336 = vrcp.f32 %v1999_v24 }
 0x4f0   : > { %v3327_v28 = vpop.eup %3326  ;;  %2540 = vst [vmem:[%s4132_s28 + $0xc8] sm:$0xff] %v2476_v27 }
 0x4f1   : > { %v3329_v29 = vpop.eup %3328  ;;  %v2000_v30 = vadd.f32 1.0, %v3327_v28  ;;  %v2264_v31 = vpop.permute.xlu1 %2263  ;;  %v3387_v28 = vld [vmem:[%s3788_s6 + $0x158] sm:$0xff] }
 0x4f2   : > { %2423 = vperm.xlu1 %3087, %v3329_v29   ;;  %v2477_v14 = vmul.f32 %v3370_v32, %v2264_v31  ;;  %v3388_v31 = vld [vmem:[%s3788_s6 + $0x160] sm:$0xff] }
 0x4f3   : > { %3338 = vrcp.f32 %v2000_v30 }
 0x4f4   : > { %v3331_v33 = vpop.eup %3330  ;;  %2541 = vst [vmem:[%s4132_s28 + $0xd0] sm:$0xff] %v2477_v14 }
 0x4f5   : > { %v3333_v34 = vpop.eup %3332  ;;  %v2001_v35 = vadd.f32 1.0, %v3331_v33  ;;  %v2269_v36 = vpop.permute.xlu0 %2268  ;;  %v3389_v33 = vld [vmem:[%s3788_s6 + $0x168] sm:$0xff] }
 0x4f6   : > { %2428 = vperm.xlu0 %3086, %v3333_v34   ;;  %v2478_v38 = vmul.f32 %v3371_v37, %v2269_v36  ;;  %v3390_v36 = vld [vmem:[%s3788_s6 + $0x170] sm:$0xff] }
 0x4f7   : > { %3340 = vrcp.f32 %v2001_v35 }
 0x4f8   : > { %v3335_v39 = vpop.eup %3334  ;;  %2542 = vst [vmem:[%s4132_s28 + $0xd8] sm:$0xff] %v2478_v38 }
 0x4f9   : > { %v3337_v40 = vpop.eup %3336  ;;  %v2002_v41 = vadd.f32 1.0, %v3335_v39  ;;  %v2274_v42 = vpop.permute.xlu1 %2273  ;;  %v3391_v39 = vld [vmem:[%s3788_s6 + $0x178] sm:$0xff] }
 0x4fa   : > { %2433 = vperm.xlu1 %3087, %v3337_v40   ;;  %v2479_v44 = vmul.f32 %v3372_v43, %v2274_v42  ;;  %v3392_v42 = vld [vmem:[%s3788_s6 + $0x180] sm:$0xff] }
 0x4fb   : > { %3342 = vrcp.f32 %v2002_v41 }
 0x4fc   : > { %2543 = vst [vmem:[%s4132_s28 + $0xe0] sm:$0xff] %v2479_v44 }
 0x4fd   : > { %v3339_v45 = vpop.eup %3338  ;;  %v2279_v46 = vpop.permute.xlu0 %2278 }
 0x4fe   : > { %2438 = vperm.xlu0 %3086, %v3339_v45   ;;  %v2480_v48 = vmul.f32 %v3373_v47, %v2279_v46  ;;  %v3393_v45 = vld [vmem:[%s3788_s6 + $0x188] sm:$0xff] }
 0x500   : > { %2544 = vst [vmem:[%s4132_s28 + $0xe8] sm:$0xff] %v2480_v48  ;;  %v3394_v48 = vld [vmem:[%s3788_s6 + $0x190] sm:$0xff] }
 0x501   : > { %v3341_v49 = vpop.eup %3340  ;;  %v2284_v50 = vpop.permute.xlu1 %2283 }
 0x502   : > { %v2481_v52 = vmul.f32 %v3374_v51, %v2284_v50  ;;  %2443 = vperm.xlu1 %3087, %v3341_v49   ;;  %v3395_v51 = vld [vmem:[%s3788_s6 + $0x198] sm:$0xff] }
 0x504   : > { %2545 = vst [vmem:[%s4132_s28 + $0xf0] sm:$0xff] %v2481_v52 }
 0x505   : > { %v3343_v53 = vpop.eup %3342  ;;  %v2289_v54 = vpop.permute.xlu0 %2288 }
 0x506   : > { %2448 = vperm.xlu0 %3086, %v3343_v53   ;;  %v2482_v56 = vmul.f32 %v3375_v55, %v2289_v54  ;;  %v3396_v54 = vld [vmem:[%s3788_s6 + $0x1a0] sm:$0xff] }
 0x508   : > { %2546 = vst [vmem:[%s4132_s28 + $0xf8] sm:$0xff] %v2482_v56 }
 0x509   : > { %v2294_v57 = vpop.permute.xlu1 %2293 }
 0x50a   : > { %v2483_v59 = vmul.f32 %v3376_v58, %v2294_v57  ;;  %v3397_v57 = vld [vmem:[%s3788_s6 + $0x1a8] sm:$0xff] }
 0x50c   : > { %2547 = vst [vmem:[%s4132_s28 + $0x100] sm:$0xff] %v2483_v59 }
 0x50d   : > { %v2299_v60 = vpop.permute.xlu0 %2298 }
 0x50e   : > { %v2484_v62 = vmul.f32 %v3377_v61, %v2299_v60  ;;  %v3398_v60 = vld [vmem:[%s3788_s6 + $0x1b0] sm:$0xff] }
 0x510   : > { %2548 = vst [vmem:[%s4132_s28 + $0x108] sm:$0xff] %v2484_v62 }
 0x511   : > { %v2304_v63 = vpop.permute.xlu1 %2303 }
 0x512   : > { %v2485_v1 = vmul.f32 %v3378_v0, %v2304_v63  ;;  %v3399_v63 = vld [vmem:[%s3788_s6 + $0x1b8] sm:$0xff] }
 0x514   : > { %2549 = vst [vmem:[%s4132_s28 + $0x110] sm:$0xff] %v2485_v1 }
 0x515   : > { %v2309_v2 = vpop.permute.xlu0 %2308 }
 0x516   : > { %v2486_v4 = vmul.f32 %v3379_v3, %v2309_v2  ;;  %v3400_v2 = vld [vmem:[%s3788_s6 + $0x1c0] sm:$0xff] }
 0x518   : > { %2550 = vst [vmem:[%s4132_s28 + $0x118] sm:$0xff] %v2486_v4 }
 0x519   : > { %v2314_v5 = vpop.permute.xlu1 %2313 }
 0x51a   : > { %v2487_v7 = vmul.f32 %v3380_v6, %v2314_v5  ;;  %v3401_v5 = vld [vmem:[%s3788_s6 + $0x1c8] sm:$0xff] }
 0x51c   : > { %2551 = vst [vmem:[%s4132_s28 + $0x120] sm:$0xff] %v2487_v7 }
 0x51d   : > { %v2319_v8 = vpop.permute.xlu0 %2318 }
 0x51e   : > { %v2488_v10 = vmul.f32 %v3381_v9, %v2319_v8  ;;  %v3402_v8 = vld [vmem:[%s3788_s6 + $0x1d0] sm:$0xff] }
 0x520   : > { %2552 = vst [vmem:[%s4132_s28 + $0x128] sm:$0xff] %v2488_v10 }
 0x521   : > { %v2324_v11 = vpop.permute.xlu1 %2323 }
 0x522   : > { %v2489_v13 = vmul.f32 %v3382_v12, %v2324_v11  ;;  %v3403_v11 = vld [vmem:[%s3788_s6 + $0x1d8] sm:$0xff] }
 0x524   : > { %2553 = vst [vmem:[%s4132_s28 + $0x130] sm:$0xff] %v2489_v13 }
 0x525   : > { %v2329_v15 = vpop.permute.xlu0 %2328 }
 0x526   : > { %v2490_v17 = vmul.f32 %v3383_v16, %v2329_v15  ;;  %v3404_v15 = vld [vmem:[%s3788_s6 + $0x1e0] sm:$0xff] }
 0x528   : > { %2554 = vst [vmem:[%s4132_s28 + $0x138] sm:$0xff] %v2490_v17 }
 0x529   : > { %v2334_v18 = vpop.permute.xlu1 %2333 }
 0x52a   : > { %v2491_v20 = vmul.f32 %v3384_v19, %v2334_v18  ;;  %v3405_v18 = vld [vmem:[%s3788_s6 + $0x1e8] sm:$0xff] }
 0x52c   : > { %2555 = vst [vmem:[%s4132_s28 + $0x140] sm:$0xff] %v2491_v20 }
 0x52d   : > { %v2339_v21 = vpop.permute.xlu0 %2338 }
 0x52e   : > { %v2492_v23 = vmul.f32 %v3385_v22, %v2339_v21  ;;  %v3406_v21 = vld [vmem:[%s3788_s6 + $0x1f0] sm:$0xff] }
 0x530   : > { %2556 = vst [vmem:[%s4132_s28 + $0x148] sm:$0xff] %v2492_v23 }
 0x531   : > { %v2344_v24 = vpop.permute.xlu1 %2343 }
 0x532   : > { %v2493_v26 = vmul.f32 %v3386_v25, %v2344_v24  ;;  %v3407_v24 = vld [vmem:[%s3788_s6 + $0x1f8] sm:$0xff] }
 0x534   : > { %2557 = vst [vmem:[%s4132_s28 + $0x150] sm:$0xff] %v2493_v26 }
 0x535   : > { %v2349_v27 = vpop.permute.xlu0 %2348 }
 0x536   : > { %v2494_v29 = vmul.f32 %v3387_v28, %v2349_v27 }
 0x538   : > { %2558 = vst [vmem:[%s4132_s28 + $0x158] sm:$0xff] %v2494_v29 }
 0x539   : > { %v2354_v30 = vpop.permute.xlu1 %2353 }
 0x53a   : > { %v2495_v32 = vmul.f32 %v3388_v31, %v2354_v30 }
 0x53c   : > { %2559 = vst [vmem:[%s4132_s28 + $0x160] sm:$0xff] %v2495_v32 }
 0x53d   : > { %v2359_v14 = vpop.permute.xlu0 %2358 }
 0x53e   : > { %v2496_v34 = vmul.f32 %v3389_v33, %v2359_v14 }
 0x540   : > { %2560 = vst [vmem:[%s4132_s28 + $0x168] sm:$0xff] %v2496_v34 }
 0x541   : > { %v2364_v35 = vpop.permute.xlu1 %2363 }
 0x542   : > { %v2497_v37 = vmul.f32 %v3390_v36, %v2364_v35 }
 0x544   : > { %2561 = vst [vmem:[%s4132_s28 + $0x170] sm:$0xff] %v2497_v37 }
 0x545   : > { %v2369_v38 = vpop.permute.xlu0 %2368 }
 0x546   : > { %v2498_v40 = vmul.f32 %v3391_v39, %v2369_v38 }
 0x548   : > { %2562 = vst [vmem:[%s4132_s28 + $0x178] sm:$0xff] %v2498_v40 }
 0x549   : > { %v2374_v41 = vpop.permute.xlu1 %2373 }
 0x54a   : > { %v2499_v43 = vmul.f32 %v3392_v42, %v2374_v41 }
 0x54c   : > { %2563 = vst [vmem:[%s4132_s28 + $0x180] sm:$0xff] %v2499_v43 }
 0x54d   : > { %v2379_v44 = vpop.permute.xlu0 %2378 }
 0x54e   : > { %v2500_v46 = vmul.f32 %v3393_v45, %v2379_v44 }
 0x550   : > { %2564 = vst [vmem:[%s4132_s28 + $0x188] sm:$0xff] %v2500_v46 }
 0x551   : > { %v2384_v47 = vpop.permute.xlu1 %2383 }
 0x552   : > { %v2501_v49 = vmul.f32 %v3394_v48, %v2384_v47 }
 0x554   : > { %2565 = vst [vmem:[%s4132_s28 + $0x190] sm:$0xff] %v2501_v49 }
 0x555   : > { %v2389_v50 = vpop.permute.xlu0 %2388 }
 0x556   : > { %v2502_v52 = vmul.f32 %v3395_v51, %v2389_v50 }
 0x558   : > { %2566 = vst [vmem:[%s4132_s28 + $0x198] sm:$0xff] %v2502_v52 }
 0x559   : > { %v2394_v53 = vpop.permute.xlu1 %2393 }
 0x55a   : > { %v2503_v55 = vmul.f32 %v3396_v54, %v2394_v53 }
 0x55c   : > { %2567 = vst [vmem:[%s4132_s28 + $0x1a0] sm:$0xff] %v2503_v55 }
 0x55d   : > { %v2399_v56 = vpop.permute.xlu0 %2398 }
 0x55e   : > { %v2504_v58 = vmul.f32 %v3397_v57, %v2399_v56 }
 0x560   : > { %2568 = vst [vmem:[%s4132_s28 + $0x1a8] sm:$0xff] %v2504_v58 }
 0x561   : > { %v2404_v59 = vpop.permute.xlu1 %2403 }
 0x562   : > { %v2505_v61 = vmul.f32 %v3398_v60, %v2404_v59 }
 0x564   : > { %2569 = vst [vmem:[%s4132_s28 + $0x1b0] sm:$0xff] %v2505_v61 }
 0x565   : > { %v2409_v62 = vpop.permute.xlu0 %2408 }
 0x566   : > { %v2506_v0 = vmul.f32 %v3399_v63, %v2409_v62 }
 0x568   : > { %2570 = vst [vmem:[%s4132_s28 + $0x1b8] sm:$0xff] %v2506_v0 }
 0x569   : > { %v2414_v1 = vpop.permute.xlu1 %2413 }
 0x56a   : > { %v2507_v3 = vmul.f32 %v3400_v2, %v2414_v1 }
 0x56c   : > { %2571 = vst [vmem:[%s4132_s28 + $0x1c0] sm:$0xff] %v2507_v3 }
 0x56d   : > { %v2419_v4 = vpop.permute.xlu0 %2418 }
 0x56e   : > { %v2508_v6 = vmul.f32 %v3401_v5, %v2419_v4 }
 0x570   : > { %2572 = vst [vmem:[%s4132_s28 + $0x1c8] sm:$0xff] %v2508_v6 }
 0x571   : > { %v2424_v7 = vpop.permute.xlu1 %2423 }
 0x572   : > { %v2509_v9 = vmul.f32 %v3402_v8, %v2424_v7 }
 0x574   : > { %2573 = vst [vmem:[%s4132_s28 + $0x1d0] sm:$0xff] %v2509_v9 }
 0x575   : > { %v2429_v10 = vpop.permute.xlu0 %2428 }
 0x576   : > { %v2510_v12 = vmul.f32 %v3403_v11, %v2429_v10 }
 0x578   : > { %2574 = vst [vmem:[%s4132_s28 + $0x1d8] sm:$0xff] %v2510_v12 }
 0x579   : > { %v2434_v13 = vpop.permute.xlu1 %2433 }
 0x57a   : > { %v2511_v16 = vmul.f32 %v3404_v15, %v2434_v13 }
 0x57c   : > { %2575 = vst [vmem:[%s4132_s28 + $0x1e0] sm:$0xff] %v2511_v16 }
 0x57d   : > { %v2439_v17 = vpop.permute.xlu0 %2438 }
 0x57e   : > { %v2512_v19 = vmul.f32 %v3405_v18, %v2439_v17 }
 0x580   : > { %2576 = vst [vmem:[%s4132_s28 + $0x1e8] sm:$0xff] %v2512_v19 }
 0x581   : > { %v2444_v20 = vpop.permute.xlu1 %2443 }
 0x582   : > { %v2513_v22 = vmul.f32 %v3406_v21, %v2444_v20 }
 0x584   : > { %2577 = vst [vmem:[%s4132_s28 + $0x1f0] sm:$0xff] %v2513_v22 }
 0x585   : > { %v2449_v23 = vpop.permute.xlu0 %2448 }
 0x586   : > { %v2514_v25 = vmul.f32 %v3407_v24, %v2449_v23 }
 0x588   : > { %2578 = vst [vmem:[%s4132_s28 + $0x1f8] sm:$0xff] %v2514_v25 }
 0x589   : > { %3507 = shalt.err (!%p3504_p2)
}
 0x58a   : > { %s3508_s6 = scalar_lea.hbm %s4333_s26, 8192  ;;  %s3512_s8 = scalar_lea.hbm %s4386_s5, 16384 }
 0x58b   : > { %p3509_p13 = scmp.ne.s32.totalorder %s4333_s26, %s3508_s6  ;;  %p3513_p4 = scmp.lt.u32.totalorder %s4333_s26, %s4386_s5 }
 0x58c   : > { %p3514_p7 = scmp.lt.u32.totalorder %s3512_s8, %s3508_s6  ;;  %p3516_p11 = scmp.lt.u32.totalorder %s3508_s6, %s4333_s26 }
 0x58d   : > { %p3510_p6 = pnand %p3509_p13, %p4400_p0 }
 0x58e   : > { %p3515_p8 = por %p3514_p7, %p3513_p4 }
 0x58f   : > { %p3511_p10 = pneg %p3510_p6 }
 0x590   : > { %p3517_p1 = por %p3516_p11, %p3515_p8 }
 0x592   : > { %p3518_p3 = pnand %p3517_p1, %p3511_p10 }
 0x594   : > { %3521 = shalt.err (!%p3518_p3)
}
 0x595   : > { %s3578_s14 = smov 128   ;;  %s3579_s7 = smov 8  }
 0x596   : > { %3019 = dma.vmem_to_hbm [thread:$0]  (%p4400_p0), %s4335_s15, 8192, %s4333_s26, %s2580_s10, %s3578_s14, %s3578_s14, %s3579_s7  }
 0x597 PF: > { %s2608_s24 = sand.u32 1, %s3552_s18   ;;  %p4401_p5 = scmp.ne.s32.totalorder %s4391_s25, 0 }
 0x598   : > { %p4402_p9 = scmp.ge.s32.totalorder %s3564_s21, 2  ;;  %s2609_s12 = scalar_lea.sflag [#allocation4], %s2608_s24 }
 0x59a   : > { %p3033_p12 = pnand %p4402_p9, %p4401_p5 }
 0x59c   : > { %3547 = dma.done.wait (!%p3033_p12), %s2609_s12, 8192  }
 0x59d   : > { %3549 = vsyncadd (!%p3033_p12), %s2609_s12, 4294959104  ;;  %p19_p2 = scmp.ge.s32.totalorder %s3720_s16, 4   ;;  %s4403_s18 = smov %s3556_s19 }
 0x59e   : > { %s4404_s19 = smov %s3560_s20  ;;  %s4405_s20 = smov %s3729_s27 }
 0x59f   : > { %s4406_s21 = smov %s3720_s16  ;;  %21 = sbr.rel (!%p19_p2) target bundleno = 6 (0x6), region = 93 }
 0x5a6   :  { %2614 = vsyncpa [#allocation3], 1 }
 0x5a7   :  { %2616 = vsyncpa [#allocation3 + $0x1], 1 }
 0x5a8   :  { %2617 = vsyncpa [#allocation6], 1 }
 0x5a9   :  { %2618 = vsyncpa [#allocation4], 1 }
 0x5aa   :  { %2620 = vsyncpa [#allocation4 + $0x1], 1 }

</bundles_post_ra>
